<compile_context>
chip_gen: v7x
topology: tpu7x:2x2x1
jax: 0.10.0
libtpu: 0.0.40
codegen_flags: <defaults>
</compile_context>

<pallas_src>
import functools

import numpy as np
import jax
import jax.numpy as jnp
from jax import lax
from jax.experimental import pallas as pl
from jax.experimental.pallas import tpu as pltpu

NEG_SLOPE = 0.01  # torch nn.LeakyReLU default negative_slope


def _round_up(x, m):
    return (x + m - 1) // m * m


def gat_softmax_agg_kernel(h_ref, t_ref, lmask_ref, s_ref, nmask_ref, out_ref,
                           *, num_heads, mxu_dtype):
    """Per node-tile masked softmax + neighbor aggregation.

    h_ref     : (NP, OUT_PAD)  mxu dtype  per-head projections packed on lanes (resident)
    t_ref     : (K, NP)        f32        neighbor logits a_nbr_k.h_k[j] + ab_k (resident)
    lmask_ref : (K, OUT_PAD)   f32        {0,1} head -> lane selector          (resident)
    s_ref     : (TN, K)        f32        self logits a_self_k.h_k[self_i]     (per tile)
    nmask_ref : (TN, NP)       int8       neighbor mask for this node tile
    out_ref   : (TN, OUT_PAD)  f32        packed per-head outputs (lane-dense store)
    """
    f32 = jnp.float32
    maskf = nmask_ref[...].astype(f32)                # (TN, NP), exactly {0,1}
    neg_bias = (maskf - 1.0) * f32(1e30)              # 0 on neighbors, -1e30 elsewhere
    h = h_ref[...]                                    # (NP, OUT_PAD)

    acc = jnp.zeros(out_ref.shape, f32)
    for k in range(num_heads):                        # K small & static: unrolled
        e = s_ref[:, k:k + 1] + t_ref[k:k + 1, :]     # (TN, NP)
        e = jnp.maximum(e, f32(NEG_SLOPE) * e)        # leakyrelu (slope < 1)
        e = e + neg_bias                              # additive mask (no select)
        p = jnp.exp(e - jnp.max(e, axis=1, keepdims=True)) * maskf
        # NOTE: rows with zero neighbors (padding rows) get denom clamped and an
        # all-zero output row, where torch would produce NaN/undefined.
        denom = jnp.maximum(jnp.sum(p, axis=1, keepdims=True), f32(1e-30))
        alpha = p * pl.reciprocal(denom, approx=True)        # divide on the EUP
        # out_k = alpha_k @ h ; keep only head-k lanes via a {0,1} lane mask.
        y = jnp.dot(alpha.astype(mxu_dtype), h, preferred_element_type=f32)
        acc = acc + y * lmask_ref[k:k + 1, :]
    out_ref[...] = acc                                # single unmasked lane-dense store


def _derive_vmem_limit_bytes(np_rows, out_pad, num_heads, tile_n, mxu_itemsize):
    resident = (np_rows * out_pad * mxu_itemsize      # h_all
                + num_heads * np_rows * 4             # t
                + num_heads * out_pad * 4)            # head -> lane mask
    streaming = (tile_n * num_heads * 4               # self-logit tile
                 + tile_n * np_rows                   # int8 neighbor mask tile
                 + tile_n * out_pad * 4)              # output tile
    temporaries = 8 * tile_n * np_rows * 4 + 4 * tile_n * out_pad * 4
    # 2x resident covers the double-buffered fallback; + headroom for internals.
    est = 2 * resident + 2 * streaming + temporaries + (4 << 20)
    return int(min(max(est, 16 << 20), 64 << 20))


def graph_attention_forward(features, nodes, mapping, rows, W, b_fc, A, Ab,
                            *, tile_n=128, mxu_dtype=jnp.bfloat16):
    """features (NP,DIN) f32; W (K,DOUT,DIN); b_fc (K,DOUT); A (K,2*DOUT); Ab (K,).
    Returns a (K, N, DOUT) f32 array (one slab per head, matching the torch forward)."""
    K, DOUT, DIN = W.shape
    NP = features.shape[0]
    N = len(nodes)
    OUT_PAD = _round_up(max(K * DOUT, 128), 128)
    N_PAD = _round_up(max(N, tile_n), tile_n)   # choose tile_n dividing N when possible

    # ---- host-side graph lowering (numpy glue) ----
    self_idx = np.array([mapping[v] for v in nodes], dtype=np.int32)
    mask_np = np.zeros((N_PAD, NP), dtype=np.int8)
    for i, row in enumerate(rows):
        for c in row:
            mask_np[i, mapping[c]] = 1

    # ---- parameter packing: heads folded along the (padded) lane axis ----
    W_np = np.asarray(W, np.float32)
    b_np = np.asarray(b_fc, np.float32)
    A_np = np.asarray(A, np.float32)
    w_pad = np.zeros((DIN, OUT_PAD), np.float32)
    b_pad = np.zeros((OUT_PAD,), np.float32)
    a_self = np.zeros((K, OUT_PAD), np.float32)
    a_nbr = np.zeros((K, OUT_PAD), np.float32)
    lane_mask = np.zeros((K, OUT_PAD), np.float32)
    for k in range(K):
        lo = k * DOUT
        w_pad[:, lo:lo + DOUT] = W_np[k].T
        b_pad[lo:lo + DOUT] = b_np[k]
        a_self[k, lo:lo + DOUT] = A_np[k, :DOUT]
        a_nbr[k, lo:lo + DOUT] = A_np[k, DOUT:]
        lane_mask[k, lo:lo + DOUT] = 1.0

    # ---- hoisted, grid-invariant precompute (plain XLA, runs exactly once) ----
    featf = jnp.asarray(features, jnp.float32)
    h_all = featf @ jnp.asarray(w_pad) + jnp.asarray(b_pad)             # (NP, OUT_PAD) f32
    t = lax.dot_general(jnp.asarray(a_nbr), h_all,                      # (K, NP) f32
                        (((1,), (1,)), ((), ()))) \
        + jnp.asarray(Ab, jnp.float32)[:, None]
    s_all = lax.dot_general(h_all, jnp.asarray(a_self),                 # (NP, K) f32
                            (((1,), (1,)), ((), ())))
    s_gather = jnp.zeros((N_PAD, K), jnp.float32).at[:N].set(s_all[self_idx])

    h_kern = h_all.astype(mxu_dtype)
    nmask = jnp.asarray(mask_np)                      # int8
    lmask = jnp.asarray(lane_mask)

    kernel = functools.partial(gat_softmax_agg_kernel, num_heads=K,
                               mxu_dtype=mxu_dtype)
    mxu_itemsize = jnp.dtype(mxu_dtype).itemsize
    vmem_limit = _derive_vmem_limit_bytes(NP, OUT_PAD, K, tile_n, mxu_itemsize)
    cost = pl.CostEstimate(
        flops=2 * N_PAD * NP * OUT_PAD * K,
        transcendentals=K * N_PAD * NP + K * N_PAD,
        bytes_accessed=(N_PAD * NP + NP * OUT_PAD * mxu_itemsize
                        + K * NP * 4 + K * OUT_PAD * 4
                        + N_PAD * K * 4 + N_PAD * OUT_PAD * 4))

    def build(resident_mode):
        kw = {} if resident_mode is None else {"pipeline_mode": resident_mode}
        in_specs = [
            pl.BlockSpec((NP, OUT_PAD), lambda i: (0, 0), **kw),   # h_all (resident)
            pl.BlockSpec((K, NP), lambda i: (0, 0), **kw),         # neighbor logits t
            pl.BlockSpec((K, OUT_PAD), lambda i: (0, 0), **kw),    # head -> lane mask
            pl.BlockSpec((tile_n, K), lambda i: (i, 0)),           # self logits tile
            pl.BlockSpec((tile_n, NP), lambda i: (i, 0)),          # int8 neighbor mask
        ]
        return pl.pallas_call(
            kernel,
            out_shape=jax.ShapeDtypeStruct((N_PAD, OUT_PAD), jnp.float32),
            grid=(N_PAD // tile_n,),
            in_specs=in_specs,
            out_specs=pl.BlockSpec((tile_n, OUT_PAD), lambda i: (i, 0)),
            compiler_params=pltpu.CompilerParams(
                dimension_semantics=("parallel",),
                vmem_limit_bytes=vmem_limit),
            cost_estimate=cost,
        )

    args = (h_kern, t, lmask, s_gather, nmask)
    try:
        # Single-buffer the grid-invariant blocks (halves resident VMEM on v7x).
        out = jax.block_until_ready(build(pl.Buffered(1))(*args))
    except Exception:
        # pipeline_mode=Buffered(1) not supported here: fall back to defaults.
        out = jax.block_until_ready(build(None)(*args))

    out = out[:N, :K * DOUT].reshape(N, K, DOUT)     # drop N / lane padding
    return jnp.transpose(out, (1, 0, 2))             # (K, N, DOUT)


def numpy_reference(features, nodes, mapping, rows, W, b_fc, A, Ab):
    """Direct re-implementation of the torch forward (eval-mode dropout)."""
    K, DOUT, _ = W.shape
    mapped_rows = [np.array([mapping[v] for v in row], dtype=np.int64) for row in rows]
    mapped_nodes = [mapping[v] for v in nodes]
    outs = []
    for k in range(K):
        h = features @ W[k].T + b_fc[k]
        out = np.zeros((len(nodes), DOUT), dtype=np.float64)
        for i, row in enumerate(mapped_rows):
            self_h = np.tile(h[mapped_nodes[i]], (len(row), 1))
            nbr_h = h[row]
            cat = np.concatenate([self_h, nbr_h], axis=1)
            e = cat @ A[k] + Ab[k]
            e = np.where(e >= 0, e, NEG_SLOPE * e)
            e = e - e.max()
            p = np.exp(e)
            alpha = p / p.sum()
            out[i] = alpha @ nbr_h
        outs.append(out)
    return np.stack(outs)


if __name__ == "__main__":
    # -------- small but layout-friendly sizes --------
    NPRIME = 256   # n' : number of rows in `features`
    DIN = 32       # input_dim
    DOUT = 16      # output_dim per head
    K = 2          # num_heads
    N = 256        # len(nodes) in this layer  (-> 2 parallel grid tiles of 128)

    # -------- deterministic parameters (nn.Linear-style init) --------
    key = jax.random.PRNGKey(0)
    k1, k2, k3, k4, k5 = jax.random.split(key, 5)
    bw = 1.0 / np.sqrt(DIN)
    ba = 1.0 / np.sqrt(2 * DOUT)
    W = jax.random.uniform(k1, (K, DOUT, DIN), jnp.float32, -bw, bw)     # fcs[k].weight
    b_fc = jax.random.uniform(k2, (K, DOUT), jnp.float32, -bw, bw)       # fcs[k].bias
    A = jax.random.uniform(k3, (K, 2 * DOUT), jnp.float32, -ba, ba)      # a[k].weight
    Ab = jax.random.uniform(k4, (K,), jnp.float32, -ba, ba)              # a[k].bias

    # -------- deterministic graph (nodes / mapping / rows like the torch API) ----
    mapping = {v: (v * 5) % NPRIME for v in range(NPRIME)}               # a permutation
    nodes = list(range(N))
    rows = [[(v + 1) % NPRIME, (v + 5) % NPRIME, (v + 11) % NPRIME] for v in nodes]

    features = jax.random.normal(k5, (NPRIME, DIN), jnp.float32)

    ref = numpy_reference(np.asarray(features, np.float64), nodes, mapping, rows,
                          np.asarray(W, np.float64), np.asarray(b_fc, np.float64),
                          np.asarray(A, np.float64), np.asarray(Ab, np.float64))

    # f32 MXU operands: exact-check path (the only approximation left is the
    # hardware approximate reciprocal in the softmax, hence the 1e-2 tolerance).
    out_f32 = graph_attention_forward(features, nodes, mapping, rows, W, b_fc, A, Ab,
                                      tile_n=128, mxu_dtype=jnp.float32)
    out_f32 = jax.block_until_ready(out_f32)
    np.testing.assert_allclose(np.asarray(out_f32), ref, rtol=1e-2, atol=1e-2)

    # bf16 MXU operands: production path on all generations (f32 accumulation,
    # f32 softmax math; h/t/s precomputed in f32 before the bf16 cast).
    out_bf16 = graph_attention_forward(features, nodes, mapping, rows, W, b_fc, A, Ab,
                                       tile_n=128, mxu_dtype=jnp.bfloat16)
    out_bf16 = jax.block_until_ready(out_bf16)
    np.testing.assert_allclose(np.asarray(out_bf16), ref, rtol=5e-2, atol=5e-2)

    print("KERNEL_OK")
</pallas_src>

<mosaic_0001>
module attributes {stable_mosaic.version = 11 : i64} {
  func.func @gat_softmax_agg_kernel(%arg0: i32, %arg1: memref<256x128xf32, #tpu.memory_space<vmem>>, %arg2: memref<2x256xf32, #tpu.memory_space<vmem>>, %arg3: memref<2x128xf32, #tpu.memory_space<vmem>>, %arg4: memref<128x2xf32, #tpu.memory_space<vmem>>, %arg5: memref<128x256xi8, #tpu.memory_space<vmem>>, %arg6: memref<128x128xf32, #tpu.memory_space<vmem>>) attributes {dimension_semantics = [#tpu.dimension_semantics<parallel>], iteration_bounds = array<i64: 2>, scalar_prefetch = 0 : i64, scratch_operands = 0 : i64, tpu.core_type = #tpu.core_type<tc>, window_params = [{pipeline_mode = #tpu.pipeline_mode<synchronous>, transform_indices = @transform_0, window_bounds = array<i64: 256, 128>}, {pipeline_mode = #tpu.pipeline_mode<synchronous>, transform_indices = @transform_1, window_bounds = array<i64: 2, 256>}, {pipeline_mode = #tpu.pipeline_mode<synchronous>, transform_indices = @transform_2, window_bounds = array<i64: 2, 128>}, {transform_indices = @transform_3, window_bounds = array<i64: 128, 2>}, {transform_indices = @transform_4, window_bounds = array<i64: 128, 256>}, {transform_indices = @transform_5, window_bounds = array<i64: 128, 128>}]} {
    %c0 = arith.constant 0 : index
    %c0_0 = arith.constant 0 : index
    %0 = vector.load %arg5[%c0, %c0_0] : memref<128x256xi8, #tpu.memory_space<vmem>>, vector<128x256xi8>
    %1 = arith.sitofp %0 : vector<128x256xi8> to vector<128x256xf32>
    %cst = arith.constant 1.000000e+00 : f32
    %2 = vector.broadcast %cst : f32 to vector<128x256xf32>
    %3 = arith.subf %1, %2 : vector<128x256xf32>
    %cst_1 = arith.constant 1.000000e+30 : f32
    %4 = vector.broadcast %cst_1 : f32 to vector<128x256xf32>
    %5 = arith.mulf %3, %4 : vector<128x256xf32>
    %c0_2 = arith.constant 0 : index
    %c0_3 = arith.constant 0 : index
    %6 = vector.load %arg1[%c0_2, %c0_3] : memref<256x128xf32, #tpu.memory_space<vmem>>, vector<256x128xf32>
    %cst_4 = arith.constant 0.000000e+00 : f32
    %7 = vector.broadcast %cst_4 : f32 to vector<128x128xf32>
    %c0_5 = arith.constant 0 : index
    %c0_6 = arith.constant 0 : index
    %8 = vector.load %arg4[%c0_5, %c0_6] : memref<128x2xf32, #tpu.memory_space<vmem>>, vector<128x1xf32>
    %c0_7 = arith.constant 0 : index
    %c0_8 = arith.constant 0 : index
    %9 = vector.load %arg2[%c0_7, %c0_8] : memref<2x256xf32, #tpu.memory_space<vmem>>, vector<1x256xf32>
    %10 = vector.broadcast %8 : vector<128x1xf32> to vector<128x256xf32>
    %11 = vector.broadcast %9 : vector<1x256xf32> to vector<128x256xf32>
    %12 = arith.addf %10, %11 : vector<128x256xf32>
    %cst_9 = arith.constant 0.00999999977 : f32
    %13 = vector.broadcast %cst_9 : f32 to vector<128x256xf32>
    %14 = arith.mulf %13, %12 : vector<128x256xf32>
    %15 = arith.maximumf %12, %14 : vector<128x256xf32>
    %16 = arith.addf %15, %5 : vector<128x256xf32>
    %cst_10 = arith.constant dense<0xFF800000> : vector<128xf32>
    %17 = vector.multi_reduction <maximumf>, %16, %cst_10 [1] : vector<128x256xf32> to vector<128xf32>
    %18 = vector.shape_cast %17 : vector<128xf32> to vector<128x1xf32>
    %19 = vector.broadcast %18 : vector<128x1xf32> to vector<128x256xf32>
    %20 = arith.subf %16, %19 : vector<128x256xf32>
    %21 = math.exp %20 : vector<128x256xf32>
    %22 = arith.mulf %21, %1 : vector<128x256xf32>
    %cst_11 = arith.constant dense<0.000000e+00> : vector<128xf32>
    %23 = vector.multi_reduction <add>, %22, %cst_11 [1] : vector<128x256xf32> to vector<128xf32>
    %24 = vector.shape_cast %23 : vector<128xf32> to vector<128x1xf32>
    %cst_12 = arith.constant 1.000000e-30 : f32
    %25 = vector.broadcast %cst_12 : f32 to vector<128x1xf32>
    %26 = arith.maximumf %24, %25 : vector<128x1xf32>
    %27 = tpu.reciprocal %26 {approx = true} : vector<128x1xf32> -> vector<128x1xf32>
    %28 = vector.broadcast %27 : vector<128x1xf32> to vector<128x256xf32>
    %29 = arith.mulf %22, %28 : vector<128x256xf32>
    %cst_13 = arith.constant dense<0.000000e+00> : vector<128x128xf32>
    %30 = tpu.matmul %29, %6, %cst_13 {dimension_numbers = #tpu.dot_dimension_numbers<[1], [0], [0], [1], [0, 0, 1, 1], [], []>} : vector<128x256xf32>, vector<256x128xf32>, vector<128x128xf32> -> vector<128x128xf32>
    %c0_14 = arith.constant 0 : index
    %c0_15 = arith.constant 0 : index
    %31 = vector.load %arg3[%c0_14, %c0_15] : memref<2x128xf32, #tpu.memory_space<vmem>>, vector<1x128xf32>
    %32 = vector.broadcast %31 : vector<1x128xf32> to vector<128x128xf32>
    %33 = arith.mulf %30, %32 : vector<128x128xf32>
    %34 = arith.addf %7, %33 : vector<128x128xf32>
    %c0_16 = arith.constant 0 : index
    %c1 = arith.constant 1 : index
    %35 = vector.load %arg4[%c0_16, %c1] : memref<128x2xf32, #tpu.memory_space<vmem>>, vector<128x1xf32>
    %c1_17 = arith.constant 1 : index
    %c0_18 = arith.constant 0 : index
    %36 = vector.load %arg2[%c1_17, %c0_18] : memref<2x256xf32, #tpu.memory_space<vmem>>, vector<1x256xf32>
    %37 = vector.broadcast %35 : vector<128x1xf32> to vector<128x256xf32>
    %38 = vector.broadcast %36 : vector<1x256xf32> to vector<128x256xf32>
    %39 = arith.addf %37, %38 : vector<128x256xf32>
    %cst_19 = arith.constant 0.00999999977 : f32
    %40 = vector.broadcast %cst_19 : f32 to vector<128x256xf32>
    %41 = arith.mulf %40, %39 : vector<128x256xf32>
    %42 = arith.maximumf %39, %41 : vector<128x256xf32>
    %43 = arith.addf %42, %5 : vector<128x256xf32>
    %cst_20 = arith.constant dense<0xFF800000> : vector<128xf32>
    %44 = vector.multi_reduction <maximumf>, %43, %cst_20 [1] : vector<128x256xf32> to vector<128xf32>
    %45 = vector.shape_cast %44 : vector<128xf32> to vector<128x1xf32>
    %46 = vector.broadcast %45 : vector<128x1xf32> to vector<128x256xf32>
    %47 = arith.subf %43, %46 : vector<128x256xf32>
    %48 = math.exp %47 : vector<128x256xf32>
    %49 = arith.mulf %48, %1 : vector<128x256xf32>
    %cst_21 = arith.constant dense<0.000000e+00> : vector<128xf32>
    %50 = vector.multi_reduction <add>, %49, %cst_21 [1] : vector<128x256xf32> to vector<128xf32>
    %51 = vector.shape_cast %50 : vector<128xf32> to vector<128x1xf32>
    %cst_22 = arith.constant 1.000000e-30 : f32
    %52 = vector.broadcast %cst_22 : f32 to vector<128x1xf32>
    %53 = arith.maximumf %51, %52 : vector<128x1xf32>
    %54 = tpu.reciprocal %53 {approx = true} : vector<128x1xf32> -> vector<128x1xf32>
    %55 = vector.broadcast %54 : vector<128x1xf32> to vector<128x256xf32>
    %56 = arith.mulf %49, %55 : vector<128x256xf32>
    %cst_23 = arith.constant dense<0.000000e+00> : vector<128x128xf32>
    %57 = tpu.matmul %56, %6, %cst_23 {dimension_numbers = #tpu.dot_dimension_numbers<[1], [0], [0], [1], [0, 0, 1, 1], [], []>} : vector<128x256xf32>, vector<256x128xf32>, vector<128x128xf32> -> vector<128x128xf32>
    %c1_24 = arith.constant 1 : index
    %c0_25 = arith.constant 0 : index
    %58 = vector.load %arg3[%c1_24, %c0_25] : memref<2x128xf32, #tpu.memory_space<vmem>>, vector<1x128xf32>
    %59 = vector.broadcast %58 : vector<1x128xf32> to vector<128x128xf32>
    %60 = arith.mulf %57, %59 : vector<128x128xf32>
    %61 = arith.addf %34, %60 : vector<128x128xf32>
    %c0_26 = arith.constant 0 : index
    %c0_27 = arith.constant 0 : index
    %62 = vector.load %arg6[%c0_26, %c0_27] : memref<128x128xf32, #tpu.memory_space<vmem>>, vector<128x128xf32>
    tpu.vector_store %arg6[%c0_26, %c0_27], %61 {strides = array<i32>} : memref<128x128xf32, #tpu.memory_space<vmem>>, vector<128x128xf32>,
    return
  }
  func.func @transform_0(%arg0: i32) -> (i32, i32) {
    %c0_i32 = arith.constant 0 : i32
    %c0_i32_0 = arith.constant 0 : i32
    %c0_i32_1 = arith.constant 0 : i32
    return %c0_i32, %c0_i32_0 : i32, i32
  }
  func.func @transform_1(%arg0: i32) -> (i32, i32) {
    %c0_i32 = arith.constant 0 : i32
    %c0_i32_0 = arith.constant 0 : i32
    %c0_i32_1 = arith.constant 0 : i32
    return %c0_i32, %c0_i32_0 : i32, i32
  }
  func.func @transform_2(%arg0: i32) -> (i32, i32) {
    %c0_i32 = arith.constant 0 : i32
    %c0_i32_0 = arith.constant 0 : i32
    %c0_i32_1 = arith.constant 0 : i32
    return %c0_i32, %c0_i32_0 : i32, i32
  }
  func.func @transform_3(%arg0: i32) -> (i32, i32) {
    %c0_i32 = arith.constant 0 : i32
    %c0_i32_0 = arith.constant 0 : i32
    return %arg0, %c0_i32 : i32, i32
  }
  func.func @transform_4(%arg0: i32) -> (i32, i32) {
    %c0_i32 = arith.constant 0 : i32
    %c0_i32_0 = arith.constant 0 : i32
    return %arg0, %c0_i32 : i32, i32
  }
  func.func @transform_5(%arg0: i32) -> (i32, i32) {
    %c0_i32 = arith.constant 0 : i32
    %c0_i32_0 = arith.constant 0 : i32
    return %arg0, %c0_i32 : i32, i32
  }
}

module attributes {stable_mosaic.version = 11 : i64} {
  func.func @gat_softmax_agg_kernel(%arg0: i32, %arg1: memref<256x128xf32, #tpu.memory_space<vmem>>, %arg2: memref<2x256xf32, #tpu.memory_space<vmem>>, %arg3: memref<2x128xf32, #tpu.memory_space<vmem>>, %arg4: memref<128x2xf32, #tpu.memory_space<vmem>>, %arg5: memref<128x256xi8, #tpu.memory_space<vmem>>, %arg6: memref<128x128xf32, #tpu.memory_space<vmem>>) attributes {dimension_semantics = [#tpu.dimension_semantics<parallel>], iteration_bounds = array<i64: 2>, scalar_prefetch = 0 : i64, scratch_operands = 0 : i64, tpu.core_type = #tpu.core_type<tc>, window_params = [{pipeline_mode = #tpu.pipeline_mode<synchronous>, transform_indices = @transform_0, window_bounds = array<i64: 256, 128>}, {pipeline_mode = #tpu.pipeline_mode<synchronous>, transform_indices = @transform_1, window_bounds = array<i64: 2, 256>}, {pipeline_mode = #tpu.pipeline_mode<synchronous>, transform_indices = @transform_2, window_bounds = array<i64: 2, 128>}, {transform_indices = @transform_3, window_bounds = array<i64: 128, 2>}, {transform_indices = @transform_4, window_bounds = array<i64: 128, 256>}, {transform_indices = @transform_5, window_bounds = array<i64: 128, 128>}]} {
    %c0 = arith.constant 0 : index
    %c0_0 = arith.constant 0 : index
    %0 = vector.load %arg5[%c0, %c0_0] : memref<128x256xi8, #tpu.memory_space<vmem>>, vector<128x256xi8>
    %1 = arith.sitofp %0 : vector<128x256xi8> to vector<128x256xf32>
    %cst = arith.constant 1.000000e+00 : f32
    %2 = vector.broadcast %cst : f32 to vector<128x256xf32>
    %3 = arith.subf %1, %2 : vector<128x256xf32>
    %cst_1 = arith.constant 1.000000e+30 : f32
    %4 = vector.broadcast %cst_1 : f32 to vector<128x256xf32>
    %5 = arith.mulf %3, %4 : vector<128x256xf32>
    %c0_2 = arith.constant 0 : index
    %c0_3 = arith.constant 0 : index
    %6 = vector.load %arg1[%c0_2, %c0_3] : memref<256x128xf32, #tpu.memory_space<vmem>>, vector<256x128xf32>
    %cst_4 = arith.constant 0.000000e+00 : f32
    %7 = vector.broadcast %cst_4 : f32 to vector<128x128xf32>
    %c0_5 = arith.constant 0 : index
    %c0_6 = arith.constant 0 : index
    %8 = vector.load %arg4[%c0_5, %c0_6] : memref<128x2xf32, #tpu.memory_space<vmem>>, vector<128x1xf32>
    %c0_7 = arith.constant 0 : index
    %c0_8 = arith.constant 0 : index
    %9 = vector.load %arg2[%c0_7, %c0_8] : memref<2x256xf32, #tpu.memory_space<vmem>>, vector<1x256xf32>
    %10 = vector.broadcast %8 : vector<128x1xf32> to vector<128x256xf32>
    %11 = vector.broadcast %9 : vector<1x256xf32> to vector<128x256xf32>
    %12 = arith.addf %10, %11 : vector<128x256xf32>
    %cst_9 = arith.constant 0.00999999977 : f32
    %13 = vector.broadcast %cst_9 : f32 to vector<128x256xf32>
    %14 = arith.mulf %13, %12 : vector<128x256xf32>
    %15 = arith.maximumf %12, %14 : vector<128x256xf32>
    %16 = arith.addf %15, %5 : vector<128x256xf32>
    %cst_10 = arith.constant dense<0xFF800000> : vector<128xf32>
    %17 = vector.multi_reduction <maximumf>, %16, %cst_10 [1] : vector<128x256xf32> to vector<128xf32>
    %18 = vector.shape_cast %17 : vector<128xf32> to vector<128x1xf32>
    %19 = vector.broadcast %18 : vector<128x1xf32> to vector<128x256xf32>
    %20 = arith.subf %16, %19 : vector<128x256xf32>
    %21 = math.exp %20 : vector<128x256xf32>
    %22 = arith.mulf %21, %1 : vector<128x256xf32>
    %cst_11 = arith.constant dense<0.000000e+00> : vector<128xf32>
    %23 = vector.multi_reduction <add>, %22, %cst_11 [1] : vector<128x256xf32> to vector<128xf32>
    %24 = vector.shape_cast %23 : vector<128xf32> to vector<128x1xf32>
    %cst_12 = arith.constant 1.000000e-30 : f32
    %25 = vector.broadcast %cst_12 : f32 to vector<128x1xf32>
    %26 = arith.maximumf %24, %25 : vector<128x1xf32>
    %27 = tpu.reciprocal %26 {approx = true} : vector<128x1xf32> -> vector<128x1xf32>
    %28 = vector.broadcast %27 : vector<128x1xf32> to vector<128x256xf32>
    %29 = arith.mulf %22, %28 : vector<128x256xf32>
    %cst_13 = arith.constant dense<0.000000e+00> : vector<128x128xf32>
    %30 = tpu.matmul %29, %6, %cst_13 {dimension_numbers = #tpu.dot_dimension_numbers<[1], [0], [0], [1], [0, 0, 1, 1], [], []>} : vector<128x256xf32>, vector<256x128xf32>, vector<128x128xf32> -> vector<128x128xf32>
    %c0_14 = arith.constant 0 : index
    %c0_15 = arith.constant 0 : index
    %31 = vector.load %arg3[%c0_14, %c0_15] : memref<2x128xf32, #tpu.memory_space<vmem>>, vector<1x128xf32>
    %32 = vector.broadcast %31 : vector<1x128xf32> to vector<128x128xf32>
    %33 = arith.mulf %30, %32 : vector<128x128xf32>
    %34 = arith.addf %7, %33 : vector<128x128xf32>
    %c0_16 = arith.constant 0 : index
    %c1 = arith.constant 1 : index
    %35 = vector.load %arg4[%c0_16, %c1] : memref<128x2xf32, #tpu.memory_space<vmem>>, vector<128x1xf32>
    %c1_17 = arith.constant 1 : index
    %c0_18 = arith.constant 0 : index
    %36 = vector.load %arg2[%c1_17, %c0_18] : memref<2x256xf32, #tpu.memory_space<vmem>>, vector<1x256xf32>
    %37 = vector.broadcast %35 : vector<128x1xf32> to vector<128x256xf32>
    %38 = vector.broadcast %36 : vector<1x256xf32> to vector<128x256xf32>
    %39 = arith.addf %37, %38 : vector<128x256xf32>
    %cst_19 = arith.constant 0.00999999977 : f32
    %40 = vector.broadcast %cst_19 : f32 to vector<128x256xf32>
    %41 = arith.mulf %40, %39 : vector<128x256xf32>
    %42 = arith.maximumf %39, %41 : vector<128x256xf32>
    %43 = arith.addf %42, %5 : vector<128x256xf32>
    %cst_20 = arith.constant dense<0xFF800000> : vector<128xf32>
    %44 = vector.multi_reduction <maximumf>, %43, %cst_20 [1] : vector<128x256xf32> to vector<128xf32>
    %45 = vector.shape_cast %44 : vector<128xf32> to vector<128x1xf32>
    %46 = vector.broadcast %45 : vector<128x1xf32> to vector<128x256xf32>
    %47 = arith.subf %43, %46 : vector<128x256xf32>
    %48 = math.exp %47 : vector<128x256xf32>
    %49 = arith.mulf %48, %1 : vector<128x256xf32>
    %cst_21 = arith.constant dense<0.000000e+00> : vector<128xf32>
    %50 = vector.multi_reduction <add>, %49, %cst_21 [1] : vector<128x256xf32> to vector<128xf32>
    %51 = vector.shape_cast %50 : vector<128xf32> to vector<128x1xf32>
    %cst_22 = arith.constant 1.000000e-30 : f32
    %52 = vector.broadcast %cst_22 : f32 to vector<128x1xf32>
    %53 = arith.maximumf %51, %52 : vector<128x1xf32>
    %54 = tpu.reciprocal %53 {approx = true} : vector<128x1xf32> -> vector<128x1xf32>
    %55 = vector.broadcast %54 : vector<128x1xf32> to vector<128x256xf32>
    %56 = arith.mulf %49, %55 : vector<128x256xf32>
    %cst_23 = arith.constant dense<0.000000e+00> : vector<128x128xf32>
    %57 = tpu.matmul %56, %6, %cst_23 {dimension_numbers = #tpu.dot_dimension_numbers<[1], [0], [0], [1], [0, 0, 1, 1], [], []>} : vector<128x256xf32>, vector<256x128xf32>, vector<128x128xf32> -> vector<128x128xf32>
    %c1_24 = arith.constant 1 : index
    %c0_25 = arith.constant 0 : index
    %58 = vector.load %arg3[%c1_24, %c0_25] : memref<2x128xf32, #tpu.memory_space<vmem>>, vector<1x128xf32>
    %59 = vector.broadcast %58 : vector<1x128xf32> to vector<128x128xf32>
    %60 = arith.mulf %57, %59 : vector<128x128xf32>
    %61 = arith.addf %34, %60 : vector<128x128xf32>
    %c0_26 = arith.constant 0 : index
    %c0_27 = arith.constant 0 : index
    %62 = vector.load %arg6[%c0_26, %c0_27] : memref<128x128xf32, #tpu.memory_space<vmem>>, vector<128x128xf32>
    tpu.vector_store %arg6[%c0_26, %c0_27], %61 {strides = array<i32>} : memref<128x128xf32, #tpu.memory_space<vmem>>, vector<128x128xf32>,
    return
  }
  func.func @transform_0(%arg0: i32) -> (i32, i32) {
    %c0_i32 = arith.constant 0 : i32
    %c0_i32_0 = arith.constant 0 : i32
    %c0_i32_1 = arith.constant 0 : i32
    return %c0_i32, %c0_i32_0 : i32, i32
  }
  func.func @transform_1(%arg0: i32) -> (i32, i32) {
    %c0_i32 = arith.constant 0 : i32
    %c0_i32_0 = arith.constant 0 : i32
    %c0_i32_1 = arith.constant 0 : i32
    return %c0_i32, %c0_i32_0 : i32, i32
  }
  func.func @transform_2(%arg0: i32) -> (i32, i32) {
    %c0_i32 = arith.constant 0 : i32
    %c0_i32_0 = arith.constant 0 : i32
    %c0_i32_1 = arith.constant 0 : i32
    return %c0_i32, %c0_i32_0 : i32, i32
  }
  func.func @transform_3(%arg0: i32) -> (i32, i32) {
    %c0_i32 = arith.constant 0 : i32
    %c0_i32_0 = arith.constant 0 : i32
    return %arg0, %c0_i32 : i32, i32
  }
  func.func @transform_4(%arg0: i32) -> (i32, i32) {
    %c0_i32 = arith.constant 0 : i32
    %c0_i32_0 = arith.constant 0 : i32
    return %arg0, %c0_i32 : i32, i32
  }
  func.func @transform_5(%arg0: i32) -> (i32, i32) {
    %c0_i32 = arith.constant 0 : i32
    %c0_i32_0 = arith.constant 0 : i32
    return %arg0, %c0_i32 : i32, i32
  }
}

</mosaic_0001>

<bundles_post_ra>
// kernel: tpu_custom_call.1
= control target key start
LH: loop header
LB: loop body
LE: loop exit
PB: predicated region body
PF: predicated region fallthrough
CT: control target
= control target key end

     0   :  { %10 = vsyncpa [#allocation3], 0  ;;  %s3947_s0 = inlined_call_operand.vmem [shape: f32[256,128], index: 0, kind: input, shape index: {}]   ;;  %s3948_s1 = inlined_call_operand.vmem [shape: f32[2,256], index: 1, kind: input, shape index: {}]   ;;  %s3949_s2 = inlined_call_operand.vmem [shape: f32[2,128], index: 2, kind: input, shape index: {}]   ;;  %s3950_s3 = inlined_call_operand.vmem [shape: f32[256,2], index: 3, kind: input, shape index: {}]   ;;  %s3951_s4 = inlined_call_operand.hbm [shape: s8[256,256], index: 4, kind: input, shape index: {}]   ;;  %s3952_s5 = inlined_call_operand.hbm [shape: f32[256,128], index: 5, kind: output, shape index: {}]  }
   0x1   :  { %12 = vsyncpa [#allocation3 + $0x1], 0 }
   0x2   :  { %13 = vsyncpa [#allocation4], 0 }
   0x3   :  { %15 = vsyncpa [#allocation4 + $0x1], 0  ;;  %s2596_s18 = smov 0   ;;  %s2598_s19 = smov 0  }
   0x4   :  { %s2600_s20 = smov 0   ;;  %s2602_s21 = smov 0  }
   0x5 LB: > { %s2617_s22 = sadd.s32 4294967295, %s2556_s21   ;;  %s1932_s23 = sadd.s32 4294967294, %s2556_s21   ;;  %s2556_s21 = sphi %s2602_s21, %s4214_s21   ;;  %s2552_s20 = sphi %s2600_s20, %s4213_s20   ;;  %s2548_s19 = sphi %s2598_s19, %s4212_s19   ;;  %s2544_s18 = sphi %s2596_s18, %s4211_s18  }
   0x6   : > { %s2621_s24 = sadd.s32 1, %s2556_s21   ;;  %s117_s25 = sadd.s32 1, %s2552_s20 }
   0x7   : > { %s114_s26 = ssub.s32 %s2556_s21, %s2621_s24  ;;  %p124_p0 = scmp.ne.s32.totalorder %s2552_s20, %s2548_s19 }
   0x8   : > { %p115_p1 = scmp.eq.s32.totalorder %s114_s26, 0  ;;  %p125_p2 = scmp.eq.s32.totalorder %s2556_s21, 0 }
   0x9   : > { %p130_p3 = scmp.ne.s32.totalorder %s2548_s19, %s2544_s18  ;;  %p131_p4 = scmp.eq.s32.totalorder %s2617_s22, 0 }
   0xa   : > { %s2633_s27 = scalar_select %p115_p1, %s2552_s20, %s117_s25  }
   0xb   : > { %p2635_p5 = por %p125_p2, %p124_p0  ;;  %p2639_p6 = por %p131_p4, %p130_p3 }
   0xc   : > { %p154_p7 = scmp.eq.s32.totalorder %s2617_s22, 1  ;;  %p160_p8 = scmp.eq.s32.totalorder %s1932_s23, 1 }
   0xd   : > { %p2223_p10 = scmp.lt.s32.totalorder %s2556_s21, 2  ;;  %s198_s7 = sand.u32 1, %s2552_s20  }
   0xe   : > { %p2646_p11 = por %p154_p7, %p124_p0  ;;  %p2650_p12 = por %p160_p8, %p130_p3 }
   0xf   : > { %s1985_s8 = sshll.u32 %s2556_s21, 10  ;;  %s1935_s9 = sshll.u32 %s198_s7, 6 }
  0x10   : > { %s4060_s30 = scalar_select %p2646_p11, 1, 0 }
  0x11   : > { %s4061_s6 = scalar_select %p2650_p12, 1, 0 }
  0x12   : > { %s2659_s12 = scalar_lea.hbm %s3951_s4, %s1985_s8  ;;  %s202_s13 = scalar_lea.vmem [#allocation2], %s1935_s9 }
  0x13   : > { %s210_s14 = sshll.u32 %s202_s13, 4  ;;  %p2663_p13 = pnand %p2223_p10, %p2635_p5  ;;  %s2667_s14 = int_to_ptr.vmem [resolvable:$true] %s210_s14 }
  0x14   : > { %s2669_s16 = scalar_lea.sflag [#allocation3], %s198_s7  ;;  %s2460_s17 = scalar_lea.hbm %s2659_s12, 1024 }
  0x15   : > { %p2461_p0 = scmp.ne.s32.totalorder %s2659_s12, %s2460_s17  ;;  %p2462_p1 = pneg %p2663_p13 }
  0x16   : > { %s2465_s26 = scalar_lea.hbm %s3951_s4, 2048  ;;  %p2466_p4 = scmp.lt.u32.totalorder %s2659_s12, %s3951_s4 }
  0x17   : > { %p2463_p2 = pnand %p2462_p1, %p2461_p0  ;;  %p2467_p5 = scmp.lt.u32.totalorder %s2465_s26, %s2460_s17 }
  0x18   : > { %p2469_p8 = scmp.lt.u32.totalorder %s2460_s17, %s2659_s12 }
  0x19   : > { %p2464_p3 = pneg %p2463_p2  ;;  %p2468_p7 = por %p2467_p5, %p2466_p4 }
  0x1b   : > { %p2470_p10 = por %p2469_p8, %p2468_p7 }
  0x1d   : > { %p2471_p9 = pnand %p2470_p10, %p2464_p3 }
  0x1f   : > { %2474 = shalt.err (!%p2471_p9)
}
  0x20   : > { %s2475_s7 = scalar_lea.vmem %s2667_s14, 1024  ;;  %s2558_s9 = smov [#allocation2]  }
  0x21   : > { %p2476_p0 = scmp.ne.s32.totalorder %s2667_s14, %s2475_s7  ;;  %s2480_s10 = sshll.u32 %s2558_s9, 4  ;;  %s2481_s10 = int_to_ptr.vmem [resolvable:$false] %s2480_s10 }
  0x22   : > { %s2482_s11 = scalar_lea.vmem %s2481_s10, 2048  ;;  %p2483_p11 = scmp.lt.s32.totalorder %s2667_s14, %s2481_s10 }
  0x23   : > { %p2478_p2 = pnand %p2476_p0, %p2462_p1  ;;  %p2484_p4 = scmp.lt.s32.totalorder %s2482_s11, %s2475_s7 }
  0x25   : > { %p2479_p12 = pneg %p2478_p2  ;;  %p2485_p5 = por %p2484_p4, %p2483_p11 }
  0x27   : > { %p2486_p7 = pnand %p2485_p5, %p2479_p12 }
  0x29   : > { %2489 = shalt.err (!%p2486_p7)
}
  0x2a   : > { %s2559_s13 = smov 256   ;;  %s2560_s17 = smov 16  }
  0x2b   : > { %2218 = dma.hbm_to_vmem [thread:$0]  (!%p2663_p13), %s2659_s12, 1024, %s2667_s14, %s2669_s16, %s2559_s13, %s2559_s13, %s2560_s17  }
  0x2c   : > { %p1939_p9 = scmp.ge.s32.totalorder %s2556_s21, 1  ;;  %p218_p1 = scmp.lt.s32.totalorder %s2556_s21, 3 }
  0x2e   : > { %p219_p3 = pnand %p1939_p9, %p218_p1 }
  0x30   : > { %222 = sbr.rel (%p219_p3) target bundleno = 837 (0x345), region = 40 }
  0x37   : > { %s2700_s23 = sand.u32 1, %s2548_s19  }
  0x38   : > { %s1940_s25 = sshll.u32 %s2700_s23, 6  ;;  %s225_s26 = scalar_lea.sflag [#allocation3], %s2700_s23 }
  0x39   : > { %s2704_s28 = scalar_lea.vmem [#allocation2], %s1940_s25 }
  0x3a   : > { %2535 = dma.done.wait (%p2639_p6), %s225_s26, 1024  }
  0x3b   : > { %2537 = vsyncadd (%p2639_p6), %s225_s26, 4294966272  ;;  %s1942_s12 = sshll.u32 %s2617_s22, 4  ;;  %v2561_v0 = vmov 0   ;;  %v2562_v3 = vmov 1   ;;  %v268_v18 = vld [vmem:[%s2704_s28] sm:$0xff]  ;;  %v534_v19 = vlaneseq  ;;  %v269_v21 = vld [vmem:[%s2704_s28 + $0x8] sm:$0xff] }
  0x3c   : > { %2265 = vset.pattern.permute.xlu1 %v2561_v0  ;;  %2263 = vset.pattern.permute.xlu0 %v2561_v0  ;;  %p261_p11 = scmp.lt.s32.totalorder %s1942_s12, 31  ;;  %v276_v20 = vunpack.c.0.s8 %v268_v18  ;;  %v278_v22 = vunpack.c.1.s8 %v268_v18  ;;  %v270_v24 = vld [vmem:[%s2704_s28 + $0x10] sm:$0xff]  ;;  %v277_v25 = vunpack.c.0.s8 %v269_v21  ;;  %v279_v27 = vunpack.c.1.s8 %v269_v21  ;;  %v271_v29 = vld [vmem:[%s2704_s28 + $0x18] sm:$0xff]  ;;  %v2746_v37 = vld [vmem:[%s3948_s1] ss:$2 sm:$0x3] }
  0x3d   : > { %v2734_v23 = vshrl.u32 %v534_v19, 7  ;;  %v280_v28 = vunpack.c.2.s8 %v268_v18  ;;  %v281_v30 = vunpack.c.2.s8 %v269_v21  ;;  %v282_v32 = vunpack.c.3.s8 %v268_v18  ;;  %v272_v62 = vld [vmem:[%s2704_s28 + $0x20] sm:$0xff]  ;;  %s1941_s15 = sshll.u32 %s2700_s23, 7  ;;  %s1834_s11 = scalar_lea.sflag [#allocation4], %s2700_s23 }
  0x3e   : > { %s4216_s12 = smov (!%p261_p11, %s1942_s12), 31  ;;  %v2737_v26 = vcvt.s32.f32 %v276_v20  ;;  %v2740_v31 = vcvt.s32.f32 %v278_v22  ;;  %v283_v33 = vunpack.c.3.s8 %v269_v21  ;;  %v284_v34 = vunpack.c.0.s8 %v270_v24  ;;  %s3848_s16 = scalar_lea.vmem [#allocation5], %s1941_s15 }
  0x3f   : > { %s1943_s14 = sshll.u32 %s4216_s12, 3  ;;  %v3954_v35 = vsub.s32 0, %v2734_v23  ;;  %v285_v36 = vunpack.c.0.s8 %v271_v29  ;;  %v2748_v38 = vcvt.s32.f32 %v277_v25  ;;  %v2751_v40 = vcvt.s32.f32 %v279_v27  ;;  %v274_v25 = vld [vmem:[%s2704_s28 + $0x30] sm:$0xff]  ;;  %s1847_s29 = sshll.u32 %s3848_s16, 4  ;;  %s3902_s29 = int_to_ptr.vmem [resolvable:$true] %s1847_s29 }
  0x40   : > { %s2714_s8 = scalar_lea.vmem %s3950_s3, %s1943_s14  ;;  %4063 = vst [vmem:[#allocation8_spill] sm:$0xff] %v2737_v26  ;;  %4064 = vst [vmem:[#allocation9_spill] sm:$0xff] %v2740_v31  ;;  %v1944_v39 = vadd.f32 -1.0, %v2737_v26  ;;  %v2753_v41 = vcvt.s32.f32 %v280_v28  ;;  %v2756_v43 = vcvt.s32.f32 %v281_v30  ;;  %v286_v44 = vunpack.c.1.s8 %v270_v24  ;;  %s2490_s13 = scalar_lea.vmem %s3902_s29, 2048 }
  0x41   : > { %v437_v1 = vld [vmem:[%s2714_s8 + $0x8] sm:$0xff]  ;;  %v436_v2 = vld [vmem:[%s2714_s8] sm:$0xff]  ;;  %v438_v4 = vld [vmem:[%s2714_s8 + $0x10] sm:$0xff]  ;;  %4065 = vst [vmem:[#allocation10_spill] sm:$0xff] %v2748_v38  ;;  %v287_v45 = vunpack.c.1.s8 %v271_v29  ;;  %v1946_v46 = vadd.f32 -1.0, %v2740_v31  ;;  %v2759_v47 = vcvt.s32.f32 %v282_v32  ;;  %v2761_v48 = vcvt.s32.f32 %v283_v33  ;;  %p2491_p6 = scmp.ne.s32.totalorder %s3902_s29, %s2490_s13  ;;  %p4208_p12 = scmp.ne.s32.totalorder %s4060_s30, 0 }
  0x42   : > { %460 = vperm.xlu1 %2265, %v437_v1   ;;  %455 = vperm.xlu0 %2263, %v436_v2   ;;  %v439_v5 = vld [vmem:[%s2714_s8 + $0x18] sm:$0xff]  ;;  %v440_v6 = vld [vmem:[%s2714_s8 + $0x20] sm:$0xff]  ;;  %v441_v7 = vld [vmem:[%s2714_s8 + $0x28] sm:$0xff]  ;;  %4066 = vst [vmem:[#allocation11_spill] sm:$0xff] %v2751_v40  ;;  %v2763_v49 = vcvt.s32.f32 %v284_v34  ;;  %v2768_v50 = vrot.slane %v2746_v37, %v3954_v35  ;;  %v2770_v51 = vcvt.s32.f32 %v285_v36  ;;  %v288_v52 = vunpack.c.2.s8 %v270_v24 }
  0x43   : > { %v442_v8 = vld [vmem:[%s2714_s8 + $0x30] sm:$0xff]  ;;  %v443_v9 = vld [vmem:[%s2714_s8 + $0x38] sm:$0xff]  ;;  %v444_v10 = vld [vmem:[%s2714_s8 + $0x40] sm:$0xff]  ;;  %4067 = vst [vmem:[#allocation12_spill] sm:$0xff] %v2753_v41  ;;  %v289_v53 = vunpack.c.2.s8 %v271_v29  ;;  %v1945_v54 = vadd.f32 -1.0, %v2748_v38  ;;  %v1947_v56 = vadd.f32 -1.0, %v2751_v40  ;;  %v2778_v59 = vcvt.s32.f32 %v286_v44  ;;  %p2492_p13 = pnand %p2491_p6, %p4208_p12 }
  0x44   : > { %v445_v11 = vld [vmem:[%s2714_s8 + $0x48] sm:$0xff]  ;;  %v446_v12 = vld [vmem:[%s2714_s8 + $0x50] sm:$0xff]  ;;  %v447_v13 = vld [vmem:[%s2714_s8 + $0x58] sm:$0xff]  ;;  %4068 = vst [vmem:[#allocation13_spill] sm:$0xff] %v2756_v43  ;;  %v2773_v55 = vmul.f32 1e+30, %v1944_v39  ;;  %v2780_v60 = vcvt.s32.f32 %v287_v45  ;;  %v290_v61 = vunpack.c.3.s8 %v270_v24  ;;  %v294_v28 = vunpack.c.1.s8 %v272_v62 }
  0x45   : > { %v448_v14 = vld [vmem:[%s2714_s8 + $0x60] sm:$0xff]  ;;  %v449_v15 = vld [vmem:[%s2714_s8 + $0x68] sm:$0xff]  ;;  %v450_v16 = vld [vmem:[%s2714_s8 + $0x70] sm:$0xff]  ;;  %4069 = vst [vmem:[#allocation14_spill] sm:$0xff] %v2759_v47  ;;  %v1948_v57 = vadd.f32 -1.0, %v2753_v41  ;;  %v1949_v58 = vadd.f32 -1.0, %v2756_v43  ;;  %v296_v30 = vunpack.c.2.s8 %v272_v62  ;;  %v298_v45 = vunpack.c.3.s8 %v272_v62  ;;  %p2493_p8 = pneg %p2492_p13 }
  0x46   : > { %2266 = vset.pattern.permute.xlu1 %v2562_v3  ;;  %2264 = vset.pattern.permute.xlu0 %v2562_v3  ;;  %v451_v17 = vld [vmem:[%s2714_s8 + $0x78] sm:$0xff]  ;;  %4070 = vst [vmem:[#allocation15_spill] sm:$0xff] %v2761_v48  ;;  %4071 = vst [vmem:[#allocation16_spill] sm:$0xff] %v2763_v49  ;;  %v2783_v63 = vmul.f32 1e+30, %v1946_v46  ;;  %v1953_v3 = vadd.f32 -1.0, %v2770_v51 }
  0x47   : > { %1149 = vperm.xlu1 %2266, %v437_v1   ;;  %1145 = vperm.xlu0 %2264, %v436_v2   ;;  %4072 = vst [vmem:[#allocation17_spill] sm:$0xff] %v2770_v51  ;;  %4073 = vst [vmem:[#allocation18_spill] sm:$0xff] %v2778_v59  ;;  %v1951_v1 = vadd.f32 -1.0, %v2761_v48  ;;  %v1952_v2 = vadd.f32 -1.0, %v2763_v49  ;;  %v2822_v32 = vld [vmem:[%s2704_s28 + $0x38] sm:$0xff]  ;;  %s1986_s8 = sshll.u32 %s2617_s22, 11 }
  0x48   : > { %4074 = vst [vmem:[#allocation19_spill] sm:$0xff] %v2780_v60  ;;  %v2812_v20 = vmul.f32 1e+30, %v1953_v3  ;;  %v302_v3 = vunpack.c.1.s8 %v274_v25  ;;  %s3900_s10 = scalar_lea.hbm %s3952_s5, %s1986_s8  ;;  %s2563_s22 = smov [#allocation5]  }
  0x49   : > { %v2810_v18 = vmul.f32 1e+30, %v1952_v2  ;;  %s2494_s17 = sshll.u32 %s2563_s22, 4  ;;  %s2495_s17 = int_to_ptr.vmem [resolvable:$false] %s2494_s17 }
  0x4a   : > { %s2496_s25 = scalar_lea.vmem %s2495_s17, 4096  ;;  %p2497_p10 = scmp.lt.s32.totalorder %s3902_s29, %s2495_s17 }
  0x4b   : > { %2267 = vset.pattern.permute.xlu1 %v2561_v0  ;;  %1153 = vperm.xlu0 %2264, %v438_v4   ;;  %v1950_v0 = vadd.f32 -1.0, %v2759_v47  ;;  %p2498_p0 = scmp.lt.s32.totalorder %s2496_s25, %s2490_s13 }
  0x4c   : > { %465 = vperm.xlu1 %2267, %v438_v4   ;;  %v2789_v4 = vcvt.s32.f32 %v288_v52  ;;  %v300_v52 = vunpack.c.0.s8 %v274_v25 }
  0x4d   : > { %p2499_p2 = por %p2498_p0, %p2497_p10 }
  0x4e   : > { %4075 = vst [vmem:[#allocation20_spill] sm:$0xff] %v2789_v4  ;;  %v1956_v21 = vadd.f32 -1.0, %v2789_v4 }
  0x4f   : > { %1157 = vperm.xlu0 %2264, %v439_v5   ;;  %p2500_p4 = pnand %p2499_p2, %p2493_p8 }
  0x50   : > { %470 = vperm.xlu1 %2267, %v439_v5   ;;  %v2791_v5 = vcvt.s32.f32 %v289_v53  ;;  %v2831_v53 = vmul.f32 1e+30, %v1956_v21 }
  0x52   : > { %4076 = vst [vmem:[#allocation21_spill] sm:$0xff] %v2791_v5  ;;  %v1957_v22 = vadd.f32 -1.0, %v2791_v5 }
  0x53   : > { %1161 = vperm.xlu0 %2264, %v440_v6  }
  0x54   : > { %475 = vperm.xlu1 %2267, %v440_v6   ;;  %v291_v6 = vunpack.c.3.s8 %v271_v29 }
  0x56   : > { %v2816_v24 = vcvt.s32.f32 %v291_v6  ;;  %v303_v6 = vunpack.c.1.s8 %v2822_v32 }
  0x57   : > { %1165 = vperm.xlu0 %2264, %v441_v7  }
  0x58   : > { %480 = vperm.xlu1 %2267, %v441_v7   ;;  %v273_v7 = vld [vmem:[%s2704_s28 + $0x28] sm:$0xff]  ;;  %4078 = vst [vmem:[#allocation23_spill] sm:$0xff] %v2816_v24 }
  0x59   : > { %v293_v19 = vunpack.c.0.s8 %v273_v7  ;;  %v295_v29 = vunpack.c.1.s8 %v273_v7  ;;  %v297_v39 = vunpack.c.2.s8 %v273_v7  ;;  %v299_v46 = vunpack.c.3.s8 %v273_v7 }
  0x5b   : > { %1169 = vperm.xlu0 %2264, %v442_v8   ;;  %v2829_v44 = vcvt.s32.f32 %v293_v19 }
  0x5c   : > { %485 = vperm.xlu1 %2267, %v442_v8   ;;  %v2794_v8 = vmul.f32 1e+30, %v1945_v54  ;;  %v2833_v54 = vmul.f32 1e+30, %v1957_v22  ;;  %v304_v22 = vunpack.c.2.s8 %v274_v25 }
  0x5d   : > { %4080 = vst [vmem:[#allocation25_spill] sm:$0xff] %v2829_v44  ;;  %v1961_v7 = vadd.f32 -1.0, %v2829_v44 }
  0x5f   : > { %1173 = vperm.xlu0 %2264, %v443_v9  }
  0x60   : > { %490 = vperm.xlu1 %2267, %v443_v9   ;;  %v2796_v9 = vmul.f32 1e+30, %v1947_v56  ;;  %v1959_v56 = vadd.f32 -1.0, %v2816_v24 }
  0x62   : > { %v2856_v19 = vmul.f32 1e+30, %v1959_v56  ;;  %v306_v56 = vunpack.c.3.s8 %v274_v25  ;;  %v307_v25 = vunpack.c.3.s8 %v2822_v32 }
  0x63   : > { %1177 = vperm.xlu0 %2264, %v444_v10  }
  0x64   : > { %495 = vperm.xlu1 %2267, %v444_v10   ;;  %v2798_v10 = vmul.f32 1e+30, %v1948_v57  ;;  %v301_v57 = vunpack.c.0.s8 %v2822_v32 }
  0x66   : > { %v2858_v21 = vcvt.s32.f32 %v301_v57  ;;  %v2871_v57 = vmul.f32 1e+30, %v1961_v7 }
  0x67   : > { %1181 = vperm.xlu0 %2264, %v445_v11  }
  0x68   : > { %500 = vperm.xlu1 %2267, %v445_v11   ;;  %v292_v11 = vunpack.c.0.s8 %v272_v62  ;;  %v2846_v62 = vcvt.s32.f32 %v297_v39  ;;  %4088 = vst [vmem:[#allocation33_spill] sm:$0xff] %v2858_v21 }
  0x6a   : > { %v2819_v27 = vcvt.s32.f32 %v292_v11  ;;  %4084 = vst [vmem:[#allocation29_spill] sm:$0xff] %v2846_v62  ;;  %v2850_v11 = vcvt.s32.f32 %v298_v45  ;;  %v1965_v45 = vadd.f32 -1.0, %v2846_v62  ;;  %v2880_v62 = vcvt.s32.f32 %v304_v22 }
  0x6b   : > { %1185 = vperm.xlu0 %2264, %v446_v12  }
  0x6c   : > { %505 = vperm.xlu1 %2267, %v446_v12   ;;  %v2800_v12 = vmul.f32 1e+30, %v1949_v58  ;;  %4079 = vst [vmem:[#allocation24_spill] sm:$0xff] %v2819_v27  ;;  %v1960_v58 = vadd.f32 -1.0, %v2819_v27  ;;  %4085 = vst [vmem:[#allocation30_spill] sm:$0xff] %v2850_v11  ;;  %v1966_v35 = vadd.f32 -1.0, %v2850_v11 }
  0x6d   : > { %4091 = vst [vmem:[#allocation36_spill] sm:$0xff] %v2880_v62 }
  0x6f   : > { %1189 = vperm.xlu0 %2264, %v447_v13  }
  0x70   : > { %510 = vperm.xlu1 %2267, %v447_v13   ;;  %v1954_v13 = vadd.f32 -1.0, %v2778_v59 }
  0x72   : > { %v2824_v33 = vmul.f32 1e+30, %v1954_v13  ;;  %v2852_v13 = vcvt.s32.f32 %v299_v46  ;;  %v2867_v46 = vcvt.s32.f32 %v302_v3 }
  0x73   : > { %1193 = vperm.xlu0 %2264, %v448_v14  }
  0x74   : > { %515 = vperm.xlu1 %2267, %v448_v14   ;;  %v1955_v14 = vadd.f32 -1.0, %v2780_v60  ;;  %4086 = vst [vmem:[#allocation31_spill] sm:$0xff] %v2852_v13  ;;  %4089 = vst [vmem:[#allocation34_spill] sm:$0xff] %v2867_v46  ;;  %v1970_v22 = vadd.f32 -1.0, %v2867_v46  ;;  %v1972_v46 = vadd.f32 -1.0, %v2880_v62 }
  0x76   : > { %v2826_v34 = vmul.f32 1e+30, %v1955_v14  ;;  %v2854_v14 = vcvt.s32.f32 %v300_v52  ;;  %v2869_v52 = vcvt.s32.f32 %v303_v6  ;;  %v4093_v6 = vsub.s32 1, %v2734_v23 }
  0x77   : > { %1197 = vperm.xlu0 %2264, %v449_v15   ;;  %v2931_v60 = vmul.f32 1e+30, %v1972_v46 }
  0x78   : > { %520 = vperm.xlu1 %2267, %v449_v15   ;;  %v2804_v15 = vcvt.s32.f32 %v290_v61  ;;  %v2838_v61 = vcvt.s32.f32 %v294_v28  ;;  %4087 = vst [vmem:[#allocation32_spill] sm:$0xff] %v2854_v14  ;;  %v305_v28 = vunpack.c.2.s8 %v2822_v32  ;;  %4090 = vst [vmem:[#allocation35_spill] sm:$0xff] %v2869_v52  ;;  %v1968_v42 = vadd.f32 -1.0, %v2854_v14 }
  0x79   : > { %v2888_v7 = vrot.slane %v2746_v37, %v4093_v6  ;;  %v4095_v32 = vsub.s32 0, %v2734_v23  ;;  %v2906_v37 = vmul.f32 1e+30, %v1966_v35 }
  0x7a   : > { %4077 = vst [vmem:[#allocation22_spill] sm:$0xff] %v2804_v15  ;;  %v1958_v36 = vadd.f32 -1.0, %v2804_v15  ;;  %4081 = vst [vmem:[#allocation26_spill] sm:$0xff] %v2838_v61  ;;  %v2882_v3 = vcvt.s32.f32 %v305_v28  ;;  %v1971_v28 = vadd.f32 -1.0, %v2869_v52 }
  0x7b   : > { %1201 = vperm.xlu0 %2264, %v450_v16  }
  0x7c   : > { %525 = vperm.xlu1 %2267, %v450_v16   ;;  %v2806_v16 = vmul.f32 1e+30, %v1950_v0  ;;  %v2840_v0 = vcvt.s32.f32 %v295_v29  ;;  %v2844_v2 = vmul.f32 1e+30, %v1958_v36  ;;  %v2861_v29 = vmul.f32 1e+30, %v1960_v58 }
  0x7d   : > { %v1967_v58 = vadd.f32 -1.0, %v2852_v13  ;;  %4092 = vst [vmem:[#allocation37_spill] sm:$0xff] %v2882_v3  ;;  %v1973_v52 = vadd.f32 -1.0, %v2882_v3  ;;  %v2928_v15 = vmul.f32 1e+30, %v1971_v28 }
  0x7e   : > { %4082 = vst [vmem:[#allocation27_spill] sm:$0xff] %v2840_v0  ;;  %v1963_v36 = vadd.f32 -1.0, %v2840_v0  ;;  %v1977_v0 = vld [vmem:[%s3948_s1 + $0x1] ss:$2 sm:$0x3] }
  0x7f   : > { %1205 = vperm.xlu0 %2264, %v451_v17   ;;  %v2904_v44 = vrot.slane %v1977_v0, %v4095_v32 }
  0x80   : > { %530 = vperm.xlu1 %2267, %v451_v17   ;;  %v2808_v17 = vmul.f32 1e+30, %v1951_v1  ;;  %v2842_v1 = vcvt.s32.f32 %v296_v30  ;;  %v1962_v30 = vadd.f32 -1.0, %v2838_v61  ;;  %v2892_v14 = vmul.f32 1e+30, %v1963_v36 }
  0x81   : > { %v2896_v61 = vmul.f32 1e+30, %v1965_v45  ;;  %v2910_v36 = vmul.f32 1e+30, %v1968_v42  ;;  %v4097_v42 = vsub.s32 1, %v2734_v23 }
  0x82   : > { %4083 = vst [vmem:[#allocation28_spill] sm:$0xff] %v2842_v1  ;;  %v1964_v39 = vadd.f32 -1.0, %v2842_v1  ;;  %v1969_v1 = vadd.f32 -1.0, %v2858_v21  ;;  %v2890_v13 = vmul.f32 1e+30, %v1962_v30  ;;  %v2900_v21 = vcvt.s32.f32 %v306_v56 }
  0x83   : > { %v2908_v30 = vmul.f32 1e+30, %v1967_v58  ;;  %v2916_v56 = vcvt.s32.f32 %v307_v25  ;;  %v2924_v24 = vrot.slane %v1977_v0, %v4097_v42 }
  0x84   : > { %v2894_v11 = vmul.f32 1e+30, %v1964_v39  ;;  %4094 = vst [vmem:[#allocation38_spill] sm:$0xff] %v2900_v21  ;;  %v2912_v45 = vmul.f32 1e+30, %v1969_v1  ;;  %v1974_v3 = vadd.f32 -1.0, %v2900_v21 }
  0x85   : > { %4096 = vst [vmem:[#allocation39_spill] sm:$0xff] %v2916_v56  ;;  %v2926_v1 = vmul.f32 1e+30, %v1970_v22  ;;  %v2936_v22 = vadd.f32 -1.0, %v2916_v56 }
  0xc1   : > { %v456_v39 = vpop.permute.xlu0 %455  ;;  %v461_v6 = vpop.permute.xlu1 %460 }
  0xc2   : > { %v544_v27 = vadd.f32 %v2768_v50, %v456_v39  ;;  %v545_v32 = vadd.f32 %v2888_v7, %v456_v39  ;;  %v546_v35 = vadd.f32 %v2768_v50, %v461_v6  ;;  %v547_v58 = vadd.f32 %v2888_v7, %v461_v6 }
  0xc3   : > { %v2933_v39 = vmul.f32 1e+30, %v1973_v52 }
  0xc4   : > { %v576_v25 = vmul.f32 0.01, %v544_v27  ;;  %v577_v62 = vmul.f32 0.01, %v545_v32  ;;  %v578_v5 = vmul.f32 0.01, %v546_v35 }
  0xc5   : > { %v579_v4 = vmul.f32 0.01, %v547_v58 }
  0xc6   : > { %v608_v59 = vmax.f32 %v544_v27, %v576_v25  ;;  %v609_v6 = vmax.f32 %v545_v32, %v577_v62  ;;  %v610_v51 = vmax.f32 %v546_v35, %v578_v5  ;;  %v1150_v23 = vpop.permute.xlu1 %1149  ;;  %v1146_v0 = vpop.permute.xlu0 %1145  ;;  %v2948_v5 = vmul.f32 1e+30, %v1974_v3 }
  0xc7   : > { %v611_v28 = vmax.f32 %v547_v58, %v579_v4  ;;  %v1221_v42 = vadd.f32 %v2904_v44, %v1150_v23  ;;  %v1222_v21 = vadd.f32 %v2924_v24, %v1150_v23  ;;  %v1219_v49 = vadd.f32 %v2904_v44, %v1146_v0 }
  0xc8   : > { %v1220_v46 = vadd.f32 %v2924_v24, %v1146_v0  ;;  %v2943_v52 = vadd.f32 %v608_v59, %v2773_v55  ;;  %v2946_v27 = vadd.f32 %v609_v6, %v2794_v8  ;;  %v2953_v23 = vadd.f32 %v610_v51, %v2783_v63 }
  0xc9   : > { %v1253_v62 = vmul.f32 0.01, %v1221_v42  ;;  %v1254_v32 = vmul.f32 0.01, %v1222_v21  ;;  %v1251_v35 = vmul.f32 0.01, %v1219_v49  ;;  %v2956_v0 = vadd.f32 %v611_v28, %v2796_v9 }
  0xca   : > { %v1252_v4 = vmul.f32 0.01, %v1220_v46  ;;  %v1154_v58 = vpop.permute.xlu0 %1153  ;;  %v672_v25 = vmax.f32 %v2943_v52, %v2946_v27  ;;  %4098 = vst [vmem:[#allocation40_spill] sm:$0xff] %v2953_v23 }
  0xcb   : > { %4099 = vst [vmem:[#allocation41_spill] sm:$0xff] %v2956_v0  ;;  %v1285_v59 = vmax.f32 %v1221_v42, %v1253_v62  ;;  %v1286_v56 = vmax.f32 %v1222_v21, %v1254_v32  ;;  %v1283_v6 = vmax.f32 %v1219_v49, %v1251_v35  ;;  %v1223_v3 = vadd.f32 %v2904_v44, %v1154_v58  ;;  %v466_v48 = vpop.permute.xlu1 %465 }
  0xcc   : > { %v1284_v47 = vmax.f32 %v1220_v46, %v1252_v4  ;;  %v1224_v43 = vadd.f32 %v2924_v24, %v1154_v58  ;;  %v548_v41 = vadd.f32 %v2768_v50, %v466_v48  ;;  %v549_v40 = vadd.f32 %v2888_v7, %v466_v48  ;;  %673 = vmax.xlane.f32.xlu1 %v672_v25 }
  0xcd   : > { %v1255_v31 = vmul.f32 0.01, %v1223_v3  ;;  %v2963_v51 = vadd.f32 %v1283_v6, %v2773_v55  ;;  %v2966_v28 = vadd.f32 %v1285_v59, %v2783_v63  ;;  %v2969_v49 = vadd.f32 %v1286_v56, %v2796_v9 }
  0xce   : > { %v1256_v21 = vmul.f32 0.01, %v1224_v43  ;;  %v580_v42 = vmul.f32 0.01, %v548_v41  ;;  %v581_v46 = vmul.f32 0.01, %v549_v40  ;;  %v1158_v62 = vpop.permute.xlu0 %1157  ;;  %v2972_v32 = vadd.f32 %v1284_v47, %v2794_v8 }
  0xcf   : > { %v1287_v35 = vmax.f32 %v1223_v3, %v1255_v31  ;;  %v1225_v48 = vadd.f32 %v2904_v44, %v1158_v62  ;;  %v1226_v4 = vadd.f32 %v2924_v24, %v1158_v62  ;;  %v471_v55 = vpop.permute.xlu1 %470  ;;  %v1350_v63 = vmax.f32 %v2966_v28, %v2969_v49 }
  0xd0   : > { %v1288_v58 = vmax.f32 %v1224_v43, %v1256_v21  ;;  %v612_v25 = vmax.f32 %v548_v41, %v580_v42  ;;  %v613_v9 = vmax.f32 %v549_v40, %v581_v46  ;;  %v550_v56 = vadd.f32 %v2768_v50, %v471_v55 }
  0xd1   : > { %v1257_v59 = vmul.f32 0.01, %v1225_v48  ;;  %v1258_v6 = vmul.f32 0.01, %v1226_v4  ;;  %v551_v38 = vadd.f32 %v2888_v7, %v471_v55  ;;  %v1347_v31 = vmax.f32 %v2963_v51, %v2972_v32  ;;  %1351 = vmax.xlane.f32.xlu1 %v1350_v63 }
  0xd2   : > { %v582_v47 = vmul.f32 0.01, %v550_v56  ;;  %v1162_v8 = vpop.permute.xlu0 %1161  ;;  %v675_v3 = vmax.f32 %v2953_v23, %v2956_v0  ;;  %v2985_v62 = vadd.f32 %v1287_v35, %v2798_v10  ;;  %v2988_v40 = vadd.f32 %v1288_v58, %v2800_v12 }
  0xd3   : > { %v1289_v41 = vmax.f32 %v1225_v48, %v1257_v59  ;;  %v1290_v43 = vmax.f32 %v1226_v4, %v1258_v6  ;;  %v583_v21 = vmul.f32 0.01, %v551_v38  ;;  %1348 = vmax.xlane.f32.xlu0 %v1347_v31  ;;  %v1227_v42 = vadd.f32 %v2904_v44, %v1162_v8  ;;  %v476_v46 = vpop.permute.xlu1 %475 }
  0xd4   : > { %4100 = vst [vmem:[#allocation42_spill] sm:$0xff] %v2985_v62  ;;  %4101 = vst [vmem:[#allocation43_spill] sm:$0xff] %v2988_v40  ;;  %v614_v55 = vmax.f32 %v550_v56, %v582_v47  ;;  %v1228_v63 = vadd.f32 %v2924_v24, %v1162_v8  ;;  %v2993_v26 = vadd.f32 %v2768_v50, %v476_v46 }
  0xd5   : > { %v2996_v0 = vadd.f32 %v2888_v7, %v476_v46  ;;  %v615_v35 = vmax.f32 %v551_v38, %v583_v21  ;;  %v1259_v23 = vmul.f32 0.01, %v1227_v42  ;;  %v1353_v48 = vmax.f32 %v2985_v62, %v2988_v40 }
  0xd6   : > { %v3001_v4 = vadd.f32 %v612_v25, %v2798_v10  ;;  %v1260_v58 = vmul.f32 0.01, %v1228_v63  ;;  %v584_v59 = vmul.f32 0.01, %v2993_v26  ;;  %v1166_v6 = vpop.permute.xlu0 %1165  ;;  %v3006_v31 = vadd.f32 %v613_v9, %v2800_v12 }
  0xd7   : > { %v585_v56 = vmul.f32 0.01, %v2996_v0  ;;  %v1291_v47 = vmax.f32 %v1227_v42, %v1259_v23  ;;  %676 = vmax.xlane.f32.xlu0 %v675_v3  ;;  %1354 = vmax.xlane.f32.xlu1 %v1353_v48  ;;  %v1229_v38 = vadd.f32 %v2904_v44, %v1166_v6  ;;  %v1230_v8 = vadd.f32 %v2924_v24, %v1166_v6  ;;  %v481_v21 = vpop.permute.xlu1 %480 }
  0xd8   : > { %4102 = vst [vmem:[#allocation44_spill] sm:$0xff] %v3006_v31  ;;  %v3011_v10 = vmul.f32 1e+30, %v2936_v22  ;;  %v1292_v25 = vmax.f32 %v1228_v63, %v1260_v58  ;;  %v616_v46 = vmax.f32 %v2993_v26, %v584_v59  ;;  %v3016_v62 = vadd.f32 %v2768_v50, %v481_v21 }
  0xd9   : > { %v617_v40 = vmax.f32 %v2996_v0, %v585_v56  ;;  %v1261_v12 = vmul.f32 0.01, %v1229_v38  ;;  %v1262_v23 = vmul.f32 0.01, %v1230_v8  ;;  %v3019_v9 = vadd.f32 %v2888_v7, %v481_v21 }
  0xda   : > { %v678_v3 = vmax.f32 %v3001_v4, %v3006_v31  ;;  %v3024_v42 = vmul.f32 0.01, %v3016_v62  ;;  %v3027_v22 = vadd.f32 %v1289_v41, %v2806_v16  ;;  %v3030_v26 = vadd.f32 %v1290_v43, %v2808_v17  ;;  %v1170_v0 = vpop.permute.xlu0 %1169 }
  0xdb   : > { %v3033_v63 = vadd.f32 %v614_v55, %v2806_v16  ;;  %v1293_v48 = vmax.f32 %v1229_v38, %v1261_v12  ;;  %v1294_v58 = vmax.f32 %v1230_v8, %v1262_v23  ;;  %v587_v59 = vmul.f32 0.01, %v3019_v9  ;;  %v486_v6 = vpop.permute.xlu1 %485 }
  0xdc   : > { %4103 = vst [vmem:[#allocation45_spill] sm:$0xff] %v3030_v26  ;;  %679 = vmax.xlane.f32.xlu0 %v678_v3  ;;  %v1231_v56 = vadd.f32 %v2904_v44, %v1170_v0  ;;  %v618_v21 = vmax.f32 %v3016_v62, %v3024_v42  ;;  %v1356_v41 = vmax.f32 %v3027_v22, %v3030_v26 }
  0xdd   : > { %v1232_v43 = vadd.f32 %v2924_v24, %v1170_v0  ;;  %v3043_v31 = vadd.f32 %v2768_v50, %v486_v6  ;;  %v619_v16 = vmax.f32 %v3019_v9, %v587_v59  ;;  %v3047_v38 = vadd.f32 %v2888_v7, %v486_v6 }
  0xde   : > { %v1263_v55 = vmul.f32 0.01, %v1231_v56  ;;  %v3050_v8 = vadd.f32 %v615_v35, %v2808_v17  ;;  %1357 = vmax.xlane.f32.xlu1 %v1356_v41  ;;  %v3056_v23 = vadd.f32 %v1291_v47, %v2810_v18  ;;  %v3059_v3 = vadd.f32 %v1292_v25, %v2812_v20  ;;  %v1174_v42 = vpop.permute.xlu0 %1173 }
  0xdf   : > { %v1264_v12 = vmul.f32 0.01, %v1232_v43  ;;  %v3053_v62 = vmul.f32 0.01, %v3043_v31  ;;  %v589_v0 = vmul.f32 0.01, %v3047_v38  ;;  %v1233_v17 = vadd.f32 %v2904_v44, %v1174_v42  ;;  %v491_v35 = vpop.permute.xlu1 %490 }
  0xe0   : > { %4104 = vst [vmem:[#allocation46_spill] sm:$0xff] %v3050_v8  ;;  %4105 = vst [vmem:[#allocation47_spill] sm:$0xff] %v3059_v3  ;;  %v1295_v9 = vmax.f32 %v1231_v56, %v1263_v55  ;;  %v681_v59 = vmax.f32 %v3033_v63, %v3050_v8  ;;  %v1359_v47 = vmax.f32 %v3056_v23, %v3059_v3 }
  0xe1   : > { %v1296_v6 = vmax.f32 %v1232_v43, %v1264_v12  ;;  %v620_v41 = vmax.f32 %v3043_v31, %v3053_v62  ;;  %v1234_v25 = vadd.f32 %v2924_v24, %v1174_v42  ;;  %v621_v26 = vmax.f32 %v3047_v38, %v589_v0 }
  0xe2   : > { %682 = vmax.xlane.f32.xlu0 %v681_v59  ;;  %v1265_v56 = vmul.f32 0.01, %v1233_v17  ;;  %v3072_v55 = vadd.f32 %v2768_v50, %v491_v35  ;;  %v3075_v8 = vadd.f32 %v2888_v7, %v491_v35  ;;  %1360 = vmax.xlane.f32.xlu1 %v1359_v47  ;;  %v3078_v12 = vadd.f32 %v616_v46, %v2810_v18  ;;  %v1178_v38 = vpop.permute.xlu0 %1177 }
  0xe3   : > { %v1266_v43 = vmul.f32 0.01, %v1234_v25  ;;  %v3081_v31 = vadd.f32 %v617_v40, %v2812_v20  ;;  %v3084_v62 = vadd.f32 %v1293_v48, %v2824_v33  ;;  %v3091_v35 = vadd.f32 %v1294_v58, %v2826_v34  ;;  %v496_v47 = vpop.permute.xlu1 %495 }
  0xe4   : > { %v1297_v42 = vmax.f32 %v1233_v17, %v1265_v56  ;;  %v590_v0 = vmul.f32 0.01, %v3072_v55  ;;  %v3088_v59 = vmul.f32 0.01, %v3075_v8  ;;  %v1235_v20 = vadd.f32 %v2904_v44, %v1178_v38 }
  0xe5   : > { %4106 = vst [vmem:[#allocation48_spill] sm:$0xff] %v3081_v31  ;;  %4107 = vst [vmem:[#allocation49_spill] sm:$0xff] %v3084_v62  ;;  %v1298_v3 = vmax.f32 %v1234_v25, %v1266_v43  ;;  %v684_v18 = vmax.f32 %v3078_v12, %v3081_v31  ;;  %v1236_v40 = vadd.f32 %v2924_v24, %v1178_v38 }
  0xe6   : > { %4108 = vst [vmem:[#allocation50_spill] sm:$0xff] %v3091_v35  ;;  %v622_v46 = vmax.f32 %v3072_v55, %v590_v0  ;;  %v623_v48 = vmax.f32 %v3075_v8, %v3088_v59  ;;  %v1362_v17 = vmax.f32 %v3084_v62, %v3091_v35  ;;  %v3103_v58 = vadd.f32 %v2768_v50, %v496_v47  ;;  %v1182_v38 = vpop.permute.xlu0 %1181 }
  0xe7   : > { %685 = vmax.xlane.f32.xlu0 %v684_v18  ;;  %v1267_v25 = vmul.f32 0.01, %v1235_v20  ;;  %v1268_v56 = vmul.f32 0.01, %v1236_v40  ;;  %v3106_v43 = vadd.f32 %v2888_v7, %v496_v47  ;;  %v3109_v31 = vadd.f32 %v618_v21, %v2824_v33  ;;  %v501_v18 = vpop.permute.xlu1 %500 }
  0xe8   : > { %1363 = vmax.xlane.f32.xlu1 %v1362_v17  ;;  %v3112_v55 = vmul.f32 0.01, %v3103_v58  ;;  %v3115_v8 = vadd.f32 %v619_v16, %v2826_v34  ;;  %v3118_v0 = vadd.f32 %v1295_v9, %v2831_v53  ;;  %v3121_v59 = vadd.f32 %v1296_v6, %v2833_v54 }
  0xe9   : > { %v1299_v47 = vmax.f32 %v1235_v20, %v1267_v25  ;;  %v1300_v35 = vmax.f32 %v1236_v40, %v1268_v56  ;;  %v593_v33 = vmul.f32 0.01, %v3106_v43  ;;  %v1237_v21 = vadd.f32 %v2904_v44, %v1182_v38 }
  0xea   : > { %4109 = vst [vmem:[#allocation51_spill] sm:$0xff] %v3121_v59  ;;  %v624_v17 = vmax.f32 %v3103_v58, %v3112_v55  ;;  %v687_v34 = vmax.f32 %v3109_v31, %v3115_v8  ;;  %v1365_v16 = vmax.f32 %v3118_v0, %v3121_v59  ;;  %v1238_v9 = vadd.f32 %v2924_v24, %v1182_v38  ;;  %v1186_v25 = vpop.permute.xlu0 %1185 }
  0xeb   : > { %v625_v6 = vmax.f32 %v3106_v43, %v593_v33  ;;  %v1269_v62 = vmul.f32 0.01, %v1237_v21  ;;  %v3134_v20 = vadd.f32 %v2768_v50, %v501_v18  ;;  %v3137_v40 = vadd.f32 %v2888_v7, %v501_v18  ;;  %v506_v43 = vpop.permute.xlu1 %505 }
  0xec   : > { %688 = vmax.xlane.f32.xlu0 %v687_v34  ;;  %1366 = vmax.xlane.f32.xlu1 %v1365_v16  ;;  %v1270_v58 = vmul.f32 0.01, %v1238_v9  ;;  %v3140_v56 = vadd.f32 %v620_v41, %v2831_v53  ;;  %v3143_v55 = vadd.f32 %v621_v26, %v2833_v54  ;;  %v3146_v38 = vadd.f32 %v1297_v42, %v2844_v2 }
  0xed   : > { %v1301_v33 = vmax.f32 %v1237_v21, %v1269_v62  ;;  %v594_v59 = vmul.f32 0.01, %v3134_v20  ;;  %v3150_v18 = vmul.f32 0.01, %v3137_v40  ;;  %v3153_v34 = vadd.f32 %v1298_v3, %v2856_v19 }
  0xee   : > { %4110 = vst [vmem:[#allocation52_spill] sm:$0xff] %v3143_v55  ;;  %4111 = vst [vmem:[#allocation53_spill] sm:$0xff] %v3146_v38  ;;  %v1302_v16 = vmax.f32 %v1238_v9, %v1270_v58  ;;  %v690_v53 = vmax.f32 %v3140_v56, %v3143_v55  ;;  %v1239_v54 = vadd.f32 %v2904_v44, %v1186_v25  ;;  %v1190_v3 = vpop.permute.xlu0 %1189 }
  0xef   : > { %4112 = vst [vmem:[#allocation54_spill] sm:$0xff] %v3153_v34  ;;  %v1240_v26 = vadd.f32 %v2924_v24, %v1186_v25  ;;  %v626_v41 = vmax.f32 %v3134_v20, %v594_v59  ;;  %v627_v62 = vmax.f32 %v3137_v40, %v3150_v18  ;;  %v1368_v42 = vmax.f32 %v3146_v38, %v3153_v34  ;;  %v511_v59 = vpop.permute.xlu1 %510 }
  0xf0   : > { %v3165_v21 = vadd.f32 %v2768_v50, %v506_v43  ;;  %691 = vmax.xlane.f32.xlu0 %v690_v53  ;;  %v1271_v9 = vmul.f32 0.01, %v1239_v54  ;;  %v3168_v55 = vadd.f32 %v2888_v7, %v506_v43  ;;  %v3171_v25 = vadd.f32 %v622_v46, %v2844_v2 }
  0xf1   : > { %v1272_v58 = vmul.f32 0.01, %v1240_v26  ;;  %1369 = vmax.xlane.f32.xlu1 %v1368_v42  ;;  %v3177_v40 = vadd.f32 %v623_v48, %v2856_v19  ;;  %v3180_v18 = vadd.f32 %v1299_v47, %v2861_v29  ;;  %v3183_v53 = vadd.f32 %v1300_v35, %v2871_v57 }
  0xf2   : > { %v3174_v20 = vmul.f32 0.01, %v3165_v21  ;;  %v1303_v34 = vmax.f32 %v1239_v54, %v1271_v9  ;;  %v597_v38 = vmul.f32 0.01, %v3168_v55  ;;  %v1241_v2 = vadd.f32 %v2904_v44, %v1190_v3  ;;  %v1194_v47 = vpop.permute.xlu0 %1193 }
  0xf3   : > { %4113 = vst [vmem:[#allocation55_spill] sm:$0xff] %v3180_v18  ;;  %4114 = vst [vmem:[#allocation56_spill] sm:$0xff] %v3183_v53  ;;  %v1304_v43 = vmax.f32 %v1240_v26, %v1272_v58  ;;  %v693_v42 = vmax.f32 %v3171_v25, %v3177_v40  ;;  %v1371_v19 = vmax.f32 %v3180_v18, %v3183_v53  ;;  %v516_v58 = vpop.permute.xlu1 %515 }
  0xf4   : > { %v628_v46 = vmax.f32 %v3165_v21, %v3174_v20  ;;  %v1242_v48 = vadd.f32 %v2924_v24, %v1190_v3  ;;  %v629_v35 = vmax.f32 %v3168_v55, %v597_v38  ;;  %v1273_v54 = vmul.f32 0.01, %v1241_v2 }
  0xf5   : > { %v3196_v26 = vadd.f32 %v2768_v50, %v511_v59  ;;  %v3199_v9 = vadd.f32 %v2888_v7, %v511_v59  ;;  %694 = vmax.xlane.f32.xlu0 %v693_v42  ;;  %1372 = vmax.xlane.f32.xlu1 %v1371_v19  ;;  %v3202_v20 = vadd.f32 %v624_v17, %v2861_v29 }
  0xf6   : > { %v1274_v21 = vmul.f32 0.01, %v1242_v48  ;;  %v3205_v53 = vadd.f32 %v625_v6, %v2871_v57  ;;  %v3208_v3 = vadd.f32 %v1301_v33, %v2890_v13  ;;  %v1305_v55 = vmax.f32 %v1241_v2, %v1273_v54  ;;  %v1198_v6 = vpop.permute.xlu0 %1197 }
  0xf7   : > { %v598_v38 = vmul.f32 0.01, %v3196_v26  ;;  %v3212_v18 = vmul.f32 0.01, %v3199_v9  ;;  %v3215_v59 = vadd.f32 %v1302_v16, %v2892_v14  ;;  %v1243_v17 = vadd.f32 %v2904_v44, %v1194_v47 }
  0xf8   : > { %4115 = vst [vmem:[#allocation57_spill] sm:$0xff] %v3205_v53  ;;  %4116 = vst [vmem:[#allocation58_spill] sm:$0xff] %v3208_v3  ;;  %v1306_v42 = vmax.f32 %v1242_v48, %v1274_v21  ;;  %v696_v29 = vmax.f32 %v3202_v20, %v3205_v53  ;;  %v1244_v57 = vadd.f32 %v2924_v24, %v1194_v47  ;;  %v521_v48 = vpop.permute.xlu1 %520 }
  0xf9   : > { %4117 = vst [vmem:[#allocation59_spill] sm:$0xff] %v3215_v59  ;;  %v630_v33 = vmax.f32 %v3196_v26, %v598_v38  ;;  %v631_v2 = vmax.f32 %v3199_v9, %v3212_v18  ;;  %v1374_v19 = vmax.f32 %v3208_v3, %v3215_v59  ;;  %v3227_v16 = vadd.f32 %v2768_v50, %v516_v58 }
  0xfa   : > { %697 = vmax.xlane.f32.xlu0 %v696_v29  ;;  %v1275_v54 = vmul.f32 0.01, %v1243_v17  ;;  %v1276_v21 = vmul.f32 0.01, %v1244_v57  ;;  %v3230_v53 = vadd.f32 %v2888_v7, %v516_v58  ;;  %v3233_v47 = vadd.f32 %v626_v41, %v2890_v13  ;;  %v1202_v41 = vpop.permute.xlu0 %1201 }
  0xfb   : > { %1375 = vmax.xlane.f32.xlu1 %v1374_v19  ;;  %v3236_v26 = vmul.f32 0.01, %v3227_v16  ;;  %v3239_v18 = vadd.f32 %v627_v62, %v2892_v14  ;;  %v3242_v9 = vadd.f32 %v1303_v34, %v2894_v11  ;;  %v3245_v38 = vadd.f32 %v1304_v43, %v2896_v61 }
  0xfc   : > { %v1307_v29 = vmax.f32 %v1243_v17, %v1275_v54  ;;  %v1308_v59 = vmax.f32 %v1244_v57, %v1276_v21  ;;  %v601_v58 = vmul.f32 0.01, %v3230_v53  ;;  %v1245_v13 = vadd.f32 %v2904_v44, %v1198_v6  ;;  %v526_v21 = vpop.permute.xlu1 %525 }
  0xfd   : > { %4118 = vst [vmem:[#allocation60_spill] sm:$0xff] %v3242_v9  ;;  %4119 = vst [vmem:[#allocation61_spill] sm:$0xff] %v3245_v38  ;;  %v632_v19 = vmax.f32 %v3227_v16, %v3236_v26  ;;  %v699_v14 = vmax.f32 %v3233_v47, %v3239_v18  ;;  %v1377_v34 = vmax.f32 %v3242_v9, %v3245_v38 }
  0xfe   : > { %v1246_v62 = vadd.f32 %v2924_v24, %v1198_v6  ;;  %v633_v43 = vmax.f32 %v3230_v53, %v601_v58  ;;  %v1277_v17 = vmul.f32 0.01, %v1245_v13  ;;  %v570_v57 = vadd.f32 %v2768_v50, %v521_v48 }
  0xff   : > { %v571_v54 = vadd.f32 %v2888_v7, %v521_v48  ;;  %700 = vmax.xlane.f32.xlu0 %v699_v14  ;;  %1378 = vmax.xlane.f32.xlu1 %v1377_v34  ;;  %v3260_v16 = vadd.f32 %v628_v46, %v2894_v11  ;;  %v3263_v26 = vadd.f32 %v629_v35, %v2896_v61 }
 0x100   : > { %v1278_v3 = vmul.f32 0.01, %v1246_v62  ;;  %v3266_v38 = vadd.f32 %v1305_v55, %v2906_v37  ;;  %v1309_v6 = vmax.f32 %v1245_v13, %v1277_v17  ;;  %v602_v53 = vmul.f32 0.01, %v570_v57  ;;  %v1206_v13 = vpop.permute.xlu0 %1205 }
 0x101   : > { %4120 = vst [vmem:[#allocation62_spill] sm:$0xff] %v3263_v26  ;;  %v603_v58 = vmul.f32 0.01, %v571_v54  ;;  %v3269_v9 = vadd.f32 %v1306_v42, %v2908_v30  ;;  %v702_v14 = vmax.f32 %v3260_v16, %v3263_v26  ;;  %v1247_v34 = vadd.f32 %v2904_v44, %v1202_v41 }
 0x102   : > { %4121 = vst [vmem:[#allocation63_spill] sm:$0xff] %v3266_v38  ;;  %v1310_v48 = vmax.f32 %v1246_v62, %v1278_v3  ;;  %v1248_v11 = vadd.f32 %v2924_v24, %v1202_v41  ;;  %v634_v46 = vmax.f32 %v570_v57, %v602_v53  ;;  %v572_v55 = vadd.f32 %v2768_v50, %v526_v21  ;;  %v531_v53 = vpop.permute.xlu1 %530 }
 0x103   : > { %4122 = vst [vmem:[#allocation64_spill] sm:$0xff] %v3269_v9  ;;  %v635_v61 = vmax.f32 %v571_v54, %v603_v58  ;;  %v1380_v35 = vmax.f32 %v3266_v38, %v3269_v9  ;;  %703 = vmax.xlane.f32.xlu0 %v702_v14  ;;  %v1279_v17 = vmul.f32 0.01, %v1247_v34  ;;  %v573_v3 = vadd.f32 %v2888_v7, %v526_v21 }
 0x104   : > { %v1280_v42 = vmul.f32 0.01, %v1248_v11  ;;  %v3280_v62 = vadd.f32 %v630_v33, %v2906_v37  ;;  %v604_v26 = vmul.f32 0.01, %v572_v55  ;;  %v3283_v41 = vadd.f32 %v631_v2, %v2908_v30 }
 0x105   : > { %1381 = vmax.xlane.f32.xlu1 %v1380_v35  ;;  %v3286_v57 = vadd.f32 %v1307_v29, %v2910_v36  ;;  %v3289_v54 = vadd.f32 %v1308_v59, %v2912_v45  ;;  %v1311_v58 = vmax.f32 %v1247_v34, %v1279_v17  ;;  %v605_v9 = vmul.f32 0.01, %v573_v3 }
 0x106   : > { %v1312_v14 = vmax.f32 %v1248_v11, %v1280_v42  ;;  %v1249_v21 = vadd.f32 %v2904_v44, %v1206_v13  ;;  %v636_v38 = vmax.f32 %v572_v55, %v604_v26  ;;  %v705_v37 = vmax.f32 %v3280_v62, %v3283_v41 }
 0x107   : > { %v1383_v30 = vmax.f32 %v3286_v57, %v3289_v54  ;;  %v1250_v33 = vadd.f32 %v2924_v24, %v1206_v13  ;;  %v637_v2 = vmax.f32 %v573_v3, %v605_v9  ;;  %v574_v59 = vadd.f32 %v2768_v50, %v531_v53 }
 0x108   : > { %v1281_v29 = vmul.f32 0.01, %v1249_v21  ;;  %v575_v35 = vadd.f32 %v2888_v7, %v531_v53  ;;  %706 = vmax.xlane.f32.xlu0 %v705_v37  ;;  %v3300_v44 = vadd.f32 %v632_v19, %v2910_v36  ;;  %v3303_v26 = vadd.f32 %v633_v43, %v2912_v45  ;;  %v405_v37 = vld [vmem:[%s3947_s0 + $0x8] sm:$0xff] }
 0x109   : > { %1384 = vmax.xlane.f32.xlu1 %v1383_v30  ;;  %v1282_v34 = vmul.f32 0.01, %v1250_v33  ;;  %v3306_v11 = vadd.f32 %v1309_v6, %v2926_v1  ;;  %v606_v24 = vmul.f32 0.01, %v574_v59  ;;  %v3309_v13 = vadd.f32 %v1310_v48, %v2928_v15  ;;  %v422_v30 = vld [vmem:[%s3947_s0 + $0x90] sm:$0xff] }
 0x10a   : > { %v1313_v55 = vmax.f32 %v1249_v21, %v1281_v29  ;;  %v607_v9 = vmul.f32 0.01, %v575_v35  ;;  %v708_v7 = vmax.f32 %v3300_v44, %v3303_v26  ;;  %v3314_v17 = vadd.f32 %v634_v46, %v2926_v1 }
 0x10b   : > { %v1314_v50 = vmax.f32 %v1250_v33, %v1282_v34  ;;  %v3317_v36 = vadd.f32 %v635_v61, %v2928_v15  ;;  %v1386_v45 = vmax.f32 %v3306_v11, %v3309_v13  ;;  %v3322_v19 = vadd.f32 %v1311_v58, %v2931_v60  ;;  %v423_v33 = vld [vmem:[%s3947_s0 + $0x98] sm:$0xff]  ;;  %v424_v34 = vld [vmem:[%s3947_s0 + $0xa0] sm:$0xff] }
 0x10c   : > { %709 = vmax.xlane.f32.xlu0 %v708_v7  ;;  %v3325_v43 = vadd.f32 %v1312_v14, %v2933_v39  ;;  %v638_v6 = vmax.f32 %v574_v59, %v606_v24  ;;  %v639_v48 = vmax.f32 %v575_v35, %v607_v9  ;;  %v3328_v42 = vadd.f32 %v1313_v55, %v2948_v5  ;;  %v406_v59 = vld [vmem:[%s3947_s0 + $0x10] sm:$0xff]  ;;  %v407_v35 = vld [vmem:[%s3947_s0 + $0x18] sm:$0xff]  ;;  %v425_v55 = vld [vmem:[%s3947_s0 + $0xa8] sm:$0xff] }
 0x10d   : > { %1387 = vmax.xlane.f32.xlu1 %v1386_v45  ;;  %v3331_v1 = vadd.f32 %v1314_v50, %v3011_v10  ;;  %v711_v15 = vmax.f32 %v3314_v17, %v3317_v36  ;;  %v3338_v61 = vadd.f32 %v636_v38, %v2931_v60  ;;  %v3341_v3 = vadd.f32 %v637_v2, %v2933_v39  ;;  %v420_v39 = vld [vmem:[%s3947_s0 + $0x80] sm:$0xff]  ;;  %v421_v38 = vld [vmem:[%s3947_s0 + $0x88] sm:$0xff]  ;;  %v426_v45 = vld [vmem:[%s3947_s0 + $0xb0] sm:$0xff] }
 0x10e   : > { %v1389_v46 = vmax.f32 %v3322_v19, %v3325_v43  ;;  %v3348_v14 = vadd.f32 %v638_v6, %v2948_v5  ;;  %v3351_v21 = vadd.f32 %v639_v48, %v3011_v10  ;;  %v404_v5 = vld [vmem:[%s3947_s0] sm:$0xff]  ;;  %v2147_v10 = vpack.c.bf16 %v421_v38, %v420_v39  ;;  %v409_v7 = vld [vmem:[%s3947_s0 + $0x28] sm:$0xff]  ;;  %v427_v6 = vld [vmem:[%s3947_s0 + $0xb8] sm:$0xff] }
 0x10f   : > { %v1392_v53 = vmax.f32 %v3328_v42, %v3331_v1  ;;  %v714_v58 = vmax.f32 %v3338_v61, %v3341_v3  ;;  %v2149_v2 = vpack.c.bf16 %v405_v37, %v404_v5  ;;  %v2151_v29 = vpack.c.bf16 %v423_v33, %v422_v30  ;;  %v408_v50 = vld [vmem:[%s3947_s0 + $0x20] sm:$0xff] }
 0x110   : > { %712 = vmax.xlane.f32.xlu0 %v711_v15  ;;  %v717_v60 = vmax.f32 %v3348_v14, %v3351_v21  ;;  %2148 = vmatprep.subr.bf16.mxu0 %v2147_v10  ;;  %v2153_v24 = vpack.c.bf16 %v407_v35, %v406_v59  ;;  %v2155_v9 = vpack.c.bf16 %v425_v55, %v424_v34 }
 0x111   : > { %1390 = vmax.xlane.f32.xlu1 %v1389_v46  ;;  %2180 = vmatprep.subr.bf16.mxu1 %v2147_v10  ;;  %v2157_v48 = vpack.c.bf16 %v409_v7, %v408_v50  ;;  %v2159_v15 = vpack.c.bf16 %v427_v6, %v426_v45  ;;  %v410_v46 = vld [vmem:[%s3947_s0 + $0x30] sm:$0xff]  ;;  %v4124_v7 = vld [vmem:[#allocation41_spill] sm:$0xff]  ;;  %v4126_v6 = vld [vmem:[#allocation43_spill] sm:$0xff] }
 0x112   : > { %2150 = vmatpush3.bf16.msra.mxu0 %v2149_v2  ;;  %2182 = vmatpush3.bf16.msra.mxu1 %v2149_v2  ;;  %v4125_v45 = vld [vmem:[#allocation42_spill] sm:$0xff] }
 0x113   : > { %2152 = vmatprep.subr.bf16.mxu0 %v2151_v29  ;;  %2184 = vmatprep.subr.bf16.mxu1 %v2151_v29 }
 0x114   : > { %715 = vmax.xlane.f32.xlu0 %v714_v58 }
 0x115   : > { %1393 = vmax.xlane.f32.xlu1 %v1392_v53  ;;  %v411_v53 = vld [vmem:[%s3947_s0 + $0x38] sm:$0xff] }
 0x116   : > { %2154 = vmatpush3.bf16.msra.mxu0 %v2153_v24  ;;  %2186 = vmatpush3.bf16.msra.mxu1 %v2153_v24  ;;  %v2161_v58 = vpack.c.bf16 %v411_v53, %v410_v46 }
 0x117   : > { %2156 = vmatprep.subr.bf16.mxu0 %v2155_v9  ;;  %2188 = vmatprep.subr.bf16.mxu1 %v2155_v9  ;;  %v4123_v9 = vld [vmem:[#allocation40_spill] sm:$0xff] }
 0x118   : > { %718 = vmax.xlane.f32.xlu0 %v717_v60 }
 0x11a   : > { %2158 = vmatpush3.bf16.msra.mxu0 %v2157_v48  ;;  %2190 = vmatpush3.bf16.msra.mxu1 %v2157_v48 }
 0x11b   : > { %2160 = vmatprep.subr.bf16.mxu0 %v2159_v15  ;;  %2192 = vmatprep.subr.bf16.mxu1 %v2159_v15 }
 0x11e   : > { %2162 = vmatpush3.bf16.msra.mxu0 %v2161_v58  ;;  %2194 = vmatpush3.bf16.msra.mxu1 %v2161_v58 }
 0x159   : > { %v674_v60 = vpop.xlane.xlu1 %673 }
 0x15a   : > { %v720_v39 = vsub.f32 %v2943_v52, %v674_v60  ;;  %v721_v38 = vsub.f32 %v2946_v27, %v674_v60 }
 0x15c   : > { %v752_v5 = vmul.f32 1.442695, %v720_v39  ;;  %v754_v10 = vmul.f32 1.442695, %v721_v38  ;;  %v4127_v38 = vld [vmem:[#allocation44_spill] sm:$0xff] }
 0x15e   : > { %2268 = vpow2.f32 %v752_v5  ;;  %v1352_v37 = vpop.xlane.xlu1 %1351 }
 0x15f   : > { %2270 = vpow2.f32 %v754_v10  ;;  %v1397_v30 = vsub.f32 %v2966_v28, %v1352_v37  ;;  %v1398_v33 = vsub.f32 %v2969_v49, %v1352_v37  ;;  %v4128_v10 = vld [vmem:[#allocation8_spill] sm:$0xff] }
 0x160   : > { %v1349_v2 = vpop.xlane.xlu0 %1348 }
 0x161   : > { %v1395_v29 = vsub.f32 %v2963_v51, %v1349_v2  ;;  %v1396_v59 = vsub.f32 %v2972_v32, %v1349_v2  ;;  %v1431_v35 = vmul.f32 1.442695, %v1397_v30  ;;  %v1433_v34 = vmul.f32 1.442695, %v1398_v33  ;;  %v4129_v30 = vld [vmem:[#allocation10_spill] sm:$0xff] }
 0x163   : > { %v1427_v55 = vmul.f32 1.442695, %v1395_v29  ;;  %v1429_v52 = vmul.f32 1.442695, %v1396_v59  ;;  %2272 = vpow2.f32 %v1431_v35 }
 0x164   : > { %2274 = vpow2.f32 %v1433_v34  ;;  %v677_v27 = vpop.xlane.xlu0 %676  ;;  %v1355_v24 = vpop.xlane.xlu1 %1354  ;;  %v4130_v34 = vld [vmem:[#allocation45_spill] sm:$0xff] }
 0x165   : > { %2276 = vpow2.f32 %v1427_v55  ;;  %v722_v50 = vsub.f32 %v4123_v9, %v677_v27  ;;  %v723_v28 = vsub.f32 %v4124_v7, %v677_v27  ;;  %v1399_v49 = vsub.f32 %v4125_v45, %v1355_v24  ;;  %v4131_v45 = vld [vmem:[#allocation46_spill] sm:$0xff] }
 0x166   : > { %2278 = vpow2.f32 %v1429_v52  ;;  %v1400_v51 = vsub.f32 %v4126_v6, %v1355_v24 }
 0x167   : > { %v756_v48 = vmul.f32 1.442695, %v722_v50  ;;  %v758_v32 = vmul.f32 1.442695, %v723_v28  ;;  %v1435_v15 = vmul.f32 1.442695, %v1399_v49 }
 0x168   : > { %v2269_v46 = vpop.eup %2268  ;;  %v1437_v53 = vmul.f32 1.442695, %v1400_v51 }
 0x169   : > { %v680_v58 = vpop.xlane.xlu0 %679  ;;  %v2271_v60 = vpop.eup %2270  ;;  %2280 = vpow2.f32 %v756_v48  ;;  %v3416_v37 = vmul.f32 %v2269_v46, %v4128_v10  ;;  %v4133_v48 = vld [vmem:[#allocation11_spill] sm:$0xff] }
 0x16a   : > { %v724_v39 = vsub.f32 %v3001_v4, %v680_v58  ;;  %v725_v5 = vsub.f32 %v4127_v38, %v680_v58  ;;  %2282 = vpow2.f32 %v758_v32  ;;  %v3419_v33 = vmul.f32 %v2271_v60, %v4129_v30 }
 0x16b   : > { %2284 = vpow2.f32 %v1435_v15  ;;  %v1358_v59 = vpop.xlane.xlu1 %1357 }
 0x16c   : > { %v760_v2 = vmul.f32 1.442695, %v724_v39  ;;  %v762_v29 = vmul.f32 1.442695, %v725_v5  ;;  %2286 = vpow2.f32 %v1437_v53  ;;  %v1401_v35 = vsub.f32 %v3027_v22, %v1358_v59  ;;  %v4132_v22 = vld [vmem:[#allocation9_spill] sm:$0xff]  ;;  %v4134_v53 = vld [vmem:[#allocation47_spill] sm:$0xff] }
 0x16d   : > { %v1402_v55 = vsub.f32 %v4130_v34, %v1358_v59  ;;  %v848_v4 = vadd.f32 %v3419_v33, %v3416_v37  ;;  %v2273_v52 = vpop.eup %2272 }
 0x16e   : > { %2288 = vpow2.f32 %v760_v2  ;;  %v2275_v27 = vpop.eup %2274  ;;  %v1439_v24 = vmul.f32 1.442695, %v1401_v35  ;;  %v3428_v51 = vmul.f32 %v2273_v52, %v4132_v22 }
 0x16f   : > { %2290 = vpow2.f32 %v762_v29  ;;  %v1441_v9 = vmul.f32 1.442695, %v1402_v55  ;;  %v683_v50 = vpop.xlane.xlu0 %682  ;;  %849 = vadd.xlane.f32.xlu0 %v848_v4  ;;  %v2277_v7 = vpop.eup %2276  ;;  %v3431_v32 = vmul.f32 %v2275_v27, %v4133_v48  ;;  %v4135_v55 = vld [vmem:[#allocation48_spill] sm:$0xff] }
 0x170   : > { %v726_v28 = vsub.f32 %v3033_v63, %v683_v50  ;;  %v727_v49 = vsub.f32 %v4131_v45, %v683_v50  ;;  %v1361_v6 = vpop.xlane.xlu1 %1360  ;;  %v2279_v15 = vpop.eup %2278  ;;  %2292 = vpow2.f32 %v1439_v24  ;;  %v3436_v60 = vmul.f32 %v2277_v7, %v4128_v10  ;;  %v4136_v24 = vld [vmem:[#allocation49_spill] sm:$0xff]  ;;  %v4137_v50 = vld [vmem:[#allocation50_spill] sm:$0xff] }
 0x171   : > { %v1403_v46 = vsub.f32 %v3056_v23, %v1361_v6  ;;  %v1404_v58 = vsub.f32 %v4134_v53, %v1361_v6  ;;  %2294 = vpow2.f32 %v1441_v9  ;;  %v3439_v38 = vmul.f32 %v2279_v15, %v4129_v30  ;;  %v4138_v6 = vld [vmem:[#allocation12_spill] sm:$0xff] }
 0x172   : > { %v764_v63 = vmul.f32 1.442695, %v726_v28  ;;  %v766_v39 = vmul.f32 1.442695, %v727_v49  ;;  %v1526_v23 = vadd.f32 %v3431_v32, %v3428_v51 }
 0x173   : > { %v1443_v5 = vmul.f32 1.442695, %v1403_v46  ;;  %v1445_v2 = vmul.f32 1.442695, %v1404_v58  ;;  %v2281_v29 = vpop.eup %2280  ;;  %v1523_v35 = vadd.f32 %v3439_v38, %v3436_v60 }
 0x174   : > { %2296 = vpow2.f32 %v764_v63  ;;  %v686_v59 = vpop.xlane.xlu0 %685  ;;  %v2283_v34 = vpop.eup %2282  ;;  %v3448_v30 = vmul.f32 %v2281_v29, %v4132_v22  ;;  %v4139_v63 = vld [vmem:[#allocation13_spill] sm:$0xff] }
 0x175   : > { %2298 = vpow2.f32 %v766_v39  ;;  %v728_v10 = vsub.f32 %v3078_v12, %v686_v59  ;;  %v729_v4 = vsub.f32 %v4135_v55, %v686_v59  ;;  %v1364_v52 = vpop.xlane.xlu1 %1363  ;;  %v2285_v27 = vpop.eup %2284  ;;  %1524 = vadd.xlane.f32.xlu1 %v1523_v35  ;;  %v3453_v28 = vmul.f32 %v2283_v34, %v4133_v48  ;;  %v4140_v55 = vld [vmem:[#allocation51_spill] sm:$0xff] }
 0x176   : > { %2300 = vpow2.f32 %v1443_v5  ;;  %v1405_v9 = vsub.f32 %v4136_v24, %v1364_v52  ;;  %v1406_v7 = vsub.f32 %v4137_v50, %v1364_v52  ;;  %v2287_v45 = vpop.eup %2286  ;;  %v3456_v15 = vmul.f32 %v2285_v27, %v4138_v6 }
 0x177   : > { %2302 = vpow2.f32 %v1445_v2  ;;  %v768_v49 = vmul.f32 1.442695, %v728_v10  ;;  %v770_v12 = vmul.f32 1.442695, %v729_v4  ;;  %v851_v58 = vadd.f32 %v3453_v28, %v3448_v30 }
 0x178   : > { %v2289_v46 = vpop.eup %2288  ;;  %v1447_v22 = vmul.f32 1.442695, %v1405_v9  ;;  %v1449_v53 = vmul.f32 1.442695, %v1406_v7  ;;  %v3461_v39 = vmul.f32 %v2287_v45, %v4139_v63 }
 0x179   : > { %v2291_v5 = vpop.eup %2290  ;;  %2304 = vpow2.f32 %v768_v49  ;;  %v689_v48 = vpop.xlane.xlu0 %688  ;;  %v3464_v2 = vmul.f32 %v2289_v46, %v4138_v6  ;;  %852 = vadd.xlane.f32.xlu0 %v851_v58  ;;  %1527 = vadd.xlane.f32.xlu1 %v1526_v23  ;;  %v4141_v23 = vld [vmem:[#allocation14_spill] sm:$0xff]  ;;  %v4142_v49 = vld [vmem:[#allocation15_spill] sm:$0xff] }
 0x17a   : > { %v1367_v29 = vpop.xlane.xlu1 %1366  ;;  %2306 = vpow2.f32 %v770_v12  ;;  %v730_v59 = vsub.f32 %v3109_v31, %v689_v48  ;;  %v731_v35 = vsub.f32 %v3115_v8, %v689_v48  ;;  %v2293_v10 = vpop.eup %2292  ;;  %v3471_v52 = vmul.f32 %v2291_v5, %v4139_v63  ;;  %v4144_v5 = vld [vmem:[#allocation53_spill] sm:$0xff] }
 0x17b   : > { %v1407_v34 = vsub.f32 %v3118_v0, %v1367_v29  ;;  %2308 = vpow2.f32 %v1447_v22  ;;  %v1408_v4 = vsub.f32 %v4140_v55, %v1367_v29  ;;  %v1529_v27 = vadd.f32 %v3461_v39, %v3456_v15  ;;  %v2295_v24 = vpop.eup %2294  ;;  %v4143_v22 = vld [vmem:[#allocation52_spill] sm:$0xff]  ;;  %v4145_v29 = vld [vmem:[#allocation54_spill] sm:$0xff] }
 0x17c   : > { %2310 = vpow2.f32 %v1449_v53  ;;  %v772_v9 = vmul.f32 1.442695, %v730_v59  ;;  %v774_v31 = vmul.f32 1.442695, %v731_v35  ;;  %v854_v0 = vadd.f32 %v3471_v52, %v3464_v2 }
 0x17d   : > { %v1451_v50 = vmul.f32 1.442695, %v1407_v34  ;;  %v1453_v8 = vmul.f32 1.442695, %v1408_v4  ;;  %v692_v7 = vpop.xlane.xlu0 %691  ;;  %v3478_v45 = vmul.f32 %v2293_v10, %v4141_v23  ;;  %v3481_v12 = vmul.f32 %v2295_v24, %v4142_v49  ;;  %1530 = vadd.xlane.f32.xlu1 %v1529_v27 }
 0x17e   : > { %v2297_v6 = vpop.eup %2296  ;;  %2312 = vpow2.f32 %v772_v9  ;;  %v732_v46 = vsub.f32 %v3140_v56, %v692_v7  ;;  %v733_v53 = vsub.f32 %v4143_v22, %v692_v7  ;;  %v1370_v58 = vpop.xlane.xlu1 %1369  ;;  %855 = vadd.xlane.f32.xlu0 %v854_v0 }
 0x17f   : > { %v2299_v63 = vpop.eup %2298  ;;  %2314 = vpow2.f32 %v774_v31  ;;  %v1409_v48 = vsub.f32 %v4144_v5, %v1370_v58  ;;  %v1410_v59 = vsub.f32 %v4145_v29, %v1370_v58  ;;  %v3488_v35 = vmul.f32 %v2297_v6, %v4141_v23  ;;  %v4147_v23 = vld [vmem:[#allocation16_spill] sm:$0xff]  ;;  %v4149_v6 = vld [vmem:[#allocation17_spill] sm:$0xff] }
 0x180   : > { %v2301_v34 = vpop.eup %2300  ;;  %2316 = vpow2.f32 %v1451_v50  ;;  %v776_v10 = vmul.f32 1.442695, %v732_v46  ;;  %v778_v55 = vmul.f32 1.442695, %v733_v53  ;;  %v3491_v56 = vmul.f32 %v2299_v63, %v4142_v49  ;;  %v4150_v53 = vld [vmem:[#allocation55_spill] sm:$0xff]  ;;  %v428_v63 = vld [vmem:[%s3947_s0 + $0xc0] sm:$0xff] }
 0x181   : > { %4146 = vst [vmem:[#allocation40_spill] sm:$0xff] %v3488_v35  ;;  %v2303_v4 = vpop.eup %2302  ;;  %2318 = vpow2.f32 %v1453_v8  ;;  %v1455_v27 = vmul.f32 1.442695, %v1409_v48  ;;  %v1457_v24 = vmul.f32 1.442695, %v1410_v59  ;;  %v1532_v9 = vadd.f32 %v3481_v12, %v3478_v45  ;;  %v429_v5 = vld [vmem:[%s3947_s0 + $0xc8] sm:$0xff] }
 0x182   : > { %2320 = vpow2.f32 %v776_v10  ;;  %v695_v31 = vpop.xlane.xlu0 %694  ;;  %v1373_v7 = vpop.xlane.xlu1 %1372  ;;  %v857_v0 = vadd.f32 %v3491_v56, %v3488_v35  ;;  %v3498_v50 = vmul.f32 %v2301_v34, %v4147_v23  ;;  %v3501_v46 = vmul.f32 %v2303_v4, %v4149_v6  ;;  %v4151_v29 = vld [vmem:[#allocation56_spill] sm:$0xff] }
 0x183   : > { %v2305_v49 = vpop.eup %2304  ;;  %2322 = vpow2.f32 %v778_v55  ;;  %v734_v8 = vsub.f32 %v3171_v25, %v695_v31  ;;  %v735_v22 = vsub.f32 %v3177_v40, %v695_v31  ;;  %v1411_v58 = vsub.f32 %v4150_v53, %v1373_v7  ;;  %1533 = vadd.xlane.f32.xlu1 %v1532_v9 }
 0x184   : > { %4148 = vst [vmem:[#allocation41_spill] sm:$0xff] %v3498_v50  ;;  %v2307_v48 = vpop.eup %2306  ;;  %2324 = vpow2.f32 %v1455_v27  ;;  %v1412_v59 = vsub.f32 %v4151_v29, %v1373_v7  ;;  %858 = vadd.xlane.f32.xlu0 %v857_v0  ;;  %v3514_v25 = vmul.f32 %v2305_v49, %v4147_v23  ;;  %v1535_v40 = vadd.f32 %v3501_v46, %v3498_v50  ;;  %v4153_v27 = vld [vmem:[#allocation18_spill] sm:$0xff]  ;;  %v4154_v49 = vld [vmem:[#allocation57_spill] sm:$0xff] }
 0x185   : > { %v2309_v34 = vpop.eup %2308  ;;  %2326 = vpow2.f32 %v1457_v24  ;;  %v780_v10 = vmul.f32 1.442695, %v734_v8  ;;  %v782_v55 = vmul.f32 1.442695, %v735_v22  ;;  %v1459_v4 = vmul.f32 1.442695, %v1411_v58 }
 0x186   : > { %4152 = vst [vmem:[#allocation42_spill] sm:$0xff] %v3514_v25  ;;  %v2311_v9 = vpop.eup %2310  ;;  %v1461_v31 = vmul.f32 1.442695, %v1412_v59  ;;  %v3519_v35 = vmul.f32 %v2307_v48, %v4149_v6  ;;  %v3522_v7 = vmul.f32 %v2309_v34, %v4153_v27  ;;  %v2163_v0 = vpack.c.bf16 %v429_v5, %v428_v63  ;;  %v4155_v24 = vld [vmem:[#allocation19_spill] sm:$0xff]  ;;  %v4156_v58 = vld [vmem:[#allocation58_spill] sm:$0xff]  ;;  %v413_v63 = vld [vmem:[%s3947_s0 + $0x48] sm:$0xff] }
 0x187   : > { %v698_v53 = vpop.xlane.xlu0 %697  ;;  %2328 = vpow2.f32 %v780_v10  ;;  %1536 = vadd.xlane.f32.xlu1 %v1535_v40  ;;  %v3527_v8 = vmul.f32 %v2311_v9, %v4155_v24  ;;  %v4157_v6 = vld [vmem:[#allocation59_spill] sm:$0xff] }
 0x188   : > { %v736_v23 = vsub.f32 %v3202_v20, %v698_v53  ;;  %v737_v29 = vsub.f32 %v4154_v49, %v698_v53  ;;  %v1376_v50 = vpop.xlane.xlu1 %1375  ;;  %v2313_v22 = vpop.eup %2312  ;;  %2330 = vpow2.f32 %v782_v55  ;;  %v860_v34 = vadd.f32 %v3519_v35, %v3514_v25  ;;  %2164 = vmatprep.subr.bf16.mxu0 %v2163_v0  ;;  %v412_v20 = vld [vmem:[%s3947_s0 + $0x40] sm:$0xff]  ;;  %2196 = vmatprep.subr.bf16.mxu1 %v2163_v0 }
 0x189   : > { %v1413_v59 = vsub.f32 %v4156_v58, %v1376_v50  ;;  %v1414_v48 = vsub.f32 %v4157_v6, %v1376_v50  ;;  %v2315_v5 = vpop.eup %2314  ;;  %2332 = vpow2.f32 %v1459_v4  ;;  %v3540_v55 = vmul.f32 %v2313_v22, %v4153_v27  ;;  %v4160_v0 = vld [vmem:[#allocation20_spill] sm:$0xff] }
 0x18a   : > { %v784_v40 = vmul.f32 1.442695, %v736_v23  ;;  %v786_v10 = vmul.f32 1.442695, %v737_v29  ;;  %v2317_v50 = vpop.eup %2316  ;;  %2334 = vpow2.f32 %v1461_v31  ;;  %861 = vadd.xlane.f32.xlu0 %v860_v34  ;;  %v3543_v49 = vmul.f32 %v2315_v5, %v4155_v24  ;;  %v4163_v34 = vld [vmem:[#allocation61_spill] sm:$0xff] }
 0x18b   : > { %4158 = vst [vmem:[#allocation43_spill] sm:$0xff] %v3540_v55  ;;  %v1463_v9 = vmul.f32 1.442695, %v1413_v59  ;;  %v1465_v53 = vmul.f32 1.442695, %v1414_v48  ;;  %v2319_v58 = vpop.eup %2318  ;;  %v1538_v4 = vadd.f32 %v3527_v8, %v3522_v7  ;;  %v3548_v23 = vmul.f32 %v2317_v50, %v4160_v0  ;;  %v4162_v59 = vld [vmem:[#allocation60_spill] sm:$0xff] }
 0x18c   : > { %4159 = vst [vmem:[#allocation44_spill] sm:$0xff] %v3543_v49  ;;  %2336 = vpow2.f32 %v784_v40  ;;  %v701_v6 = vpop.xlane.xlu0 %700  ;;  %v1379_v25 = vpop.xlane.xlu1 %1378  ;;  %v2165_v27 = vpack.c.bf16 %v413_v63, %v412_v20  ;;  %v863_v40 = vadd.f32 %v3543_v49, %v3540_v55  ;;  %v4170_v55 = vld [vmem:[#allocation64_spill] sm:$0xff] }
 0x18d   : > { %4161 = vst [vmem:[#allocation8_spill] sm:$0xff] %v3548_v23  ;;  %v2321_v29 = vpop.eup %2320  ;;  %2338 = vpow2.f32 %v786_v10  ;;  %v738_v31 = vsub.f32 %v3233_v47, %v701_v6  ;;  %v739_v22 = vsub.f32 %v3239_v18, %v701_v6  ;;  %v1415_v24 = vsub.f32 %v4162_v59, %v1379_v25  ;;  %1539 = vadd.xlane.f32.xlu1 %v1538_v4  ;;  %v4165_v4 = vld [vmem:[#allocation22_spill] sm:$0xff] }
 0x18e   : > { %v2323_v48 = vpop.eup %2322  ;;  %2340 = vpow2.f32 %v1463_v9  ;;  %v1416_v5 = vsub.f32 %v4163_v34, %v1379_v25  ;;  %v3557_v50 = vmul.f32 %v2321_v29, %v4160_v0  ;;  %2166 = vmatpush3.bf16.msra.mxu0 %v2165_v27  ;;  %2198 = vmatpush3.bf16.msra.mxu1 %v2165_v27  ;;  %v4164_v9 = vld [vmem:[#allocation21_spill] sm:$0xff]  ;;  %v4167_v29 = vld [vmem:[#allocation62_spill] sm:$0xff]  ;;  %v4168_v27 = vld [vmem:[#allocation23_spill] sm:$0xff] }
 0x18f   : > { %v2325_v20 = vpop.eup %2324  ;;  %2342 = vpow2.f32 %v1465_v53  ;;  %v788_v63 = vmul.f32 1.442695, %v738_v31  ;;  %v790_v47 = vmul.f32 1.442695, %v739_v22  ;;  %v1467_v10 = vmul.f32 1.442695, %v1415_v24  ;;  %864 = vadd.xlane.f32.xlu0 %v863_v40 }
 0x190   : > { %v2327_v18 = vpop.eup %2326  ;;  %v1469_v6 = vmul.f32 1.442695, %v1416_v5  ;;  %v704_v59 = vpop.xlane.xlu0 %703  ;;  %v3560_v25 = vmul.f32 %v2323_v48, %v4164_v9  ;;  %v3563_v34 = vmul.f32 %v2319_v58, %v4164_v9  ;;  %v3566_v0 = vmul.f32 %v2325_v20, %v4165_v4  ;;  %v4169_v40 = vld [vmem:[#allocation63_spill] sm:$0xff] }
 0x191   : > { %2344 = vpow2.f32 %v788_v63  ;;  %v740_v53 = vsub.f32 %v3260_v16, %v704_v59  ;;  %v741_v31 = vsub.f32 %v4167_v29, %v704_v59  ;;  %v3571_v24 = vmul.f32 %v2327_v18, %v4168_v27  ;;  %v2329_v5 = vpop.eup %2328 }
 0x192   : > { %4166 = vst [vmem:[#allocation10_spill] sm:$0xff] %v3566_v0  ;;  %v1382_v22 = vpop.xlane.xlu1 %1381  ;;  %2346 = vpow2.f32 %v790_v47  ;;  %v866_v58 = vadd.f32 %v3560_v25, %v3557_v50  ;;  %v2331_v20 = vpop.eup %2330  ;;  %v1541_v16 = vadd.f32 %v3563_v34, %v3548_v23  ;;  %v3580_v47 = vmul.f32 %v2329_v5, %v4165_v4 }
 0x193   : > { %v1417_v48 = vsub.f32 %v4169_v40, %v1382_v22  ;;  %v1418_v49 = vsub.f32 %v4170_v55, %v1382_v22  ;;  %2348 = vpow2.f32 %v1467_v10  ;;  %v792_v63 = vmul.f32 1.442695, %v740_v53  ;;  %v2333_v59 = vpop.eup %2332 }
 0x194   : > { %v794_v9 = vmul.f32 1.442695, %v741_v31  ;;  %2350 = vpow2.f32 %v1469_v6  ;;  %867 = vadd.xlane.f32.xlu0 %v866_v58  ;;  %v2335_v40 = vpop.eup %2334  ;;  %1542 = vadd.xlane.f32.xlu1 %v1541_v16  ;;  %v3583_v10 = vmul.f32 %v2331_v20, %v4168_v27  ;;  %v1544_v53 = vadd.f32 %v3571_v24, %v3566_v0  ;;  %v4171_v31 = vld [vmem:[#allocation24_spill] sm:$0xff] }
 0x195   : > { %v1471_v18 = vmul.f32 1.442695, %v1417_v48  ;;  %v1473_v29 = vmul.f32 1.442695, %v1418_v49  ;;  %2352 = vpow2.f32 %v792_v63  ;;  %v707_v55 = vpop.xlane.xlu0 %706  ;;  %v3588_v23 = vmul.f32 %v2333_v59, %v4171_v31 }
 0x196   : > { %v1385_v22 = vpop.xlane.xlu1 %1384  ;;  %v2337_v6 = vpop.eup %2336  ;;  %2354 = vpow2.f32 %v794_v9  ;;  %v742_v49 = vsub.f32 %v3280_v62, %v707_v55  ;;  %v743_v4 = vsub.f32 %v3283_v41, %v707_v55  ;;  %v869_v27 = vadd.f32 %v3583_v10, %v3580_v47  ;;  %v4173_v55 = vld [vmem:[#allocation26_spill] sm:$0xff] }
 0x197   : > { %v1419_v5 = vsub.f32 %v3286_v57, %v1385_v22  ;;  %v2339_v48 = vpop.eup %2338  ;;  %2356 = vpow2.f32 %v1471_v18  ;;  %v1420_v58 = vsub.f32 %v3289_v54, %v1385_v22  ;;  %v3597_v20 = vmul.f32 %v2337_v6, %v4171_v31  ;;  %v4172_v57 = vld [vmem:[#allocation25_spill] sm:$0xff] }
 0x198   : > { %v2341_v63 = vpop.eup %2340  ;;  %2358 = vpow2.f32 %v1473_v29  ;;  %v796_v16 = vmul.f32 1.442695, %v742_v49  ;;  %v798_v9 = vmul.f32 1.442695, %v743_v4  ;;  %870 = vadd.xlane.f32.xlu0 %v869_v27  ;;  %1545 = vadd.xlane.f32.xlu1 %v1544_v53  ;;  %v3600_v18 = vmul.f32 %v2339_v48, %v4172_v57  ;;  %v4174_v49 = vld [vmem:[#allocation27_spill] sm:$0xff] }
 0x199   : > { %v1475_v59 = vmul.f32 1.442695, %v1419_v5  ;;  %v2343_v62 = vpop.eup %2342  ;;  %v1477_v0 = vmul.f32 1.442695, %v1420_v58  ;;  %v710_v41 = vpop.xlane.xlu0 %709  ;;  %v3603_v54 = vmul.f32 %v2335_v40, %v4172_v57  ;;  %v3606_v22 = vmul.f32 %v2341_v63, %v4173_v55 }
 0x19a   : > { %2360 = vpow2.f32 %v796_v16  ;;  %v744_v29 = vsub.f32 %v3300_v44, %v710_v41  ;;  %v745_v31 = vsub.f32 %v3303_v26, %v710_v41  ;;  %v1388_v6 = vpop.xlane.xlu1 %1387  ;;  %v3611_v4 = vmul.f32 %v2343_v62, %v4174_v49 }
 0x19b   : > { %v2345_v5 = vpop.eup %2344  ;;  %2362 = vpow2.f32 %v798_v9  ;;  %v1421_v53 = vsub.f32 %v3306_v11, %v1388_v6  ;;  %v1422_v48 = vsub.f32 %v3309_v13, %v1388_v6  ;;  %v872_v40 = vadd.f32 %v3600_v18, %v3597_v20 }
 0x19c   : > { %v2347_v58 = vpop.eup %2346  ;;  %2364 = vpow2.f32 %v1475_v59  ;;  %v800_v27 = vmul.f32 1.442695, %v744_v29  ;;  %v802_v63 = vmul.f32 1.442695, %v745_v31  ;;  %v1547_v44 = vadd.f32 %v3603_v54, %v3588_v23 }
 0x19d   : > { %v2349_v26 = vpop.eup %2348  ;;  %2366 = vpow2.f32 %v1477_v0  ;;  %v1479_v16 = vmul.f32 1.442695, %v1421_v53  ;;  %v1481_v62 = vmul.f32 1.442695, %v1422_v48  ;;  %v713_v41 = vpop.xlane.xlu0 %712  ;;  %873 = vadd.xlane.f32.xlu0 %v872_v40  ;;  %v3620_v11 = vmul.f32 %v2345_v5, %v4173_v55 }
 0x19e   : > { %v2351_v13 = vpop.eup %2350  ;;  %2368 = vpow2.f32 %v800_v27  ;;  %v746_v9 = vsub.f32 %v3314_v17, %v713_v41  ;;  %v747_v59 = vsub.f32 %v3317_v36, %v713_v41  ;;  %1548 = vadd.xlane.f32.xlu1 %v1547_v44  ;;  %v1391_v57 = vpop.xlane.xlu1 %1390  ;;  %v3625_v29 = vmul.f32 %v2347_v58, %v4174_v49  ;;  %v4175_v27 = vld [vmem:[#allocation28_spill] sm:$0xff]  ;;  %v4176_v41 = vld [vmem:[#allocation29_spill] sm:$0xff] }
 0x19f   : > { %v2353_v31 = vpop.eup %2352  ;;  %2370 = vpow2.f32 %v802_v63  ;;  %v1423_v0 = vsub.f32 %v3322_v19, %v1391_v57  ;;  %v1424_v6 = vsub.f32 %v3325_v43, %v1391_v57  ;;  %v1550_v55 = vadd.f32 %v3611_v4, %v3606_v22 }
 0x1a0   : > { %v2355_v5 = vpop.eup %2354  ;;  %2372 = vpow2.f32 %v1479_v16  ;;  %v804_v53 = vmul.f32 1.442695, %v746_v9  ;;  %v806_v17 = vmul.f32 1.442695, %v747_v59  ;;  %v875_v36 = vadd.f32 %v3625_v29, %v3620_v11 }
 0x1a1   : > { %v2357_v48 = vpop.eup %2356  ;;  %2374 = vpow2.f32 %v1481_v62  ;;  %v1483_v49 = vmul.f32 1.442695, %v1423_v0  ;;  %v1485_v40 = vmul.f32 1.442695, %v1424_v6  ;;  %v716_v58 = vpop.xlane.xlu0 %715  ;;  %v3634_v63 = vmul.f32 %v2353_v31, %v4175_v27 }
 0x1a2   : > { %v2359_v19 = vpop.eup %2358  ;;  %2376 = vpow2.f32 %v804_v53  ;;  %v748_v43 = vsub.f32 %v3338_v61, %v716_v58  ;;  %v749_v44 = vsub.f32 %v3341_v3, %v716_v58  ;;  %876 = vadd.xlane.f32.xlu0 %v875_v36  ;;  %1551 = vadd.xlane.f32.xlu1 %v1550_v55  ;;  %v1394_v16 = vpop.xlane.xlu1 %1393  ;;  %v3639_v9 = vmul.f32 %v2355_v5, %v4176_v41  ;;  %v4177_v36 = vld [vmem:[#allocation30_spill] sm:$0xff] }
 0x1a3   : > { %2378 = vpow2.f32 %v806_v17  ;;  %v1425_v62 = vsub.f32 %v3328_v42, %v1394_v16  ;;  %v1426_v59 = vsub.f32 %v3331_v1, %v1394_v16  ;;  %v3644_v57 = vmul.f32 %v2349_v26, %v4175_v27  ;;  %v4178_v27 = vld [vmem:[#allocation31_spill] sm:$0xff] }
 0x1a4   : > { %v2361_v31 = vpop.eup %2360  ;;  %2380 = vpow2.f32 %v1483_v49  ;;  %v808_v0 = vmul.f32 1.442695, %v748_v43  ;;  %v810_v61 = vmul.f32 1.442695, %v749_v44  ;;  %v878_v3 = vadd.f32 %v3639_v9, %v3634_v63 }
 0x1a5   : > { %v2363_v6 = vpop.eup %2362  ;;  %2382 = vpow2.f32 %v1485_v40  ;;  %v1487_v55 = vmul.f32 1.442695, %v1425_v62  ;;  %v1489_v5 = vmul.f32 1.442695, %v1426_v59  ;;  %v719_v53 = vpop.xlane.xlu0 %718  ;;  %v3649_v17 = vmul.f32 %v2351_v13, %v4176_v41  ;;  %v415_v59 = vld [vmem:[%s3947_s0 + $0x58] sm:$0xff] }
 0x1a6   : > { %v2365_v42 = vpop.eup %2364  ;;  %2384 = vpow2.f32 %v808_v0  ;;  %v750_v1 = vsub.f32 %v3348_v14, %v719_v53  ;;  %v751_v26 = vsub.f32 %v3351_v21, %v719_v53  ;;  %879 = vadd.xlane.f32.xlu0 %v878_v3  ;;  %v3654_v49 = vmul.f32 %v2361_v31, %v4177_v36  ;;  %v430_v14 = vld [vmem:[%s3947_s0 + $0xd0] sm:$0xff]  ;;  %v431_v21 = vld [vmem:[%s3947_s0 + $0xd8] sm:$0xff]  ;;  %v4182_v53 = vld [vmem:[#allocation33_spill] sm:$0xff] }
 0x1a7   : > { %v2367_v58 = vpop.eup %2366  ;;  %2386 = vpow2.f32 %v810_v61  ;;  %v1553_v40 = vadd.f32 %v3649_v17, %v3644_v57  ;;  %v3659_v43 = vmul.f32 %v2363_v6, %v4178_v27  ;;  %v3662_v13 = vmul.f32 %v2357_v48, %v4177_v36  ;;  %v414_v48 = vld [vmem:[%s3947_s0 + $0x50] sm:$0xff]  ;;  %v4180_v61 = vld [vmem:[#allocation32_spill] sm:$0xff]  ;;  %v433_v6 = vld [vmem:[%s3947_s0 + $0xe8] sm:$0xff] }
 0x1a8   : > { %v2369_v44 = vpop.eup %2368  ;;  %2388 = vpow2.f32 %v1487_v55  ;;  %v812_v16 = vmul.f32 1.442695, %v750_v1  ;;  %v814_v41 = vmul.f32 1.442695, %v751_v26  ;;  %v3671_v62 = vmul.f32 %v2359_v19, %v4178_v27  ;;  %v432_v19 = vld [vmem:[%s3947_s0 + $0xe0] sm:$0xff] }
 0x1a9   : > { %4179 = vst [vmem:[#allocation45_spill] sm:$0xff] %v3662_v13  ;;  %v2371_v31 = vpop.eup %2370  ;;  %2390 = vpow2.f32 %v1489_v5  ;;  %1554 = vadd.xlane.f32.xlu1 %v1553_v40  ;;  %v881_v0 = vadd.f32 %v3659_v43, %v3654_v49  ;;  %v3682_v3 = vmul.f32 %v2369_v44, %v4180_v61  ;;  %v3696_v26 = vmul.f32 %v2365_v42, %v4180_v61 }
 0x1aa   : > { %v2373_v55 = vpop.eup %2372  ;;  %2392 = vpow2.f32 %v812_v16  ;;  %v1556_v5 = vadd.f32 %v3671_v62, %v3662_v13  ;;  %v3693_v1 = vmul.f32 %v2371_v31, %v4182_v53  ;;  %v3699_v40 = vmul.f32 %v2367_v58, %v4182_v53  ;;  %v416_v16 = vld [vmem:[%s3947_s0 + $0x60] sm:$0xff]  ;;  %v417_v31 = vld [vmem:[%s3947_s0 + $0x68] sm:$0xff]  ;;  %v434_v58 = vld [vmem:[%s3947_s0 + $0xf0] sm:$0xff] }
 0x1ab   : > { %4181 = vst [vmem:[#allocation46_spill] sm:$0xff] %v3682_v3  ;;  %4184 = vst [vmem:[#allocation11_spill] sm:$0xff] %v3696_v26  ;;  %v2375_v36 = vpop.eup %2374  ;;  %2394 = vpow2.f32 %v814_v41  ;;  %882 = vadd.xlane.f32.xlu0 %v881_v0  ;;  %v2167_v27 = vpack.c.bf16 %v431_v21, %v430_v14  ;;  %v2169_v44 = vpack.c.bf16 %v415_v59, %v414_v48  ;;  %v435_v14 = vld [vmem:[%s3947_s0 + $0xf8] sm:$0xff]  ;;  %v4186_v41 = vld [vmem:[#allocation34_spill] sm:$0xff] }
 0x1ac   : > { %4183 = vst [vmem:[#allocation9_spill] sm:$0xff] %v3693_v1  ;;  %4185 = vst [vmem:[#allocation47_spill] sm:$0xff] %v3699_v40  ;;  %v2377_v13 = vpop.eup %2376  ;;  %v884_v42 = vadd.f32 %v3693_v1, %v3682_v3  ;;  %v2171_v61 = vpack.c.bf16 %v433_v6, %v432_v19  ;;  %v4188_v0 = vld [vmem:[#allocation35_spill] sm:$0xff]  ;;  %v3722_v19 = vmul.f32 %v2373_v55, %v4186_v41 }
 0x1ad   : > { %v2379_v21 = vpop.eup %2378  ;;  %1557 = vadd.xlane.f32.xlu1 %v1556_v5  ;;  %v3716_v48 = vmul.f32 %v2377_v13, %v4186_v41  ;;  %2168 = vmatprep.subr.bf16.mxu0 %v2167_v27  ;;  %v2173_v6 = vpack.c.bf16 %v417_v31, %v416_v16  ;;  %v1559_v1 = vadd.f32 %v3699_v40, %v3696_v26  ;;  %v419_v55 = vld [vmem:[%s3947_s0 + $0x78] sm:$0xff] }
 0x1ae   : > { %v2381_v59 = vpop.eup %2380  ;;  %v3719_v53 = vmul.f32 %v2379_v21, %v4188_v0  ;;  %2170 = vmatpush3.bf16.msra.mxu0 %v2169_v44  ;;  %2200 = vmatprep.subr.bf16.mxu1 %v2167_v27  ;;  %v3727_v5 = vmul.f32 %v2375_v36, %v4188_v0  ;;  %v2175_v13 = vpack.c.bf16 %v435_v14, %v434_v58  ;;  %v418_v21 = vld [vmem:[%s3947_s0 + $0x70] sm:$0xff]  ;;  %v4190_v14 = vld [vmem:[#allocation37_spill] sm:$0xff] }
 0x1af   : > { %4187 = vst [vmem:[#allocation48_spill] sm:$0xff] %v3716_v48  ;;  %v2383_v3 = vpop.eup %2382  ;;  %885 = vadd.xlane.f32.xlu0 %v884_v42  ;;  %2172 = vmatprep.subr.bf16.mxu0 %v2171_v61  ;;  %v4189_v42 = vld [vmem:[#allocation36_spill] sm:$0xff]  ;;  %v2177_v0 = vpack.c.bf16 %v419_v55, %v418_v21  ;;  %v4191_v21 = vld [vmem:[#allocation38_spill] sm:$0xff] }
 0x1b0   : > { %v2385_v16 = vpop.eup %2384  ;;  %v887_v27 = vadd.f32 %v3719_v53, %v3716_v48  ;;  %2202 = vmatpush3.bf16.msra.mxu1 %v2169_v44  ;;  %v1562_v40 = vadd.f32 %v3727_v5, %v3722_v19  ;;  %v3746_v48 = vmul.f32 %v2381_v59, %v4189_v42 }
 0x1b1   : > { %v2387_v31 = vpop.eup %2386  ;;  %1560 = vadd.xlane.f32.xlu1 %v1559_v1  ;;  %v3738_v36 = vmul.f32 %v2385_v16, %v4189_v42  ;;  %2204 = vmatprep.subr.bf16.mxu1 %v2171_v61  ;;  %v3749_v1 = vmul.f32 %v2383_v3, %v4190_v14 }
 0x1b2   : > { %v2389_v58 = vpop.eup %2388  ;;  %v3741_v41 = vmul.f32 %v2387_v31, %v4190_v14  ;;  %2174 = vmatpush3.bf16.msra.mxu0 %v2173_v6 }
 0x1b3   : > { %v2391_v26 = vpop.eup %2390  ;;  %888 = vadd.xlane.f32.xlu0 %v887_v27  ;;  %2176 = vmatprep.subr.bf16.mxu0 %v2175_v13  ;;  %v4192_v27 = vld [vmem:[#allocation39_spill] sm:$0xff]  ;;  %v1565_v3 = vadd.f32 %v3749_v1, %v3746_v48  ;;  %v3762_v59 = vmul.f32 %v2389_v58, %v4191_v21 }
 0x1b4   : > { %v2393_v44 = vpop.eup %2392  ;;  %v890_v61 = vadd.f32 %v3741_v41, %v3738_v36  ;;  %2206 = vmatpush3.bf16.msra.mxu1 %v2173_v6  ;;  %v3765_v42 = vmul.f32 %v2391_v26, %v4192_v27 }
 0x1b5   : > { %v2395_v16 = vpop.eup %2394  ;;  %1563 = vadd.xlane.f32.xlu1 %v1562_v40  ;;  %v3754_v55 = vmul.f32 %v2393_v44, %v4191_v21  ;;  %2208 = vmatprep.subr.bf16.mxu1 %v2175_v13  ;;  %4193 = vst [vmem:[#allocation49_spill] sm:$0xff] %v3762_v59 }
 0x1b6   : > { %v3757_v31 = vmul.f32 %v2395_v16, %v4192_v27  ;;  %2178 = vmatpush3.bf16.msra.mxu0 %v2177_v0  ;;  %v1568_v6 = vadd.f32 %v3765_v42, %v3762_v59 }
 0x1b7   : > { %891 = vadd.xlane.f32.xlu0 %v890_v61 }
 0x1b8   : > { %v893_v40 = vadd.f32 %v3757_v31, %v3754_v55  ;;  %2210 = vmatpush3.bf16.msra.mxu1 %v2177_v0 }
 0x1b9   : > { %1566 = vadd.xlane.f32.xlu1 %v1565_v3 }
 0x1bb   : > { %894 = vadd.xlane.f32.xlu0 %v893_v40 }
 0x1bd   : > { %1569 = vadd.xlane.f32.xlu1 %v1568_v6 }
 0x1fc   : > { %v850_v13 = vpop.xlane.xlu0 %849 }
 0x1fd   : > { %v896_v14 = vmax.f32 %v850_v13, 1e-30 }
 0x1ff   : > { %2396 = vrcp.f32 %v896_v14 }
 0x202   : > { %v1525_v44 = vpop.xlane.xlu1 %1524 }
 0x203   : > { %v1571_v61 = vmax.f32 %v1525_v44, 1e-30 }
 0x205   : > { %2398 = vrcp.f32 %v1571_v61 }
 0x206   : > { %v853_v58 = vpop.xlane.xlu0 %852  ;;  %v1528_v16 = vpop.xlane.xlu1 %1527 }
 0x207   : > { %v897_v26 = vmax.f32 %v853_v58, 1e-30  ;;  %v1572_v21 = vmax.f32 %v1528_v16, 1e-30 }
 0x209   : > { %v2397_v27 = vpop.eup %2396  ;;  %2400 = vrcp.f32 %v897_v26 }
 0x20a   : > { %v929_v0 = vmul.f32 %v2397_v27, %v3419_v33  ;;  %v928_v3 = vmul.f32 %v2397_v27, %v3416_v37  ;;  %2402 = vrcp.f32 %v1572_v21  ;;  %v1531_v40 = vpop.xlane.xlu1 %1530 }
 0x20b   : > { %v856_v59 = vpop.xlane.xlu0 %855  ;;  %v1573_v6 = vmax.f32 %v1531_v40, 1e-30 }
 0x20c   : > { %1024 = vmatprep.mubr.f32.mxu0 %v929_v0  ;;  %v898_v13 = vmax.f32 %v856_v59, 1e-30 }
 0x20d   : > { %1025 = vmatmul.mubr.f32.vlgmr.msra.gmra.mrb[0].mxu0 %v928_v3  ;;  %2404 = vrcp.f32 %v1573_v6 }
 0x20e   : > { %2406 = vrcp.f32 %v898_v13 }
 0x20f   : > { %v2399_v14 = vpop.eup %2398 }
 0x210   : > { %v1534_v44 = vpop.xlane.xlu1 %1533  ;;  %v1604_v16 = vmul.f32 %v2399_v14, %v3439_v38  ;;  %v1603_v26 = vmul.f32 %v2399_v14, %v3436_v60 }
 0x211   : > { %v859_v61 = vpop.xlane.xlu0 %858  ;;  %v1574_v58 = vmax.f32 %v1534_v44, 1e-30 }
 0x212   : > { %v899_v33 = vmax.f32 %v859_v61, 1e-30  ;;  %1699 = vmatprep.mubr.f32.mxu1 %v1604_v16 }
 0x213   : > { %2408 = vrcp.f32 %v1574_v58  ;;  %v2401_v37 = vpop.eup %2400  ;;  %1700 = vmatmul.mubr.f32.vlgmr.msra.gmra.mrb[0].mxu1 %v1603_v26 }
 0x214   : > { %2410 = vrcp.f32 %v899_v33  ;;  %v1537_v21 = vpop.xlane.xlu1 %1536  ;;  %v2403_v27 = vpop.eup %2402  ;;  %v931_v0 = vmul.f32 %v2401_v37, %v3453_v28  ;;  %v930_v3 = vmul.f32 %v2401_v37, %v3448_v30 }
 0x215   : > { %v1575_v59 = vmax.f32 %v1537_v21, 1e-30  ;;  %v1606_v40 = vmul.f32 %v2403_v27, %v3431_v32  ;;  %v1605_v6 = vmul.f32 %v2403_v27, %v3428_v51 }
 0x216   : > { %1029 = vmatprep.mubr.f32.mxu0 %v931_v0 }
 0x217   : > { %v862_v38 = vpop.xlane.xlu0 %861  ;;  %2412 = vrcp.f32 %v1575_v59  ;;  %v2405_v60 = vpop.eup %2404  ;;  %1704 = vmatprep.mubr.f32.mxu1 %v1606_v40  ;;  %1030 = vmatmul.mubr.f32.gmra.mrb[2].mxu0 %v930_v3 }
 0x218   : > { %v900_v13 = vmax.f32 %v862_v38, 1e-30  ;;  %v2407_v14 = vpop.eup %2406  ;;  %1705 = vmatmul.mubr.f32.gmra.mrb[2].mxu1 %v1605_v6  ;;  %v1608_v44 = vmul.f32 %v2405_v60, %v3461_v39  ;;  %v1607_v61 = vmul.f32 %v2405_v60, %v3456_v15  ;;  %v4195_v6 = vld [vmem:[#allocation41_spill] sm:$0xff] }
 0x219   : > { %v933_v30 = vmul.f32 %v2407_v14, %v3471_v52  ;;  %v932_v32 = vmul.f32 %v2407_v14, %v3464_v2  ;;  %v4194_v52 = vld [vmem:[#allocation40_spill] sm:$0xff] }
 0x21a   : > { %2414 = vrcp.f32 %v900_v13  ;;  %v1540_v28 = vpop.xlane.xlu1 %1539  ;;  %1709 = vmatprep.mubr.f32.mxu1 %v1608_v44  ;;  %v4196_v13 = vld [vmem:[#allocation42_spill] sm:$0xff] }
 0x21b   : > { %v1576_v51 = vmax.f32 %v1540_v28, 1e-30  ;;  %1034 = vmatprep.mubr.f32.mxu0 %v933_v30 }
 0x21c   : > { %v865_v58 = vpop.xlane.xlu0 %864  ;;  %1035 = vmatmul.mubr.f32.gmra.mrb[4].mxu0 %v932_v32  ;;  %1710 = vmatmul.mubr.f32.gmra.mrb[4].mxu1 %v1607_v61 }
 0x21d   : > { %v2409_v16 = vpop.eup %2408  ;;  %v901_v26 = vmax.f32 %v865_v58, 1e-30  ;;  %2416 = vrcp.f32 %v1576_v51 }
 0x21e   : > { %v2411_v33 = vpop.eup %2410  ;;  %v1610_v39 = vmul.f32 %v2409_v16, %v3481_v12  ;;  %v1609_v15 = vmul.f32 %v2409_v16, %v3478_v45 }
 0x21f   : > { %2418 = vrcp.f32 %v901_v26  ;;  %v935_v37 = vmul.f32 %v2411_v33, %v3491_v56  ;;  %v934_v21 = vmul.f32 %v2411_v33, %v4194_v52  ;;  %v4197_v26 = vld [vmem:[#allocation44_spill] sm:$0xff]  ;;  %v4198_v33 = vld [vmem:[#allocation43_spill] sm:$0xff] }
 0x220   : > { %1714 = vmatprep.mubr.f32.mxu1 %v1610_v39 }
 0x221   : > { %v868_v2 = vpop.xlane.xlu0 %867  ;;  %v2413_v27 = vpop.eup %2412  ;;  %1039 = vmatprep.mubr.f32.mxu0 %v935_v37  ;;  %1715 = vmatmul.mubr.f32.gmra.mrb[6].mxu1 %v1609_v15 }
 0x222   : > { %v902_v59 = vmax.f32 %v868_v2, 1e-30  ;;  %v1543_v0 = vpop.xlane.xlu1 %1542  ;;  %1040 = vmatmul.mubr.f32.gmra.mrb[6].mxu0 %v934_v21  ;;  %v1612_v40 = vmul.f32 %v2413_v27, %v3501_v46  ;;  %v1611_v12 = vmul.f32 %v2413_v27, %v4195_v6 }
 0x223   : > { %v1577_v3 = vmax.f32 %v1543_v0, 1e-30 }
 0x224   : > { %2420 = vrcp.f32 %v902_v59  ;;  %v2415_v45 = vpop.eup %2414  ;;  %1719 = vmatprep.mubr.f32.mxu1 %v1612_v40 }
 0x225   : > { %2422 = vrcp.f32 %v1577_v3  ;;  %v871_v56 = vpop.xlane.xlu0 %870  ;;  %v937_v60 = vmul.f32 %v2415_v45, %v3519_v35  ;;  %v936_v14 = vmul.f32 %v2415_v45, %v4196_v13  ;;  %1720 = vmatmul.mubr.f32.gmra.mrb[8].mxu1 %v1611_v12  ;;  %v4199_v3 = vld [vmem:[#allocation8_spill] sm:$0xff] }
 0x226   : > { %v1546_v38 = vpop.xlane.xlu1 %1545  ;;  %v903_v44 = vmax.f32 %v871_v56, 1e-30 }
 0x227   : > { %v1578_v61 = vmax.f32 %v1546_v38, 1e-30  ;;  %v2417_v28 = vpop.eup %2416  ;;  %1044 = vmatprep.mubr.f32.mxu0 %v937_v60  ;;  %v4200_v60 = vld [vmem:[#allocation10_spill] sm:$0xff] }
 0x228   : > { %2424 = vrcp.f32 %v903_v44  ;;  %1045 = vmatmul.mubr.f32.gmra.mrb[8].mxu0 %v936_v14  ;;  %v1614_v46 = vmul.f32 %v2417_v28, %v3527_v8  ;;  %v1613_v30 = vmul.f32 %v2417_v28, %v3522_v7 }
 0x229   : > { %v2419_v32 = vpop.eup %2418  ;;  %2426 = vrcp.f32 %v1578_v61 }
 0x22a   : > { %v874_v51 = vpop.xlane.xlu0 %873  ;;  %v939_v35 = vmul.f32 %v2419_v32, %v4197_v26  ;;  %1724 = vmatprep.mubr.f32.mxu1 %v1614_v46  ;;  %v938_v39 = vmul.f32 %v2419_v32, %v4198_v33 }
 0x22b   : > { %v904_v58 = vmax.f32 %v874_v51, 1e-30  ;;  %v1549_v16 = vpop.xlane.xlu1 %1548  ;;  %1725 = vmatmul.mubr.f32.gmra.mrb[10].mxu1 %v1613_v30 }
 0x22c   : > { %v1579_v15 = vmax.f32 %v1549_v16, 1e-30  ;;  %1049 = vmatprep.mubr.f32.mxu0 %v939_v35 }
 0x22d   : > { %2428 = vrcp.f32 %v904_v58  ;;  %1050 = vmatmul.mubr.f32.gmra.mrb[10].mxu0 %v938_v39 }
 0x22e   : > { %v2421_v37 = vpop.eup %2420  ;;  %2430 = vrcp.f32 %v1579_v15 }
 0x22f   : > { %v2423_v8 = vpop.eup %2422  ;;  %v877_v52 = vpop.xlane.xlu0 %876  ;;  %v941_v21 = vmul.f32 %v2421_v37, %v3560_v25  ;;  %v940_v2 = vmul.f32 %v2421_v37, %v3557_v50 }
 0x230   : > { %v1552_v7 = vpop.xlane.xlu1 %1551  ;;  %v905_v27 = vmax.f32 %v877_v52, 1e-30  ;;  %v1616_v0 = vmul.f32 %v2423_v8, %v3563_v34  ;;  %v1615_v40 = vmul.f32 %v2423_v8, %v4199_v3 }
 0x231   : > { %v1580_v59 = vmax.f32 %v1552_v7, 1e-30  ;;  %1054 = vmatprep.mubr.f32.mxu0 %v941_v21 }
 0x232   : > { %2432 = vrcp.f32 %v905_v27  ;;  %1729 = vmatprep.mubr.f32.mxu1 %v1616_v0  ;;  %1055 = vmatmul.mubr.f32.gmra.mrb[12].mxu0 %v940_v2  ;;  %v2425_v6 = vpop.eup %2424 }
 0x233   : > { %2434 = vrcp.f32 %v1580_v59  ;;  %v880_v12 = vpop.xlane.xlu0 %879  ;;  %1730 = vmatmul.mubr.f32.gmra.mrb[12].mxu1 %v1615_v40  ;;  %v2427_v45 = vpop.eup %2426  ;;  %v943_v25 = vmul.f32 %v2425_v6, %v3583_v10  ;;  %v942_v50 = vmul.f32 %v2425_v6, %v3580_v47 }
 0x234   : > { %v906_v56 = vmax.f32 %v880_v12, 1e-30  ;;  %v1618_v38 = vmul.f32 %v2427_v45, %v3571_v24  ;;  %v1617_v34 = vmul.f32 %v2427_v45, %v4200_v60  ;;  %v4201_v12 = vld [vmem:[#allocation45_spill] sm:$0xff] }
 0x235   : > { %1059 = vmatprep.mubr.f32.mxu0 %v943_v25 }
 0x236   : > { %2436 = vrcp.f32 %v906_v56  ;;  %v1555_v13 = vpop.xlane.xlu1 %1554  ;;  %1734 = vmatprep.mubr.f32.mxu1 %v1618_v38  ;;  %1060 = vmatmul.mubr.f32.gmra.mrb[14].mxu0 %v942_v50  ;;  %v4202_v50 = vld [vmem:[#allocation9_spill] sm:$0xff]  ;;  %v4203_v38 = vld [vmem:[#allocation46_spill] sm:$0xff] }
 0x237   : > { %v2429_v14 = vpop.eup %2428  ;;  %v1581_v44 = vmax.f32 %v1555_v13, 1e-30  ;;  %1735 = vmatmul.mubr.f32.gmra.mrb[14].mxu1 %v1617_v34  ;;  %v4204_v13 = vld [vmem:[#allocation47_spill] sm:$0xff] }
 0x238   : > { %v2431_v61 = vpop.eup %2430  ;;  %v883_v28 = vpop.xlane.xlu0 %882  ;;  %v945_v46 = vmul.f32 %v2429_v14, %v3600_v18  ;;  %v944_v10 = vmul.f32 %v2429_v14, %v3597_v20 }
 0x239   : > { %2438 = vrcp.f32 %v1581_v44  ;;  %v907_v47 = vmax.f32 %v883_v28, 1e-30  ;;  %v1620_v24 = vmul.f32 %v2431_v61, %v3603_v54  ;;  %v1619_v30 = vmul.f32 %v2431_v61, %v3588_v23 }
 0x23a   : > { %v1558_v32 = vpop.xlane.xlu1 %1557  ;;  %1064 = vmatprep.mubr.f32.mxu0 %v945_v46  ;;  %v4206_v46 = vld [vmem:[#allocation48_spill] sm:$0xff] }
 0x23b   : > { %2440 = vrcp.f32 %v907_v47  ;;  %v1582_v51 = vmax.f32 %v1558_v32, 1e-30  ;;  %1739 = vmatprep.mubr.f32.mxu1 %v1620_v24  ;;  %1065 = vmatmul.mubr.f32.gmra.mrb[16].mxu0 %v944_v10 }
 0x23c   : > { %v2433_v58 = vpop.eup %2432  ;;  %v886_v16 = vpop.xlane.xlu0 %885  ;;  %1740 = vmatmul.mubr.f32.gmra.mrb[16].mxu1 %v1619_v30 }
 0x23d   : > { %v2435_v26 = vpop.eup %2434  ;;  %2442 = vrcp.f32 %v1582_v51  ;;  %v908_v18 = vmax.f32 %v886_v16, 1e-30  ;;  %v947_v20 = vmul.f32 %v2433_v58, %v3625_v29  ;;  %v946_v35 = vmul.f32 %v2433_v58, %v3620_v11 }
 0x23e   : > { %v1561_v33 = vpop.xlane.xlu1 %1560  ;;  %v1622_v54 = vmul.f32 %v2435_v26, %v3611_v4  ;;  %v1621_v23 = vmul.f32 %v2435_v26, %v3606_v22 }
 0x23f   : > { %2444 = vrcp.f32 %v908_v18  ;;  %v1583_v39 = vmax.f32 %v1561_v33, 1e-30  ;;  %1069 = vmatprep.mubr.f32.mxu0 %v947_v20 }
 0x240   : > { %v2437_v15 = vpop.eup %2436  ;;  %v889_v37 = vpop.xlane.xlu0 %888  ;;  %1744 = vmatprep.mubr.f32.mxu1 %v1622_v54  ;;  %1070 = vmatmul.mubr.f32.gmra.mrb[18].mxu0 %v946_v35 }
 0x241   : > { %2446 = vrcp.f32 %v1583_v39  ;;  %v909_v8 = vmax.f32 %v889_v37, 1e-30  ;;  %1745 = vmatmul.mubr.f32.gmra.mrb[18].mxu1 %v1621_v23  ;;  %v949_v52 = vmul.f32 %v2437_v15, %v3639_v9  ;;  %v948_v29 = vmul.f32 %v2437_v15, %v3634_v63  ;;  %v3843_v23 = vld [vmem:[%s3949_s2 + $0x1] ss:$0 sm:$0xff] }
 0x242   : > { %v1564_v11 = vpop.xlane.xlu1 %1563 }
 0x243   : > { %v2439_v7 = vpop.eup %2438  ;;  %2448 = vrcp.f32 %v909_v8  ;;  %v1584_v4 = vmax.f32 %v1564_v11, 1e-30  ;;  %1074 = vmatprep.mubr.f32.mxu0 %v949_v52 }
 0x244   : > { %v892_v22 = vpop.xlane.xlu0 %891  ;;  %v1624_v21 = vmul.f32 %v2439_v7, %v3649_v17  ;;  %1075 = vmatmul.mubr.f32.gmra.mrb[20].mxu0 %v948_v29  ;;  %v1623_v2 = vmul.f32 %v2439_v7, %v3644_v57 }
 0x245   : > { %v2441_v27 = vpop.eup %2440  ;;  %2450 = vrcp.f32 %v1584_v4  ;;  %v910_v59 = vmax.f32 %v892_v22, 1e-30 }
 0x246   : > { %1749 = vmatprep.mubr.f32.mxu1 %v1624_v21  ;;  %v1567_v0 = vpop.xlane.xlu1 %1566  ;;  %v951_v9 = vmul.f32 %v2441_v27, %v3659_v43  ;;  %v950_v63 = vmul.f32 %v2441_v27, %v3654_v49 }
 0x247   : > { %v2443_v3 = vpop.eup %2442  ;;  %2452 = vrcp.f32 %v910_v59  ;;  %v1585_v40 = vmax.f32 %v1567_v0, 1e-30  ;;  %1750 = vmatmul.mubr.f32.gmra.mrb[20].mxu1 %v1623_v2 }
 0x248   : > { %1079 = vmatprep.mubr.f32.mxu0 %v951_v9  ;;  %v895_v6 = vpop.xlane.xlu0 %894  ;;  %v1626_v17 = vmul.f32 %v2443_v3, %v3671_v62  ;;  %v1625_v45 = vmul.f32 %v2443_v3, %v4201_v12  ;;  %v4205_v62 = vld [vmem:[#allocation11_spill] sm:$0xff] }
 0x249   : > { %v2445_v57 = vpop.eup %2444  ;;  %2454 = vrcp.f32 %v1585_v40  ;;  %v911_v56 = vmax.f32 %v895_v6, 1e-30  ;;  %1080 = vmatmul.mubr.f32.gmra.mrb[22].mxu0 %v950_v63 }
 0x24a   : > { %1754 = vmatprep.mubr.f32.mxu1 %v1626_v17  ;;  %v1570_v25 = vpop.xlane.xlu1 %1569  ;;  %v953_v43 = vmul.f32 %v2445_v57, %v4202_v50  ;;  %v952_v49 = vmul.f32 %v2445_v57, %v4203_v38 }
 0x24b   : > { %v2447_v60 = vpop.eup %2446  ;;  %2456 = vrcp.f32 %v911_v56  ;;  %v1586_v34 = vmax.f32 %v1570_v25, 1e-30  ;;  %1755 = vmatmul.mubr.f32.gmra.mrb[22].mxu1 %v1625_v45 }
 0x24c   : > { %1084 = vmatprep.mubr.f32.mxu0 %v953_v43  ;;  %v1628_v14 = vmul.f32 %v2447_v60, %v4204_v13  ;;  %v1627_v44 = vmul.f32 %v2447_v60, %v4205_v62 }
 0x24d   : > { %v2449_v61 = vpop.eup %2448  ;;  %2458 = vrcp.f32 %v1586_v34  ;;  %1085 = vmatmul.mubr.f32.gmra.mrb[24].mxu0 %v952_v49 }
 0x24e   : > { %1759 = vmatprep.mubr.f32.mxu1 %v1628_v14  ;;  %v955_v28 = vmul.f32 %v2449_v61, %v3719_v53  ;;  %v954_v10 = vmul.f32 %v2449_v61, %v4206_v46 }
 0x24f   : > { %v2451_v47 = vpop.eup %2450  ;;  %1760 = vmatmul.mubr.f32.gmra.mrb[24].mxu1 %v1627_v44 }
 0x250   : > { %1089 = vmatprep.mubr.f32.mxu0 %v955_v28  ;;  %v1630_v24 = vmul.f32 %v2451_v47, %v3727_v5  ;;  %v1629_v30 = vmul.f32 %v2451_v47, %v3722_v19 }
 0x251   : > { %v2453_v32 = vpop.eup %2452  ;;  %1090 = vmatmul.mubr.f32.gmra.mrb[26].mxu0 %v954_v10 }
 0x252   : > { %1764 = vmatprep.mubr.f32.mxu1 %v1630_v24  ;;  %v957_v51 = vmul.f32 %v2453_v32, %v3741_v41  ;;  %v956_v58 = vmul.f32 %v2453_v32, %v3738_v36  ;;  %v4207_v41 = vld [vmem:[#allocation49_spill] sm:$0xff] }
 0x253   : > { %v2455_v16 = vpop.eup %2454  ;;  %1765 = vmatmul.mubr.f32.gmra.mrb[26].mxu1 %v1629_v30 }
 0x254   : > { %1094 = vmatprep.mubr.f32.mxu0 %v957_v51  ;;  %v1632_v53 = vmul.f32 %v2455_v16, %v3749_v1  ;;  %v1631_v26 = vmul.f32 %v2455_v16, %v3746_v48 }
 0x255   : > { %v2457_v18 = vpop.eup %2456  ;;  %1095 = vmatmul.mubr.f32.gmra.mrb[28].mxu0 %v956_v58 }
 0x256   : > { %1769 = vmatprep.mubr.f32.mxu1 %v1632_v53  ;;  %v959_v5 = vmul.f32 %v2457_v18, %v3757_v31  ;;  %v958_v19 = vmul.f32 %v2457_v18, %v3754_v55  ;;  %v3838_v31 = vld [vmem:[%s3949_s2] ss:$0 sm:$0xff] }
 0x257   : > { %v2459_v20 = vpop.eup %2458  ;;  %1770 = vmatmul.mubr.f32.gmra.mrb[28].mxu1 %v1631_v26 }
 0x258   : > { %1099 = vmatprep.mubr.f32.mxu0 %v959_v5  ;;  %v1634_v36 = vmul.f32 %v2459_v20, %v3765_v42  ;;  %v1633_v35 = vmul.f32 %v2459_v20, %v4207_v41 }
 0x259   : > { %1100 = vmatmul.mubr.f32.gmra.mrb[30].mxu0 %v958_v19 }
 0x25a   : > { %1774 = vmatprep.mubr.f32.mxu1 %v1634_v36 }
 0x25b   : > { %1775 = vmatmul.mubr.f32.gmra.mrb[30].mxu1 %v1633_v35 }
 0x2e0   : > { %v2019_v1 = vpop.f32.mrb[0].mxu0 }
 0x2e1   : > { %v2020_v48 = vpop.f32.mrb[1].mxu0 }
 0x2e2   : > { %v2021_v33 = vadd.f32 %v2020_v48, %v2019_v1 }
 0x2e4   : > { %v1110_v39 = vmul.f32 %v2021_v33, %v3838_v31 }
 0x2e6   : > { %v2099_v54 = vpop.f32.mrb[0].mxu1 }
 0x2e7   : > { %v2100_v55 = vpop.f32.mrb[1].mxu1 }
 0x2e8   : > { %v2101_v42 = vadd.f32 %v2100_v55, %v2099_v54 }
 0x2ea   : > { %v1785_v15 = vmul.f32 %v2101_v42, %v3843_v23  ;;  %v2022_v37 = vpop.f32.mrb[2].mxu0 }
 0x2eb   : > { %v2102_v8 = vpop.f32.mrb[2].mxu1  ;;  %v2023_v52 = vpop.f32.mrb[3].mxu0 }
 0x2ec   : > { %v1801_v29 = vadd.f32 %v1785_v15, %v1110_v39  ;;  %v2024_v11 = vadd.f32 %v2023_v52, %v2022_v37  ;;  %v2103_v7 = vpop.f32.mrb[3].mxu1 }
 0x2ed   : > { %v2104_v4 = vadd.f32 %v2103_v7, %v2102_v8 }
 0x2ee   : > { %1817 = vst [vmem:[%s3848_s16] sm:$0xff] %v1801_v29  ;;  %v1111_v22 = vmul.f32 %v2024_v11, %v3838_v31 }
 0x2ef   : > { %v1786_v21 = vmul.f32 %v2104_v4, %v3843_v23  ;;  %v2025_v2 = vpop.f32.mrb[4].mxu0  ;;  %v2105_v27 = vpop.f32.mrb[4].mxu1 }
 0x2f0   : > { %v2026_v59 = vpop.f32.mrb[5].mxu0  ;;  %v2106_v0 = vpop.f32.mrb[5].mxu1 }
 0x2f1   : > { %v1802_v9 = vadd.f32 %v1786_v21, %v1111_v22  ;;  %v2027_v63 = vadd.f32 %v2026_v59, %v2025_v2  ;;  %v2107_v3 = vadd.f32 %v2106_v0, %v2105_v27 }
 0x2f3   : > { %1818 = vst [vmem:[%s3848_s16 + $0x8] sm:$0xff] %v1802_v9  ;;  %v1112_v40 = vmul.f32 %v2027_v63, %v3838_v31  ;;  %v1787_v6 = vmul.f32 %v2107_v3, %v3843_v23 }
 0x2f4   : > { %v2108_v17 = vpop.f32.mrb[6].mxu1 }
 0x2f5   : > { %v2028_v12 = vpop.f32.mrb[6].mxu0  ;;  %v2109_v45 = vpop.f32.mrb[7].mxu1  ;;  %v1803_v57 = vadd.f32 %v1787_v6, %v1112_v40 }
 0x2f6   : > { %v2029_v56 = vpop.f32.mrb[7].mxu0  ;;  %v2110_v25 = vadd.f32 %v2109_v45, %v2108_v17 }
 0x2f7   : > { %v2030_v50 = vadd.f32 %v2029_v56, %v2028_v12  ;;  %1819 = vst [vmem:[%s3848_s16 + $0x10] sm:$0xff] %v1803_v57 }
 0x2f8   : > { %v1788_v43 = vmul.f32 %v2110_v25, %v3843_v23  ;;  %v2111_v38 = vpop.f32.mrb[8].mxu1 }
 0x2f9   : > { %v1113_v49 = vmul.f32 %v2030_v50, %v3838_v31  ;;  %v2112_v60 = vpop.f32.mrb[9].mxu1 }
 0x2fa   : > { %v2113_v34 = vadd.f32 %v2112_v60, %v2111_v38 }
 0x2fb   : > { %v1804_v13 = vadd.f32 %v1788_v43, %v1113_v49  ;;  %v2031_v14 = vpop.f32.mrb[8].mxu0 }
 0x2fc   : > { %v2032_v62 = vpop.f32.mrb[9].mxu0  ;;  %v1789_v61 = vmul.f32 %v2113_v34, %v3843_v23 }
 0x2fd   : > { %1820 = vst [vmem:[%s3848_s16 + $0x18] sm:$0xff] %v1804_v13  ;;  %v2033_v44 = vadd.f32 %v2032_v62, %v2031_v14 }
 0x2fe   : > { %v2114_v28 = vpop.f32.mrb[10].mxu1 }
 0x2ff   : > { %v1114_v46 = vmul.f32 %v2033_v44, %v3838_v31  ;;  %v2115_v10 = vpop.f32.mrb[11].mxu1 }
 0x300   : > { %v2034_v47 = vpop.f32.mrb[10].mxu0  ;;  %v2116_v24 = vadd.f32 %v2115_v10, %v2114_v28 }
 0x301   : > { %v1805_v30 = vadd.f32 %v1789_v61, %v1114_v46  ;;  %v2035_v32 = vpop.f32.mrb[11].mxu0 }
 0x302   : > { %v2036_v51 = vadd.f32 %v2035_v32, %v2034_v47  ;;  %v1790_v58 = vmul.f32 %v2116_v24, %v3843_v23 }
 0x303   : > { %1821 = vst [vmem:[%s3848_s16 + $0x20] sm:$0xff] %v1805_v30 }
 0x304   : > { %v1115_v16 = vmul.f32 %v2036_v51, %v3838_v31 }
 0x305   : > { %v2037_v53 = vpop.f32.mrb[12].mxu0 }
 0x306   : > { %v2117_v26 = vpop.f32.mrb[12].mxu1  ;;  %v2038_v18 = vpop.f32.mrb[13].mxu0  ;;  %v1806_v5 = vadd.f32 %v1790_v58, %v1115_v16 }
 0x307   : > { %v2039_v19 = vadd.f32 %v2038_v18, %v2037_v53  ;;  %v2118_v20 = vpop.f32.mrb[13].mxu1 }
 0x308   : > { %v2119_v36 = vadd.f32 %v2118_v20, %v2117_v26  ;;  %1822 = vst [vmem:[%s3848_s16 + $0x28] sm:$0xff] %v1806_v5 }
 0x309   : > { %v1116_v41 = vmul.f32 %v2039_v19, %v3838_v31  ;;  %v2040_v1 = vpop.f32.mrb[14].mxu0 }
 0x30a   : > { %v1791_v35 = vmul.f32 %v2119_v36, %v3843_v23  ;;  %v2120_v48 = vpop.f32.mrb[14].mxu1  ;;  %v2041_v33 = vpop.f32.mrb[15].mxu0 }
 0x30b   : > { %v2042_v55 = vadd.f32 %v2041_v33, %v2040_v1  ;;  %v2121_v42 = vpop.f32.mrb[15].mxu1 }
 0x30c   : > { %v1807_v54 = vadd.f32 %v1791_v35, %v1116_v41  ;;  %v2122_v39 = vadd.f32 %v2121_v42, %v2120_v48 }
 0x30d   : > { %v1117_v15 = vmul.f32 %v2042_v55, %v3838_v31 }
 0x30e   : > { %1823 = vst [vmem:[%s3848_s16 + $0x30] sm:$0xff] %v1807_v54  ;;  %v2043_v37 = vpop.f32.mrb[16].mxu0  ;;  %v1792_v8 = vmul.f32 %v2122_v39, %v3843_v23 }
 0x30f   : > { %v2123_v52 = vpop.f32.mrb[16].mxu1  ;;  %v2044_v29 = vpop.f32.mrb[17].mxu0 }
 0x310   : > { %v2045_v11 = vadd.f32 %v2044_v29, %v2043_v37  ;;  %v2124_v7 = vpop.f32.mrb[17].mxu1  ;;  %v1808_v4 = vadd.f32 %v1792_v8, %v1117_v15 }
 0x311   : > { %v2125_v22 = vadd.f32 %v2124_v7, %v2123_v52 }
 0x312   : > { %v1118_v21 = vmul.f32 %v2045_v11, %v3838_v31  ;;  %1824 = vst [vmem:[%s3848_s16 + $0x38] sm:$0xff] %v1808_v4 }
 0x313   : > { %v1793_v2 = vmul.f32 %v2125_v22, %v3843_v23  ;;  %v2046_v27 = vpop.f32.mrb[18].mxu0 }
 0x314   : > { %v2126_v59 = vpop.f32.mrb[18].mxu1  ;;  %v2047_v0 = vpop.f32.mrb[19].mxu0 }
 0x315   : > { %v1809_v9 = vadd.f32 %v1793_v2, %v1118_v21  ;;  %v2048_v63 = vadd.f32 %v2047_v0, %v2046_v27  ;;  %v2127_v3 = vpop.f32.mrb[19].mxu1 }
 0x316   : > { %v2128_v40 = vadd.f32 %v2127_v3, %v2126_v59 }
 0x317   : > { %1825 = vst [vmem:[%s3848_s16 + $0x40] sm:$0xff] %v1809_v9  ;;  %v1119_v6 = vmul.f32 %v2048_v63, %v3838_v31  ;;  %v2049_v17 = vpop.f32.mrb[20].mxu0 }
 0x318   : > { %v1794_v12 = vmul.f32 %v2128_v40, %v3843_v23  ;;  %v2050_v45 = vpop.f32.mrb[21].mxu0 }
 0x319   : > { %v2051_v57 = vadd.f32 %v2050_v45, %v2049_v17 }
 0x31a   : > { %v1810_v56 = vadd.f32 %v1794_v12, %v1119_v6  ;;  %v2129_v25 = vpop.f32.mrb[20].mxu1 }
 0x31b   : > { %v2130_v50 = vpop.f32.mrb[21].mxu1  ;;  %v1120_v43 = vmul.f32 %v2051_v57, %v3838_v31 }
 0x31c   : > { %1826 = vst [vmem:[%s3848_s16 + $0x48] sm:$0xff] %v1810_v56  ;;  %v2131_v38 = vadd.f32 %v2130_v50, %v2129_v25  ;;  %v2052_v49 = vpop.f32.mrb[22].mxu0 }
 0x31d   : > { %v2053_v60 = vpop.f32.mrb[23].mxu0 }
 0x31e   : > { %v1795_v34 = vmul.f32 %v2131_v38, %v3843_v23  ;;  %v2132_v13 = vpop.f32.mrb[22].mxu1  ;;  %v2054_v14 = vadd.f32 %v2053_v60, %v2052_v49 }
 0x31f   : > { %v2133_v62 = vpop.f32.mrb[23].mxu1 }
 0x320   : > { %v1811_v44 = vadd.f32 %v1795_v34, %v1120_v43  ;;  %v1121_v61 = vmul.f32 %v2054_v14, %v3838_v31  ;;  %v2134_v28 = vadd.f32 %v2133_v62, %v2132_v13  ;;  %v2055_v46 = vpop.f32.mrb[24].mxu0 }
 0x321   : > { %v2056_v10 = vpop.f32.mrb[25].mxu0 }
 0x322   : > { %1827 = vst [vmem:[%s3848_s16 + $0x50] sm:$0xff] %v1811_v44  ;;  %v1796_v47 = vmul.f32 %v2134_v28, %v3843_v23  ;;  %v2135_v24 = vpop.f32.mrb[24].mxu1  ;;  %v2057_v30 = vadd.f32 %v2056_v10, %v2055_v46 }
 0x323   : > { %v2136_v32 = vpop.f32.mrb[25].mxu1 }
 0x324   : > { %v1812_v51 = vadd.f32 %v1796_v47, %v1121_v61  ;;  %v1122_v58 = vmul.f32 %v2057_v30, %v3838_v31  ;;  %v2137_v16 = vadd.f32 %v2136_v32, %v2135_v24  ;;  %v2058_v53 = vpop.f32.mrb[26].mxu0 }
 0x325   : > { %v2059_v26 = vpop.f32.mrb[27].mxu0 }
 0x326   : > { %1828 = vst [vmem:[%s3848_s16 + $0x58] sm:$0xff] %v1812_v51  ;;  %v1797_v18 = vmul.f32 %v2137_v16, %v3843_v23  ;;  %v2138_v5 = vpop.f32.mrb[26].mxu1  ;;  %v2060_v19 = vadd.f32 %v2059_v26, %v2058_v53 }
 0x327   : > { %v2139_v20 = vpop.f32.mrb[27].mxu1 }
 0x328   : > { %v1813_v36 = vadd.f32 %v1797_v18, %v1122_v58  ;;  %v1123_v41 = vmul.f32 %v2060_v19, %v3838_v31  ;;  %v2140_v35 = vadd.f32 %v2139_v20, %v2138_v5  ;;  %v2061_v1 = vpop.f32.mrb[28].mxu0 }
 0x329   : > { %v2062_v48 = vpop.f32.mrb[29].mxu0 }
 0x32a   : > { %1829 = vst [vmem:[%s3848_s16 + $0x60] sm:$0xff] %v1813_v36  ;;  %v1798_v33 = vmul.f32 %v2140_v35, %v3843_v23  ;;  %v2141_v54 = vpop.f32.mrb[28].mxu1  ;;  %v2063_v55 = vadd.f32 %v2062_v48, %v2061_v1 }
 0x32b   : > { %v2142_v42 = vpop.f32.mrb[29].mxu1 }
 0x32c   : > { %v1814_v39 = vadd.f32 %v1798_v33, %v1123_v41  ;;  %v1124_v15 = vmul.f32 %v2063_v55, %v3838_v31  ;;  %v2143_v37 = vadd.f32 %v2142_v42, %v2141_v54  ;;  %v2064_v8 = vpop.f32.mrb[30].mxu0 }
 0x32d   : > { %v2065_v52 = vpop.f32.mrb[31].mxu0 }
 0x32e   : > { %1830 = vst [vmem:[%s3848_s16 + $0x68] sm:$0xff] %v1814_v39  ;;  %v1799_v29 = vmul.f32 %v2143_v37, %v3843_v23  ;;  %v2144_v11 = vpop.f32.mrb[30].mxu1  ;;  %v2066_v7 = vadd.f32 %v2065_v52, %v2064_v8 }
 0x32f   : > { %v2145_v4 = vpop.f32.mrb[31].mxu1 }
 0x330   : > { %v1815_v22 = vadd.f32 %v1799_v29, %v1124_v15  ;;  %v1125_v21 = vmul.f32 %v2066_v7, %v3838_v31  ;;  %v2146_v2 = vadd.f32 %v2145_v4, %v2144_v11 }
 0x332   : > { %1831 = vst [vmem:[%s3848_s16 + $0x70] sm:$0xff] %v1815_v22  ;;  %v1800_v27 = vmul.f32 %v2146_v2, %v3843_v23 }
 0x334   : > { %v1816_v59 = vadd.f32 %v1800_v27, %v1125_v21 }
 0x336   : > { %1832 = vst [vmem:[%s3848_s16 + $0x78] sm:$0xff] %v1816_v59 }
 0x337   : > { %2503 = shalt.err (!%p2500_p4)
}
 0x338   : > { %s2504_s26 = scalar_lea.hbm %s3900_s10, 2048  ;;  %s2508_s14 = scalar_lea.hbm %s3952_s5, 4096 }
 0x339   : > { %p2505_p5 = scmp.ne.s32.totalorder %s3900_s10, %s2504_s26  ;;  %p2509_p1 = scmp.lt.u32.totalorder %s3900_s10, %s3952_s5 }
 0x33a   : > { %p2510_p3 = scmp.lt.u32.totalorder %s2508_s14, %s2504_s26  ;;  %p2512_p6 = scmp.lt.u32.totalorder %s2504_s26, %s3900_s10 }
 0x33b   : > { %p2506_p7 = pnand %p2505_p5, %p4208_p12 }
 0x33c   : > { %p2511_p11 = por %p2510_p3, %p2509_p1 }
 0x33d   : > { %p2507_p9 = pneg %p2506_p7 }
 0x33e   : > { %p2513_p13 = por %p2512_p6, %p2511_p11 }
 0x340   : > { %p2514_p8 = pnand %p2513_p13, %p2507_p9 }
 0x342   : > { %2517 = shalt.err (!%p2514_p8)
}
 0x343   : > { %s2564_s8 = smov 128   ;;  %s2565_s7 = smov 8  }
 0x344   : > { %2213 = dma.vmem_to_hbm [thread:$0]  (%p4208_p12), %s3902_s29, 2048, %s3900_s10, %s1834_s11, %s2564_s8, %s2564_s8, %s2565_s7  }
 0x345 PF: > { %s1862_s9 = sand.u32 1, %s2544_s18   ;;  %p4209_p10 = scmp.ne.s32.totalorder %s4061_s6, 0 }
 0x346   : > { %p4210_p0 = scmp.ge.s32.totalorder %s2556_s21, 2  ;;  %s1863_s13 = scalar_lea.sflag [#allocation4], %s1862_s9 }
 0x348   : > { %p2220_p2 = pnand %p4210_p0, %p4209_p10 }
 0x34a   : > { %2539 = dma.done.wait (!%p2220_p2), %s1863_s13, 2048  }
 0x34b   : > { %2541 = vsyncadd (!%p2220_p2), %s1863_s13, 4294965248  ;;  %p18_p4 = scmp.ge.s32.totalorder %s2621_s24, 4   ;;  %s4211_s18 = smov %s2548_s19 }
 0x34c   : > { %s4212_s19 = smov %s2552_s20  ;;  %s4213_s20 = smov %s2633_s27 }
 0x34d   : > { %s4214_s21 = smov %s2621_s24  ;;  %20 = sbr.rel (!%p18_p4) target bundleno = 5 (0x5), region = 89 }
 0x354   :  { %1868 = vsyncpa [#allocation3], 1 }
 0x355   :  { %1870 = vsyncpa [#allocation3 + $0x1], 1 }
 0x356   :  { %1871 = vsyncpa [#allocation4], 1 }
 0x357   :  { %1873 = vsyncpa [#allocation4 + $0x1], 1 }

// kernel: tpu_custom_call.1
= control target key start
LH: loop header
LB: loop body
LE: loop exit
PB: predicated region body
PF: predicated region fallthrough
CT: control target
= control target key end

     0   :  { %10 = vsyncpa [#allocation3], 0  ;;  %s3947_s0 = inlined_call_operand.vmem [shape: f32[256,128], index: 0, kind: input, shape index: {}]   ;;  %s3948_s1 = inlined_call_operand.vmem [shape: f32[2,256], index: 1, kind: input, shape index: {}]   ;;  %s3949_s2 = inlined_call_operand.vmem [shape: f32[2,128], index: 2, kind: input, shape index: {}]   ;;  %s3950_s3 = inlined_call_operand.vmem [shape: f32[256,2], index: 3, kind: input, shape index: {}]   ;;  %s3951_s4 = inlined_call_operand.hbm [shape: s8[256,256], index: 4, kind: input, shape index: {}]   ;;  %s3952_s5 = inlined_call_operand.hbm [shape: f32[256,128], index: 5, kind: output, shape index: {}]  }
   0x1   :  { %12 = vsyncpa [#allocation3 + $0x1], 0 }
   0x2   :  { %13 = vsyncpa [#allocation4], 0 }
   0x3   :  { %15 = vsyncpa [#allocation4 + $0x1], 0  ;;  %s2596_s18 = smov 0   ;;  %s2598_s19 = smov 0  }
   0x4   :  { %s2600_s20 = smov 0   ;;  %s2602_s21 = smov 0  }
   0x5 LB: > { %s2617_s22 = sadd.s32 4294967295, %s2556_s21   ;;  %s1932_s23 = sadd.s32 4294967294, %s2556_s21   ;;  %s2556_s21 = sphi %s2602_s21, %s4214_s21   ;;  %s2552_s20 = sphi %s2600_s20, %s4213_s20   ;;  %s2548_s19 = sphi %s2598_s19, %s4212_s19   ;;  %s2544_s18 = sphi %s2596_s18, %s4211_s18  }
   0x6   : > { %s2621_s24 = sadd.s32 1, %s2556_s21   ;;  %s117_s25 = sadd.s32 1, %s2552_s20 }
   0x7   : > { %s114_s26 = ssub.s32 %s2556_s21, %s2621_s24  ;;  %p124_p0 = scmp.ne.s32.totalorder %s2552_s20, %s2548_s19 }
   0x8   : > { %p115_p1 = scmp.eq.s32.totalorder %s114_s26, 0  ;;  %p125_p2 = scmp.eq.s32.totalorder %s2556_s21, 0 }
   0x9   : > { %p130_p3 = scmp.ne.s32.totalorder %s2548_s19, %s2544_s18  ;;  %p131_p4 = scmp.eq.s32.totalorder %s2617_s22, 0 }
   0xa   : > { %s2633_s27 = scalar_select %p115_p1, %s2552_s20, %s117_s25  }
   0xb   : > { %p2635_p5 = por %p125_p2, %p124_p0  ;;  %p2639_p6 = por %p131_p4, %p130_p3 }
   0xc   : > { %p154_p7 = scmp.eq.s32.totalorder %s2617_s22, 1  ;;  %p160_p8 = scmp.eq.s32.totalorder %s1932_s23, 1 }
   0xd   : > { %p2223_p10 = scmp.lt.s32.totalorder %s2556_s21, 2  ;;  %s198_s7 = sand.u32 1, %s2552_s20  }
   0xe   : > { %p2646_p11 = por %p154_p7, %p124_p0  ;;  %p2650_p12 = por %p160_p8, %p130_p3 }
   0xf   : > { %s1985_s8 = sshll.u32 %s2556_s21, 10  ;;  %s1935_s9 = sshll.u32 %s198_s7, 6 }
  0x10   : > { %s4060_s30 = scalar_select %p2646_p11, 1, 0 }
  0x11   : > { %s4061_s6 = scalar_select %p2650_p12, 1, 0 }
  0x12   : > { %s2659_s12 = scalar_lea.hbm %s3951_s4, %s1985_s8  ;;  %s202_s13 = scalar_lea.vmem [#allocation2], %s1935_s9 }
  0x13   : > { %s210_s14 = sshll.u32 %s202_s13, 4  ;;  %p2663_p13 = pnand %p2223_p10, %p2635_p5  ;;  %s2667_s14 = int_to_ptr.vmem [resolvable:$true] %s210_s14 }
  0x14   : > { %s2669_s16 = scalar_lea.sflag [#allocation3], %s198_s7  ;;  %s2460_s17 = scalar_lea.hbm %s2659_s12, 1024 }
  0x15   : > { %p2461_p0 = scmp.ne.s32.totalorder %s2659_s12, %s2460_s17  ;;  %p2462_p1 = pneg %p2663_p13 }
  0x16   : > { %s2465_s26 = scalar_lea.hbm %s3951_s4, 2048  ;;  %p2466_p4 = scmp.lt.u32.totalorder %s2659_s12, %s3951_s4 }
  0x17   : > { %p2463_p2 = pnand %p2462_p1, %p2461_p0  ;;  %p2467_p5 = scmp.lt.u32.totalorder %s2465_s26, %s2460_s17 }
  0x18   : > { %p2469_p8 = scmp.lt.u32.totalorder %s2460_s17, %s2659_s12 }
  0x19   : > { %p2464_p3 = pneg %p2463_p2  ;;  %p2468_p7 = por %p2467_p5, %p2466_p4 }
  0x1b   : > { %p2470_p10 = por %p2469_p8, %p2468_p7 }
  0x1d   : > { %p2471_p9 = pnand %p2470_p10, %p2464_p3 }
  0x1f   : > { %2474 = shalt.err (!%p2471_p9)
}
  0x20   : > { %s2475_s7 = scalar_lea.vmem %s2667_s14, 1024  ;;  %s2558_s9 = smov [#allocation2]  }
  0x21   : > { %p2476_p0 = scmp.ne.s32.totalorder %s2667_s14, %s2475_s7  ;;  %s2480_s10 = sshll.u32 %s2558_s9, 4  ;;  %s2481_s10 = int_to_ptr.vmem [resolvable:$false] %s2480_s10 }
  0x22   : > { %s2482_s11 = scalar_lea.vmem %s2481_s10, 2048  ;;  %p2483_p11 = scmp.lt.s32.totalorder %s2667_s14, %s2481_s10 }
  0x23   : > { %p2478_p2 = pnand %p2476_p0, %p2462_p1  ;;  %p2484_p4 = scmp.lt.s32.totalorder %s2482_s11, %s2475_s7 }
  0x25   : > { %p2479_p12 = pneg %p2478_p2  ;;  %p2485_p5 = por %p2484_p4, %p2483_p11 }
  0x27   : > { %p2486_p7 = pnand %p2485_p5, %p2479_p12 }
  0x29   : > { %2489 = shalt.err (!%p2486_p7)
}
  0x2a   : > { %s2559_s13 = smov 256   ;;  %s2560_s17 = smov 16  }
  0x2b   : > { %2218 = dma.hbm_to_vmem [thread:$0]  (!%p2663_p13), %s2659_s12, 1024, %s2667_s14, %s2669_s16, %s2559_s13, %s2559_s13, %s2560_s17  }
  0x2c   : > { %p1939_p9 = scmp.ge.s32.totalorder %s2556_s21, 1  ;;  %p218_p1 = scmp.lt.s32.totalorder %s2556_s21, 3 }
  0x2e   : > { %p219_p3 = pnand %p1939_p9, %p218_p1 }
  0x30   : > { %222 = sbr.rel (%p219_p3) target bundleno = 837 (0x345), region = 40 }
  0x37   : > { %s2700_s23 = sand.u32 1, %s2548_s19  }
  0x38   : > { %s1940_s25 = sshll.u32 %s2700_s23, 6  ;;  %s225_s26 = scalar_lea.sflag [#allocation3], %s2700_s23 }
  0x39   : > { %s2704_s28 = scalar_lea.vmem [#allocation2], %s1940_s25 }
  0x3a   : > { %2535 = dma.done.wait (%p2639_p6), %s225_s26, 1024  }
  0x3b   : > { %2537 = vsyncadd (%p2639_p6), %s225_s26, 4294966272  ;;  %s1942_s12 = sshll.u32 %s2617_s22, 4  ;;  %v2561_v0 = vmov 0   ;;  %v2562_v3 = vmov 1   ;;  %v268_v18 = vld [vmem:[%s2704_s28] sm:$0xff]  ;;  %v534_v19 = vlaneseq  ;;  %v269_v21 = vld [vmem:[%s2704_s28 + $0x8] sm:$0xff] }
  0x3c   : > { %2265 = vset.pattern.permute.xlu1 %v2561_v0  ;;  %2263 = vset.pattern.permute.xlu0 %v2561_v0  ;;  %p261_p11 = scmp.lt.s32.totalorder %s1942_s12, 31  ;;  %v276_v20 = vunpack.c.0.s8 %v268_v18  ;;  %v278_v22 = vunpack.c.1.s8 %v268_v18  ;;  %v270_v24 = vld [vmem:[%s2704_s28 + $0x10] sm:$0xff]  ;;  %v277_v25 = vunpack.c.0.s8 %v269_v21  ;;  %v279_v27 = vunpack.c.1.s8 %v269_v21  ;;  %v271_v29 = vld [vmem:[%s2704_s28 + $0x18] sm:$0xff]  ;;  %v2746_v37 = vld [vmem:[%s3948_s1] ss:$2 sm:$0x3] }
  0x3d   : > { %v2734_v23 = vshrl.u32 %v534_v19, 7  ;;  %v280_v28 = vunpack.c.2.s8 %v268_v18  ;;  %v281_v30 = vunpack.c.2.s8 %v269_v21  ;;  %v282_v32 = vunpack.c.3.s8 %v268_v18  ;;  %v272_v62 = vld [vmem:[%s2704_s28 + $0x20] sm:$0xff]  ;;  %s1941_s15 = sshll.u32 %s2700_s23, 7  ;;  %s1834_s11 = scalar_lea.sflag [#allocation4], %s2700_s23 }
  0x3e   : > { %s4216_s12 = smov (!%p261_p11, %s1942_s12), 31  ;;  %v2737_v26 = vcvt.s32.f32 %v276_v20  ;;  %v2740_v31 = vcvt.s32.f32 %v278_v22  ;;  %v283_v33 = vunpack.c.3.s8 %v269_v21  ;;  %v284_v34 = vunpack.c.0.s8 %v270_v24  ;;  %s3848_s16 = scalar_lea.vmem [#allocation5], %s1941_s15 }
  0x3f   : > { %s1943_s14 = sshll.u32 %s4216_s12, 3  ;;  %v3954_v35 = vsub.s32 0, %v2734_v23  ;;  %v285_v36 = vunpack.c.0.s8 %v271_v29  ;;  %v2748_v38 = vcvt.s32.f32 %v277_v25  ;;  %v2751_v40 = vcvt.s32.f32 %v279_v27  ;;  %v274_v25 = vld [vmem:[%s2704_s28 + $0x30] sm:$0xff]  ;;  %s1847_s29 = sshll.u32 %s3848_s16, 4  ;;  %s3902_s29 = int_to_ptr.vmem [resolvable:$true] %s1847_s29 }
  0x40   : > { %s2714_s8 = scalar_lea.vmem %s3950_s3, %s1943_s14  ;;  %4063 = vst [vmem:[#allocation8_spill] sm:$0xff] %v2737_v26  ;;  %4064 = vst [vmem:[#allocation9_spill] sm:$0xff] %v2740_v31  ;;  %v1944_v39 = vadd.f32 -1.0, %v2737_v26  ;;  %v2753_v41 = vcvt.s32.f32 %v280_v28  ;;  %v2756_v43 = vcvt.s32.f32 %v281_v30  ;;  %v286_v44 = vunpack.c.1.s8 %v270_v24  ;;  %s2490_s13 = scalar_lea.vmem %s3902_s29, 2048 }
  0x41   : > { %v437_v1 = vld [vmem:[%s2714_s8 + $0x8] sm:$0xff]  ;;  %v436_v2 = vld [vmem:[%s2714_s8] sm:$0xff]  ;;  %v438_v4 = vld [vmem:[%s2714_s8 + $0x10] sm:$0xff]  ;;  %4065 = vst [vmem:[#allocation10_spill] sm:$0xff] %v2748_v38  ;;  %v287_v45 = vunpack.c.1.s8 %v271_v29  ;;  %v1946_v46 = vadd.f32 -1.0, %v2740_v31  ;;  %v2759_v47 = vcvt.s32.f32 %v282_v32  ;;  %v2761_v48 = vcvt.s32.f32 %v283_v33  ;;  %p2491_p6 = scmp.ne.s32.totalorder %s3902_s29, %s2490_s13  ;;  %p4208_p12 = scmp.ne.s32.totalorder %s4060_s30, 0 }
  0x42   : > { %460 = vperm.xlu1 %2265, %v437_v1   ;;  %455 = vperm.xlu0 %2263, %v436_v2   ;;  %v439_v5 = vld [vmem:[%s2714_s8 + $0x18] sm:$0xff]  ;;  %v440_v6 = vld [vmem:[%s2714_s8 + $0x20] sm:$0xff]  ;;  %v441_v7 = vld [vmem:[%s2714_s8 + $0x28] sm:$0xff]  ;;  %4066 = vst [vmem:[#allocation11_spill] sm:$0xff] %v2751_v40  ;;  %v2763_v49 = vcvt.s32.f32 %v284_v34  ;;  %v2768_v50 = vrot.slane %v2746_v37, %v3954_v35  ;;  %v2770_v51 = vcvt.s32.f32 %v285_v36  ;;  %v288_v52 = vunpack.c.2.s8 %v270_v24 }
  0x43   : > { %v442_v8 = vld [vmem:[%s2714_s8 + $0x30] sm:$0xff]  ;;  %v443_v9 = vld [vmem:[%s2714_s8 + $0x38] sm:$0xff]  ;;  %v444_v10 = vld [vmem:[%s2714_s8 + $0x40] sm:$0xff]  ;;  %4067 = vst [vmem:[#allocation12_spill] sm:$0xff] %v2753_v41  ;;  %v289_v53 = vunpack.c.2.s8 %v271_v29  ;;  %v1945_v54 = vadd.f32 -1.0, %v2748_v38  ;;  %v1947_v56 = vadd.f32 -1.0, %v2751_v40  ;;  %v2778_v59 = vcvt.s32.f32 %v286_v44  ;;  %p2492_p13 = pnand %p2491_p6, %p4208_p12 }
  0x44   : > { %v445_v11 = vld [vmem:[%s2714_s8 + $0x48] sm:$0xff]  ;;  %v446_v12 = vld [vmem:[%s2714_s8 + $0x50] sm:$0xff]  ;;  %v447_v13 = vld [vmem:[%s2714_s8 + $0x58] sm:$0xff]  ;;  %4068 = vst [vmem:[#allocation13_spill] sm:$0xff] %v2756_v43  ;;  %v2773_v55 = vmul.f32 1e+30, %v1944_v39  ;;  %v2780_v60 = vcvt.s32.f32 %v287_v45  ;;  %v290_v61 = vunpack.c.3.s8 %v270_v24  ;;  %v294_v28 = vunpack.c.1.s8 %v272_v62 }
  0x45   : > { %v448_v14 = vld [vmem:[%s2714_s8 + $0x60] sm:$0xff]  ;;  %v449_v15 = vld [vmem:[%s2714_s8 + $0x68] sm:$0xff]  ;;  %v450_v16 = vld [vmem:[%s2714_s8 + $0x70] sm:$0xff]  ;;  %4069 = vst [vmem:[#allocation14_spill] sm:$0xff] %v2759_v47  ;;  %v1948_v57 = vadd.f32 -1.0, %v2753_v41  ;;  %v1949_v58 = vadd.f32 -1.0, %v2756_v43  ;;  %v296_v30 = vunpack.c.2.s8 %v272_v62  ;;  %v298_v45 = vunpack.c.3.s8 %v272_v62  ;;  %p2493_p8 = pneg %p2492_p13 }
  0x46   : > { %2266 = vset.pattern.permute.xlu1 %v2562_v3  ;;  %2264 = vset.pattern.permute.xlu0 %v2562_v3  ;;  %v451_v17 = vld [vmem:[%s2714_s8 + $0x78] sm:$0xff]  ;;  %4070 = vst [vmem:[#allocation15_spill] sm:$0xff] %v2761_v48  ;;  %4071 = vst [vmem:[#allocation16_spill] sm:$0xff] %v2763_v49  ;;  %v2783_v63 = vmul.f32 1e+30, %v1946_v46  ;;  %v1953_v3 = vadd.f32 -1.0, %v2770_v51 }
  0x47   : > { %1149 = vperm.xlu1 %2266, %v437_v1   ;;  %1145 = vperm.xlu0 %2264, %v436_v2   ;;  %4072 = vst [vmem:[#allocation17_spill] sm:$0xff] %v2770_v51  ;;  %4073 = vst [vmem:[#allocation18_spill] sm:$0xff] %v2778_v59  ;;  %v1951_v1 = vadd.f32 -1.0, %v2761_v48  ;;  %v1952_v2 = vadd.f32 -1.0, %v2763_v49  ;;  %v2822_v32 = vld [vmem:[%s2704_s28 + $0x38] sm:$0xff]  ;;  %s1986_s8 = sshll.u32 %s2617_s22, 11 }
  0x48   : > { %4074 = vst [vmem:[#allocation19_spill] sm:$0xff] %v2780_v60  ;;  %v2812_v20 = vmul.f32 1e+30, %v1953_v3  ;;  %v302_v3 = vunpack.c.1.s8 %v274_v25  ;;  %s3900_s10 = scalar_lea.hbm %s3952_s5, %s1986_s8  ;;  %s2563_s22 = smov [#allocation5]  }
  0x49   : > { %v2810_v18 = vmul.f32 1e+30, %v1952_v2  ;;  %s2494_s17 = sshll.u32 %s2563_s22, 4  ;;  %s2495_s17 = int_to_ptr.vmem [resolvable:$false] %s2494_s17 }
  0x4a   : > { %s2496_s25 = scalar_lea.vmem %s2495_s17, 4096  ;;  %p2497_p10 = scmp.lt.s32.totalorder %s3902_s29, %s2495_s17 }
  0x4b   : > { %2267 = vset.pattern.permute.xlu1 %v2561_v0  ;;  %1153 = vperm.xlu0 %2264, %v438_v4   ;;  %v1950_v0 = vadd.f32 -1.0, %v2759_v47  ;;  %p2498_p0 = scmp.lt.s32.totalorder %s2496_s25, %s2490_s13 }
  0x4c   : > { %465 = vperm.xlu1 %2267, %v438_v4   ;;  %v2789_v4 = vcvt.s32.f32 %v288_v52  ;;  %v300_v52 = vunpack.c.0.s8 %v274_v25 }
  0x4d   : > { %p2499_p2 = por %p2498_p0, %p2497_p10 }
  0x4e   : > { %4075 = vst [vmem:[#allocation20_spill] sm:$0xff] %v2789_v4  ;;  %v1956_v21 = vadd.f32 -1.0, %v2789_v4 }
  0x4f   : > { %1157 = vperm.xlu0 %2264, %v439_v5   ;;  %p2500_p4 = pnand %p2499_p2, %p2493_p8 }
  0x50   : > { %470 = vperm.xlu1 %2267, %v439_v5   ;;  %v2791_v5 = vcvt.s32.f32 %v289_v53  ;;  %v2831_v53 = vmul.f32 1e+30, %v1956_v21 }
  0x52   : > { %4076 = vst [vmem:[#allocation21_spill] sm:$0xff] %v2791_v5  ;;  %v1957_v22 = vadd.f32 -1.0, %v2791_v5 }
  0x53   : > { %1161 = vperm.xlu0 %2264, %v440_v6  }
  0x54   : > { %475 = vperm.xlu1 %2267, %v440_v6   ;;  %v291_v6 = vunpack.c.3.s8 %v271_v29 }
  0x56   : > { %v2816_v24 = vcvt.s32.f32 %v291_v6  ;;  %v303_v6 = vunpack.c.1.s8 %v2822_v32 }
  0x57   : > { %1165 = vperm.xlu0 %2264, %v441_v7  }
  0x58   : > { %480 = vperm.xlu1 %2267, %v441_v7   ;;  %v273_v7 = vld [vmem:[%s2704_s28 + $0x28] sm:$0xff]  ;;  %4078 = vst [vmem:[#allocation23_spill] sm:$0xff] %v2816_v24 }
  0x59   : > { %v293_v19 = vunpack.c.0.s8 %v273_v7  ;;  %v295_v29 = vunpack.c.1.s8 %v273_v7  ;;  %v297_v39 = vunpack.c.2.s8 %v273_v7  ;;  %v299_v46 = vunpack.c.3.s8 %v273_v7 }
  0x5b   : > { %1169 = vperm.xlu0 %2264, %v442_v8   ;;  %v2829_v44 = vcvt.s32.f32 %v293_v19 }
  0x5c   : > { %485 = vperm.xlu1 %2267, %v442_v8   ;;  %v2794_v8 = vmul.f32 1e+30, %v1945_v54  ;;  %v2833_v54 = vmul.f32 1e+30, %v1957_v22  ;;  %v304_v22 = vunpack.c.2.s8 %v274_v25 }
  0x5d   : > { %4080 = vst [vmem:[#allocation25_spill] sm:$0xff] %v2829_v44  ;;  %v1961_v7 = vadd.f32 -1.0, %v2829_v44 }
  0x5f   : > { %1173 = vperm.xlu0 %2264, %v443_v9  }
  0x60   : > { %490 = vperm.xlu1 %2267, %v443_v9   ;;  %v2796_v9 = vmul.f32 1e+30, %v1947_v56  ;;  %v1959_v56 = vadd.f32 -1.0, %v2816_v24 }
  0x62   : > { %v2856_v19 = vmul.f32 1e+30, %v1959_v56  ;;  %v306_v56 = vunpack.c.3.s8 %v274_v25  ;;  %v307_v25 = vunpack.c.3.s8 %v2822_v32 }
  0x63   : > { %1177 = vperm.xlu0 %2264, %v444_v10  }
  0x64   : > { %495 = vperm.xlu1 %2267, %v444_v10   ;;  %v2798_v10 = vmul.f32 1e+30, %v1948_v57  ;;  %v301_v57 = vunpack.c.0.s8 %v2822_v32 }
  0x66   : > { %v2858_v21 = vcvt.s32.f32 %v301_v57  ;;  %v2871_v57 = vmul.f32 1e+30, %v1961_v7 }
  0x67   : > { %1181 = vperm.xlu0 %2264, %v445_v11  }
  0x68   : > { %500 = vperm.xlu1 %2267, %v445_v11   ;;  %v292_v11 = vunpack.c.0.s8 %v272_v62  ;;  %v2846_v62 = vcvt.s32.f32 %v297_v39  ;;  %4088 = vst [vmem:[#allocation33_spill] sm:$0xff] %v2858_v21 }
  0x6a   : > { %v2819_v27 = vcvt.s32.f32 %v292_v11  ;;  %4084 = vst [vmem:[#allocation29_spill] sm:$0xff] %v2846_v62  ;;  %v2850_v11 = vcvt.s32.f32 %v298_v45  ;;  %v1965_v45 = vadd.f32 -1.0, %v2846_v62  ;;  %v2880_v62 = vcvt.s32.f32 %v304_v22 }
  0x6b   : > { %1185 = vperm.xlu0 %2264, %v446_v12  }
  0x6c   : > { %505 = vperm.xlu1 %2267, %v446_v12   ;;  %v2800_v12 = vmul.f32 1e+30, %v1949_v58  ;;  %4079 = vst [vmem:[#allocation24_spill] sm:$0xff] %v2819_v27  ;;  %v1960_v58 = vadd.f32 -1.0, %v2819_v27  ;;  %4085 = vst [vmem:[#allocation30_spill] sm:$0xff] %v2850_v11  ;;  %v1966_v35 = vadd.f32 -1.0, %v2850_v11 }
  0x6d   : > { %4091 = vst [vmem:[#allocation36_spill] sm:$0xff] %v2880_v62 }
  0x6f   : > { %1189 = vperm.xlu0 %2264, %v447_v13  }
  0x70   : > { %510 = vperm.xlu1 %2267, %v447_v13   ;;  %v1954_v13 = vadd.f32 -1.0, %v2778_v59 }
  0x72   : > { %v2824_v33 = vmul.f32 1e+30, %v1954_v13  ;;  %v2852_v13 = vcvt.s32.f32 %v299_v46  ;;  %v2867_v46 = vcvt.s32.f32 %v302_v3 }
  0x73   : > { %1193 = vperm.xlu0 %2264, %v448_v14  }
  0x74   : > { %515 = vperm.xlu1 %2267, %v448_v14   ;;  %v1955_v14 = vadd.f32 -1.0, %v2780_v60  ;;  %4086 = vst [vmem:[#allocation31_spill] sm:$0xff] %v2852_v13  ;;  %4089 = vst [vmem:[#allocation34_spill] sm:$0xff] %v2867_v46  ;;  %v1970_v22 = vadd.f32 -1.0, %v2867_v46  ;;  %v1972_v46 = vadd.f32 -1.0, %v2880_v62 }
  0x76   : > { %v2826_v34 = vmul.f32 1e+30, %v1955_v14  ;;  %v2854_v14 = vcvt.s32.f32 %v300_v52  ;;  %v2869_v52 = vcvt.s32.f32 %v303_v6  ;;  %v4093_v6 = vsub.s32 1, %v2734_v23 }
  0x77   : > { %1197 = vperm.xlu0 %2264, %v449_v15   ;;  %v2931_v60 = vmul.f32 1e+30, %v1972_v46 }
  0x78   : > { %520 = vperm.xlu1 %2267, %v449_v15   ;;  %v2804_v15 = vcvt.s32.f32 %v290_v61  ;;  %v2838_v61 = vcvt.s32.f32 %v294_v28  ;;  %4087 = vst [vmem:[#allocation32_spill] sm:$0xff] %v2854_v14  ;;  %v305_v28 = vunpack.c.2.s8 %v2822_v32  ;;  %4090 = vst [vmem:[#allocation35_spill] sm:$0xff] %v2869_v52  ;;  %v1968_v42 = vadd.f32 -1.0, %v2854_v14 }
  0x79   : > { %v2888_v7 = vrot.slane %v2746_v37, %v4093_v6  ;;  %v4095_v32 = vsub.s32 0, %v2734_v23  ;;  %v2906_v37 = vmul.f32 1e+30, %v1966_v35 }
  0x7a   : > { %4077 = vst [vmem:[#allocation22_spill] sm:$0xff] %v2804_v15  ;;  %v1958_v36 = vadd.f32 -1.0, %v2804_v15  ;;  %4081 = vst [vmem:[#allocation26_spill] sm:$0xff] %v2838_v61  ;;  %v2882_v3 = vcvt.s32.f32 %v305_v28  ;;  %v1971_v28 = vadd.f32 -1.0, %v2869_v52 }
  0x7b   : > { %1201 = vperm.xlu0 %2264, %v450_v16  }
  0x7c   : > { %525 = vperm.xlu1 %2267, %v450_v16   ;;  %v2806_v16 = vmul.f32 1e+30, %v1950_v0  ;;  %v2840_v0 = vcvt.s32.f32 %v295_v29  ;;  %v2844_v2 = vmul.f32 1e+30, %v1958_v36  ;;  %v2861_v29 = vmul.f32 1e+30, %v1960_v58 }
  0x7d   : > { %v1967_v58 = vadd.f32 -1.0, %v2852_v13  ;;  %4092 = vst [vmem:[#allocation37_spill] sm:$0xff] %v2882_v3  ;;  %v1973_v52 = vadd.f32 -1.0, %v2882_v3  ;;  %v2928_v15 = vmul.f32 1e+30, %v1971_v28 }
  0x7e   : > { %4082 = vst [vmem:[#allocation27_spill] sm:$0xff] %v2840_v0  ;;  %v1963_v36 = vadd.f32 -1.0, %v2840_v0  ;;  %v1977_v0 = vld [vmem:[%s3948_s1 + $0x1] ss:$2 sm:$0x3] }
  0x7f   : > { %1205 = vperm.xlu0 %2264, %v451_v17   ;;  %v2904_v44 = vrot.slane %v1977_v0, %v4095_v32 }
  0x80   : > { %530 = vperm.xlu1 %2267, %v451_v17   ;;  %v2808_v17 = vmul.f32 1e+30, %v1951_v1  ;;  %v2842_v1 = vcvt.s32.f32 %v296_v30  ;;  %v1962_v30 = vadd.f32 -1.0, %v2838_v61  ;;  %v2892_v14 = vmul.f32 1e+30, %v1963_v36 }
  0x81   : > { %v2896_v61 = vmul.f32 1e+30, %v1965_v45  ;;  %v2910_v36 = vmul.f32 1e+30, %v1968_v42  ;;  %v4097_v42 = vsub.s32 1, %v2734_v23 }
  0x82   : > { %4083 = vst [vmem:[#allocation28_spill] sm:$0xff] %v2842_v1  ;;  %v1964_v39 = vadd.f32 -1.0, %v2842_v1  ;;  %v1969_v1 = vadd.f32 -1.0, %v2858_v21  ;;  %v2890_v13 = vmul.f32 1e+30, %v1962_v30  ;;  %v2900_v21 = vcvt.s32.f32 %v306_v56 }
  0x83   : > { %v2908_v30 = vmul.f32 1e+30, %v1967_v58  ;;  %v2916_v56 = vcvt.s32.f32 %v307_v25  ;;  %v2924_v24 = vrot.slane %v1977_v0, %v4097_v42 }
  0x84   : > { %v2894_v11 = vmul.f32 1e+30, %v1964_v39  ;;  %4094 = vst [vmem:[#allocation38_spill] sm:$0xff] %v2900_v21  ;;  %v2912_v45 = vmul.f32 1e+30, %v1969_v1  ;;  %v1974_v3 = vadd.f32 -1.0, %v2900_v21 }
  0x85   : > { %4096 = vst [vmem:[#allocation39_spill] sm:$0xff] %v2916_v56  ;;  %v2926_v1 = vmul.f32 1e+30, %v1970_v22  ;;  %v2936_v22 = vadd.f32 -1.0, %v2916_v56 }
  0xc1   : > { %v456_v39 = vpop.permute.xlu0 %455  ;;  %v461_v6 = vpop.permute.xlu1 %460 }
  0xc2   : > { %v544_v27 = vadd.f32 %v2768_v50, %v456_v39  ;;  %v545_v32 = vadd.f32 %v2888_v7, %v456_v39  ;;  %v546_v35 = vadd.f32 %v2768_v50, %v461_v6  ;;  %v547_v58 = vadd.f32 %v2888_v7, %v461_v6 }
  0xc3   : > { %v2933_v39 = vmul.f32 1e+30, %v1973_v52 }
  0xc4   : > { %v576_v25 = vmul.f32 0.01, %v544_v27  ;;  %v577_v62 = vmul.f32 0.01, %v545_v32  ;;  %v578_v5 = vmul.f32 0.01, %v546_v35 }
  0xc5   : > { %v579_v4 = vmul.f32 0.01, %v547_v58 }
  0xc6   : > { %v608_v59 = vmax.f32 %v544_v27, %v576_v25  ;;  %v609_v6 = vmax.f32 %v545_v32, %v577_v62  ;;  %v610_v51 = vmax.f32 %v546_v35, %v578_v5  ;;  %v1150_v23 = vpop.permute.xlu1 %1149  ;;  %v1146_v0 = vpop.permute.xlu0 %1145  ;;  %v2948_v5 = vmul.f32 1e+30, %v1974_v3 }
  0xc7   : > { %v611_v28 = vmax.f32 %v547_v58, %v579_v4  ;;  %v1221_v42 = vadd.f32 %v2904_v44, %v1150_v23  ;;  %v1222_v21 = vadd.f32 %v2924_v24, %v1150_v23  ;;  %v1219_v49 = vadd.f32 %v2904_v44, %v1146_v0 }
  0xc8   : > { %v1220_v46 = vadd.f32 %v2924_v24, %v1146_v0  ;;  %v2943_v52 = vadd.f32 %v608_v59, %v2773_v55  ;;  %v2946_v27 = vadd.f32 %v609_v6, %v2794_v8  ;;  %v2953_v23 = vadd.f32 %v610_v51, %v2783_v63 }
  0xc9   : > { %v1253_v62 = vmul.f32 0.01, %v1221_v42  ;;  %v1254_v32 = vmul.f32 0.01, %v1222_v21  ;;  %v1251_v35 = vmul.f32 0.01, %v1219_v49  ;;  %v2956_v0 = vadd.f32 %v611_v28, %v2796_v9 }
  0xca   : > { %v1252_v4 = vmul.f32 0.01, %v1220_v46  ;;  %v1154_v58 = vpop.permute.xlu0 %1153  ;;  %v672_v25 = vmax.f32 %v2943_v52, %v2946_v27  ;;  %4098 = vst [vmem:[#allocation40_spill] sm:$0xff] %v2953_v23 }
  0xcb   : > { %4099 = vst [vmem:[#allocation41_spill] sm:$0xff] %v2956_v0  ;;  %v1285_v59 = vmax.f32 %v1221_v42, %v1253_v62  ;;  %v1286_v56 = vmax.f32 %v1222_v21, %v1254_v32  ;;  %v1283_v6 = vmax.f32 %v1219_v49, %v1251_v35  ;;  %v1223_v3 = vadd.f32 %v2904_v44, %v1154_v58  ;;  %v466_v48 = vpop.permute.xlu1 %465 }
  0xcc   : > { %v1284_v47 = vmax.f32 %v1220_v46, %v1252_v4  ;;  %v1224_v43 = vadd.f32 %v2924_v24, %v1154_v58  ;;  %v548_v41 = vadd.f32 %v2768_v50, %v466_v48  ;;  %v549_v40 = vadd.f32 %v2888_v7, %v466_v48  ;;  %673 = vmax.xlane.f32.xlu1 %v672_v25 }
  0xcd   : > { %v1255_v31 = vmul.f32 0.01, %v1223_v3  ;;  %v2963_v51 = vadd.f32 %v1283_v6, %v2773_v55  ;;  %v2966_v28 = vadd.f32 %v1285_v59, %v2783_v63  ;;  %v2969_v49 = vadd.f32 %v1286_v56, %v2796_v9 }
  0xce   : > { %v1256_v21 = vmul.f32 0.01, %v1224_v43  ;;  %v580_v42 = vmul.f32 0.01, %v548_v41  ;;  %v581_v46 = vmul.f32 0.01, %v549_v40  ;;  %v1158_v62 = vpop.permute.xlu0 %1157  ;;  %v2972_v32 = vadd.f32 %v1284_v47, %v2794_v8 }
  0xcf   : > { %v1287_v35 = vmax.f32 %v1223_v3, %v1255_v31  ;;  %v1225_v48 = vadd.f32 %v2904_v44, %v1158_v62  ;;  %v1226_v4 = vadd.f32 %v2924_v24, %v1158_v62  ;;  %v471_v55 = vpop.permute.xlu1 %470  ;;  %v1350_v63 = vmax.f32 %v2966_v28, %v2969_v49 }
  0xd0   : > { %v1288_v58 = vmax.f32 %v1224_v43, %v1256_v21  ;;  %v612_v25 = vmax.f32 %v548_v41, %v580_v42  ;;  %v613_v9 = vmax.f32 %v549_v40, %v581_v46  ;;  %v550_v56 = vadd.f32 %v2768_v50, %v471_v55 }
  0xd1   : > { %v1257_v59 = vmul.f32 0.01, %v1225_v48  ;;  %v1258_v6 = vmul.f32 0.01, %v1226_v4  ;;  %v551_v38 = vadd.f32 %v2888_v7, %v471_v55  ;;  %v1347_v31 = vmax.f32 %v2963_v51, %v2972_v32  ;;  %1351 = vmax.xlane.f32.xlu1 %v1350_v63 }
  0xd2   : > { %v582_v47 = vmul.f32 0.01, %v550_v56  ;;  %v1162_v8 = vpop.permute.xlu0 %1161  ;;  %v675_v3 = vmax.f32 %v2953_v23, %v2956_v0  ;;  %v2985_v62 = vadd.f32 %v1287_v35, %v2798_v10  ;;  %v2988_v40 = vadd.f32 %v1288_v58, %v2800_v12 }
  0xd3   : > { %v1289_v41 = vmax.f32 %v1225_v48, %v1257_v59  ;;  %v1290_v43 = vmax.f32 %v1226_v4, %v1258_v6  ;;  %v583_v21 = vmul.f32 0.01, %v551_v38  ;;  %1348 = vmax.xlane.f32.xlu0 %v1347_v31  ;;  %v1227_v42 = vadd.f32 %v2904_v44, %v1162_v8  ;;  %v476_v46 = vpop.permute.xlu1 %475 }
  0xd4   : > { %4100 = vst [vmem:[#allocation42_spill] sm:$0xff] %v2985_v62  ;;  %4101 = vst [vmem:[#allocation43_spill] sm:$0xff] %v2988_v40  ;;  %v614_v55 = vmax.f32 %v550_v56, %v582_v47  ;;  %v1228_v63 = vadd.f32 %v2924_v24, %v1162_v8  ;;  %v2993_v26 = vadd.f32 %v2768_v50, %v476_v46 }
  0xd5   : > { %v2996_v0 = vadd.f32 %v2888_v7, %v476_v46  ;;  %v615_v35 = vmax.f32 %v551_v38, %v583_v21  ;;  %v1259_v23 = vmul.f32 0.01, %v1227_v42  ;;  %v1353_v48 = vmax.f32 %v2985_v62, %v2988_v40 }
  0xd6   : > { %v3001_v4 = vadd.f32 %v612_v25, %v2798_v10  ;;  %v1260_v58 = vmul.f32 0.01, %v1228_v63  ;;  %v584_v59 = vmul.f32 0.01, %v2993_v26  ;;  %v1166_v6 = vpop.permute.xlu0 %1165  ;;  %v3006_v31 = vadd.f32 %v613_v9, %v2800_v12 }
  0xd7   : > { %v585_v56 = vmul.f32 0.01, %v2996_v0  ;;  %v1291_v47 = vmax.f32 %v1227_v42, %v1259_v23  ;;  %676 = vmax.xlane.f32.xlu0 %v675_v3  ;;  %1354 = vmax.xlane.f32.xlu1 %v1353_v48  ;;  %v1229_v38 = vadd.f32 %v2904_v44, %v1166_v6  ;;  %v1230_v8 = vadd.f32 %v2924_v24, %v1166_v6  ;;  %v481_v21 = vpop.permute.xlu1 %480 }
  0xd8   : > { %4102 = vst [vmem:[#allocation44_spill] sm:$0xff] %v3006_v31  ;;  %v3011_v10 = vmul.f32 1e+30, %v2936_v22  ;;  %v1292_v25 = vmax.f32 %v1228_v63, %v1260_v58  ;;  %v616_v46 = vmax.f32 %v2993_v26, %v584_v59  ;;  %v3016_v62 = vadd.f32 %v2768_v50, %v481_v21 }
  0xd9   : > { %v617_v40 = vmax.f32 %v2996_v0, %v585_v56  ;;  %v1261_v12 = vmul.f32 0.01, %v1229_v38  ;;  %v1262_v23 = vmul.f32 0.01, %v1230_v8  ;;  %v3019_v9 = vadd.f32 %v2888_v7, %v481_v21 }
  0xda   : > { %v678_v3 = vmax.f32 %v3001_v4, %v3006_v31  ;;  %v3024_v42 = vmul.f32 0.01, %v3016_v62  ;;  %v3027_v22 = vadd.f32 %v1289_v41, %v2806_v16  ;;  %v3030_v26 = vadd.f32 %v1290_v43, %v2808_v17  ;;  %v1170_v0 = vpop.permute.xlu0 %1169 }
  0xdb   : > { %v3033_v63 = vadd.f32 %v614_v55, %v2806_v16  ;;  %v1293_v48 = vmax.f32 %v1229_v38, %v1261_v12  ;;  %v1294_v58 = vmax.f32 %v1230_v8, %v1262_v23  ;;  %v587_v59 = vmul.f32 0.01, %v3019_v9  ;;  %v486_v6 = vpop.permute.xlu1 %485 }
  0xdc   : > { %4103 = vst [vmem:[#allocation45_spill] sm:$0xff] %v3030_v26  ;;  %679 = vmax.xlane.f32.xlu0 %v678_v3  ;;  %v1231_v56 = vadd.f32 %v2904_v44, %v1170_v0  ;;  %v618_v21 = vmax.f32 %v3016_v62, %v3024_v42  ;;  %v1356_v41 = vmax.f32 %v3027_v22, %v3030_v26 }
  0xdd   : > { %v1232_v43 = vadd.f32 %v2924_v24, %v1170_v0  ;;  %v3043_v31 = vadd.f32 %v2768_v50, %v486_v6  ;;  %v619_v16 = vmax.f32 %v3019_v9, %v587_v59  ;;  %v3047_v38 = vadd.f32 %v2888_v7, %v486_v6 }
  0xde   : > { %v1263_v55 = vmul.f32 0.01, %v1231_v56  ;;  %v3050_v8 = vadd.f32 %v615_v35, %v2808_v17  ;;  %1357 = vmax.xlane.f32.xlu1 %v1356_v41  ;;  %v3056_v23 = vadd.f32 %v1291_v47, %v2810_v18  ;;  %v3059_v3 = vadd.f32 %v1292_v25, %v2812_v20  ;;  %v1174_v42 = vpop.permute.xlu0 %1173 }
  0xdf   : > { %v1264_v12 = vmul.f32 0.01, %v1232_v43  ;;  %v3053_v62 = vmul.f32 0.01, %v3043_v31  ;;  %v589_v0 = vmul.f32 0.01, %v3047_v38  ;;  %v1233_v17 = vadd.f32 %v2904_v44, %v1174_v42  ;;  %v491_v35 = vpop.permute.xlu1 %490 }
  0xe0   : > { %4104 = vst [vmem:[#allocation46_spill] sm:$0xff] %v3050_v8  ;;  %4105 = vst [vmem:[#allocation47_spill] sm:$0xff] %v3059_v3  ;;  %v1295_v9 = vmax.f32 %v1231_v56, %v1263_v55  ;;  %v681_v59 = vmax.f32 %v3033_v63, %v3050_v8  ;;  %v1359_v47 = vmax.f32 %v3056_v23, %v3059_v3 }
  0xe1   : > { %v1296_v6 = vmax.f32 %v1232_v43, %v1264_v12  ;;  %v620_v41 = vmax.f32 %v3043_v31, %v3053_v62  ;;  %v1234_v25 = vadd.f32 %v2924_v24, %v1174_v42  ;;  %v621_v26 = vmax.f32 %v3047_v38, %v589_v0 }
  0xe2   : > { %682 = vmax.xlane.f32.xlu0 %v681_v59  ;;  %v1265_v56 = vmul.f32 0.01, %v1233_v17  ;;  %v3072_v55 = vadd.f32 %v2768_v50, %v491_v35  ;;  %v3075_v8 = vadd.f32 %v2888_v7, %v491_v35  ;;  %1360 = vmax.xlane.f32.xlu1 %v1359_v47  ;;  %v3078_v12 = vadd.f32 %v616_v46, %v2810_v18  ;;  %v1178_v38 = vpop.permute.xlu0 %1177 }
  0xe3   : > { %v1266_v43 = vmul.f32 0.01, %v1234_v25  ;;  %v3081_v31 = vadd.f32 %v617_v40, %v2812_v20  ;;  %v3084_v62 = vadd.f32 %v1293_v48, %v2824_v33  ;;  %v3091_v35 = vadd.f32 %v1294_v58, %v2826_v34  ;;  %v496_v47 = vpop.permute.xlu1 %495 }
  0xe4   : > { %v1297_v42 = vmax.f32 %v1233_v17, %v1265_v56  ;;  %v590_v0 = vmul.f32 0.01, %v3072_v55  ;;  %v3088_v59 = vmul.f32 0.01, %v3075_v8  ;;  %v1235_v20 = vadd.f32 %v2904_v44, %v1178_v38 }
  0xe5   : > { %4106 = vst [vmem:[#allocation48_spill] sm:$0xff] %v3081_v31  ;;  %4107 = vst [vmem:[#allocation49_spill] sm:$0xff] %v3084_v62  ;;  %v1298_v3 = vmax.f32 %v1234_v25, %v1266_v43  ;;  %v684_v18 = vmax.f32 %v3078_v12, %v3081_v31  ;;  %v1236_v40 = vadd.f32 %v2924_v24, %v1178_v38 }
  0xe6   : > { %4108 = vst [vmem:[#allocation50_spill] sm:$0xff] %v3091_v35  ;;  %v622_v46 = vmax.f32 %v3072_v55, %v590_v0  ;;  %v623_v48 = vmax.f32 %v3075_v8, %v3088_v59  ;;  %v1362_v17 = vmax.f32 %v3084_v62, %v3091_v35  ;;  %v3103_v58 = vadd.f32 %v2768_v50, %v496_v47  ;;  %v1182_v38 = vpop.permute.xlu0 %1181 }
  0xe7   : > { %685 = vmax.xlane.f32.xlu0 %v684_v18  ;;  %v1267_v25 = vmul.f32 0.01, %v1235_v20  ;;  %v1268_v56 = vmul.f32 0.01, %v1236_v40  ;;  %v3106_v43 = vadd.f32 %v2888_v7, %v496_v47  ;;  %v3109_v31 = vadd.f32 %v618_v21, %v2824_v33  ;;  %v501_v18 = vpop.permute.xlu1 %500 }
  0xe8   : > { %1363 = vmax.xlane.f32.xlu1 %v1362_v17  ;;  %v3112_v55 = vmul.f32 0.01, %v3103_v58  ;;  %v3115_v8 = vadd.f32 %v619_v16, %v2826_v34  ;;  %v3118_v0 = vadd.f32 %v1295_v9, %v2831_v53  ;;  %v3121_v59 = vadd.f32 %v1296_v6, %v2833_v54 }
  0xe9   : > { %v1299_v47 = vmax.f32 %v1235_v20, %v1267_v25  ;;  %v1300_v35 = vmax.f32 %v1236_v40, %v1268_v56  ;;  %v593_v33 = vmul.f32 0.01, %v3106_v43  ;;  %v1237_v21 = vadd.f32 %v2904_v44, %v1182_v38 }
  0xea   : > { %4109 = vst [vmem:[#allocation51_spill] sm:$0xff] %v3121_v59  ;;  %v624_v17 = vmax.f32 %v3103_v58, %v3112_v55  ;;  %v687_v34 = vmax.f32 %v3109_v31, %v3115_v8  ;;  %v1365_v16 = vmax.f32 %v3118_v0, %v3121_v59  ;;  %v1238_v9 = vadd.f32 %v2924_v24, %v1182_v38  ;;  %v1186_v25 = vpop.permute.xlu0 %1185 }
  0xeb   : > { %v625_v6 = vmax.f32 %v3106_v43, %v593_v33  ;;  %v1269_v62 = vmul.f32 0.01, %v1237_v21  ;;  %v3134_v20 = vadd.f32 %v2768_v50, %v501_v18  ;;  %v3137_v40 = vadd.f32 %v2888_v7, %v501_v18  ;;  %v506_v43 = vpop.permute.xlu1 %505 }
  0xec   : > { %688 = vmax.xlane.f32.xlu0 %v687_v34  ;;  %1366 = vmax.xlane.f32.xlu1 %v1365_v16  ;;  %v1270_v58 = vmul.f32 0.01, %v1238_v9  ;;  %v3140_v56 = vadd.f32 %v620_v41, %v2831_v53  ;;  %v3143_v55 = vadd.f32 %v621_v26, %v2833_v54  ;;  %v3146_v38 = vadd.f32 %v1297_v42, %v2844_v2 }
  0xed   : > { %v1301_v33 = vmax.f32 %v1237_v21, %v1269_v62  ;;  %v594_v59 = vmul.f32 0.01, %v3134_v20  ;;  %v3150_v18 = vmul.f32 0.01, %v3137_v40  ;;  %v3153_v34 = vadd.f32 %v1298_v3, %v2856_v19 }
  0xee   : > { %4110 = vst [vmem:[#allocation52_spill] sm:$0xff] %v3143_v55  ;;  %4111 = vst [vmem:[#allocation53_spill] sm:$0xff] %v3146_v38  ;;  %v1302_v16 = vmax.f32 %v1238_v9, %v1270_v58  ;;  %v690_v53 = vmax.f32 %v3140_v56, %v3143_v55  ;;  %v1239_v54 = vadd.f32 %v2904_v44, %v1186_v25  ;;  %v1190_v3 = vpop.permute.xlu0 %1189 }
  0xef   : > { %4112 = vst [vmem:[#allocation54_spill] sm:$0xff] %v3153_v34  ;;  %v1240_v26 = vadd.f32 %v2924_v24, %v1186_v25  ;;  %v626_v41 = vmax.f32 %v3134_v20, %v594_v59  ;;  %v627_v62 = vmax.f32 %v3137_v40, %v3150_v18  ;;  %v1368_v42 = vmax.f32 %v3146_v38, %v3153_v34  ;;  %v511_v59 = vpop.permute.xlu1 %510 }
  0xf0   : > { %v3165_v21 = vadd.f32 %v2768_v50, %v506_v43  ;;  %691 = vmax.xlane.f32.xlu0 %v690_v53  ;;  %v1271_v9 = vmul.f32 0.01, %v1239_v54  ;;  %v3168_v55 = vadd.f32 %v2888_v7, %v506_v43  ;;  %v3171_v25 = vadd.f32 %v622_v46, %v2844_v2 }
  0xf1   : > { %v1272_v58 = vmul.f32 0.01, %v1240_v26  ;;  %1369 = vmax.xlane.f32.xlu1 %v1368_v42  ;;  %v3177_v40 = vadd.f32 %v623_v48, %v2856_v19  ;;  %v3180_v18 = vadd.f32 %v1299_v47, %v2861_v29  ;;  %v3183_v53 = vadd.f32 %v1300_v35, %v2871_v57 }
  0xf2   : > { %v3174_v20 = vmul.f32 0.01, %v3165_v21  ;;  %v1303_v34 = vmax.f32 %v1239_v54, %v1271_v9  ;;  %v597_v38 = vmul.f32 0.01, %v3168_v55  ;;  %v1241_v2 = vadd.f32 %v2904_v44, %v1190_v3  ;;  %v1194_v47 = vpop.permute.xlu0 %1193 }
  0xf3   : > { %4113 = vst [vmem:[#allocation55_spill] sm:$0xff] %v3180_v18  ;;  %4114 = vst [vmem:[#allocation56_spill] sm:$0xff] %v3183_v53  ;;  %v1304_v43 = vmax.f32 %v1240_v26, %v1272_v58  ;;  %v693_v42 = vmax.f32 %v3171_v25, %v3177_v40  ;;  %v1371_v19 = vmax.f32 %v3180_v18, %v3183_v53  ;;  %v516_v58 = vpop.permute.xlu1 %515 }
  0xf4   : > { %v628_v46 = vmax.f32 %v3165_v21, %v3174_v20  ;;  %v1242_v48 = vadd.f32 %v2924_v24, %v1190_v3  ;;  %v629_v35 = vmax.f32 %v3168_v55, %v597_v38  ;;  %v1273_v54 = vmul.f32 0.01, %v1241_v2 }
  0xf5   : > { %v3196_v26 = vadd.f32 %v2768_v50, %v511_v59  ;;  %v3199_v9 = vadd.f32 %v2888_v7, %v511_v59  ;;  %694 = vmax.xlane.f32.xlu0 %v693_v42  ;;  %1372 = vmax.xlane.f32.xlu1 %v1371_v19  ;;  %v3202_v20 = vadd.f32 %v624_v17, %v2861_v29 }
  0xf6   : > { %v1274_v21 = vmul.f32 0.01, %v1242_v48  ;;  %v3205_v53 = vadd.f32 %v625_v6, %v2871_v57  ;;  %v3208_v3 = vadd.f32 %v1301_v33, %v2890_v13  ;;  %v1305_v55 = vmax.f32 %v1241_v2, %v1273_v54  ;;  %v1198_v6 = vpop.permute.xlu0 %1197 }
  0xf7   : > { %v598_v38 = vmul.f32 0.01, %v3196_v26  ;;  %v3212_v18 = vmul.f32 0.01, %v3199_v9  ;;  %v3215_v59 = vadd.f32 %v1302_v16, %v2892_v14  ;;  %v1243_v17 = vadd.f32 %v2904_v44, %v1194_v47 }
  0xf8   : > { %4115 = vst [vmem:[#allocation57_spill] sm:$0xff] %v3205_v53  ;;  %4116 = vst [vmem:[#allocation58_spill] sm:$0xff] %v3208_v3  ;;  %v1306_v42 = vmax.f32 %v1242_v48, %v1274_v21  ;;  %v696_v29 = vmax.f32 %v3202_v20, %v3205_v53  ;;  %v1244_v57 = vadd.f32 %v2924_v24, %v1194_v47  ;;  %v521_v48 = vpop.permute.xlu1 %520 }
  0xf9   : > { %4117 = vst [vmem:[#allocation59_spill] sm:$0xff] %v3215_v59  ;;  %v630_v33 = vmax.f32 %v3196_v26, %v598_v38  ;;  %v631_v2 = vmax.f32 %v3199_v9, %v3212_v18  ;;  %v1374_v19 = vmax.f32 %v3208_v3, %v3215_v59  ;;  %v3227_v16 = vadd.f32 %v2768_v50, %v516_v58 }
  0xfa   : > { %697 = vmax.xlane.f32.xlu0 %v696_v29  ;;  %v1275_v54 = vmul.f32 0.01, %v1243_v17  ;;  %v1276_v21 = vmul.f32 0.01, %v1244_v57  ;;  %v3230_v53 = vadd.f32 %v2888_v7, %v516_v58  ;;  %v3233_v47 = vadd.f32 %v626_v41, %v2890_v13  ;;  %v1202_v41 = vpop.permute.xlu0 %1201 }
  0xfb   : > { %1375 = vmax.xlane.f32.xlu1 %v1374_v19  ;;  %v3236_v26 = vmul.f32 0.01, %v3227_v16  ;;  %v3239_v18 = vadd.f32 %v627_v62, %v2892_v14  ;;  %v3242_v9 = vadd.f32 %v1303_v34, %v2894_v11  ;;  %v3245_v38 = vadd.f32 %v1304_v43, %v2896_v61 }
  0xfc   : > { %v1307_v29 = vmax.f32 %v1243_v17, %v1275_v54  ;;  %v1308_v59 = vmax.f32 %v1244_v57, %v1276_v21  ;;  %v601_v58 = vmul.f32 0.01, %v3230_v53  ;;  %v1245_v13 = vadd.f32 %v2904_v44, %v1198_v6  ;;  %v526_v21 = vpop.permute.xlu1 %525 }
  0xfd   : > { %4118 = vst [vmem:[#allocation60_spill] sm:$0xff] %v3242_v9  ;;  %4119 = vst [vmem:[#allocation61_spill] sm:$0xff] %v3245_v38  ;;  %v632_v19 = vmax.f32 %v3227_v16, %v3236_v26  ;;  %v699_v14 = vmax.f32 %v3233_v47, %v3239_v18  ;;  %v1377_v34 = vmax.f32 %v3242_v9, %v3245_v38 }
  0xfe   : > { %v1246_v62 = vadd.f32 %v2924_v24, %v1198_v6  ;;  %v633_v43 = vmax.f32 %v3230_v53, %v601_v58  ;;  %v1277_v17 = vmul.f32 0.01, %v1245_v13  ;;  %v570_v57 = vadd.f32 %v2768_v50, %v521_v48 }
  0xff   : > { %v571_v54 = vadd.f32 %v2888_v7, %v521_v48  ;;  %700 = vmax.xlane.f32.xlu0 %v699_v14  ;;  %1378 = vmax.xlane.f32.xlu1 %v1377_v34  ;;  %v3260_v16 = vadd.f32 %v628_v46, %v2894_v11  ;;  %v3263_v26 = vadd.f32 %v629_v35, %v2896_v61 }
 0x100   : > { %v1278_v3 = vmul.f32 0.01, %v1246_v62  ;;  %v3266_v38 = vadd.f32 %v1305_v55, %v2906_v37  ;;  %v1309_v6 = vmax.f32 %v1245_v13, %v1277_v17  ;;  %v602_v53 = vmul.f32 0.01, %v570_v57  ;;  %v1206_v13 = vpop.permute.xlu0 %1205 }
 0x101   : > { %4120 = vst [vmem:[#allocation62_spill] sm:$0xff] %v3263_v26  ;;  %v603_v58 = vmul.f32 0.01, %v571_v54  ;;  %v3269_v9 = vadd.f32 %v1306_v42, %v2908_v30  ;;  %v702_v14 = vmax.f32 %v3260_v16, %v3263_v26  ;;  %v1247_v34 = vadd.f32 %v2904_v44, %v1202_v41 }
 0x102   : > { %4121 = vst [vmem:[#allocation63_spill] sm:$0xff] %v3266_v38  ;;  %v1310_v48 = vmax.f32 %v1246_v62, %v1278_v3  ;;  %v1248_v11 = vadd.f32 %v2924_v24, %v1202_v41  ;;  %v634_v46 = vmax.f32 %v570_v57, %v602_v53  ;;  %v572_v55 = vadd.f32 %v2768_v50, %v526_v21  ;;  %v531_v53 = vpop.permute.xlu1 %530 }
 0x103   : > { %4122 = vst [vmem:[#allocation64_spill] sm:$0xff] %v3269_v9  ;;  %v635_v61 = vmax.f32 %v571_v54, %v603_v58  ;;  %v1380_v35 = vmax.f32 %v3266_v38, %v3269_v9  ;;  %703 = vmax.xlane.f32.xlu0 %v702_v14  ;;  %v1279_v17 = vmul.f32 0.01, %v1247_v34  ;;  %v573_v3 = vadd.f32 %v2888_v7, %v526_v21 }
 0x104   : > { %v1280_v42 = vmul.f32 0.01, %v1248_v11  ;;  %v3280_v62 = vadd.f32 %v630_v33, %v2906_v37  ;;  %v604_v26 = vmul.f32 0.01, %v572_v55  ;;  %v3283_v41 = vadd.f32 %v631_v2, %v2908_v30 }
 0x105   : > { %1381 = vmax.xlane.f32.xlu1 %v1380_v35  ;;  %v3286_v57 = vadd.f32 %v1307_v29, %v2910_v36  ;;  %v3289_v54 = vadd.f32 %v1308_v59, %v2912_v45  ;;  %v1311_v58 = vmax.f32 %v1247_v34, %v1279_v17  ;;  %v605_v9 = vmul.f32 0.01, %v573_v3 }
 0x106   : > { %v1312_v14 = vmax.f32 %v1248_v11, %v1280_v42  ;;  %v1249_v21 = vadd.f32 %v2904_v44, %v1206_v13  ;;  %v636_v38 = vmax.f32 %v572_v55, %v604_v26  ;;  %v705_v37 = vmax.f32 %v3280_v62, %v3283_v41 }
 0x107   : > { %v1383_v30 = vmax.f32 %v3286_v57, %v3289_v54  ;;  %v1250_v33 = vadd.f32 %v2924_v24, %v1206_v13  ;;  %v637_v2 = vmax.f32 %v573_v3, %v605_v9  ;;  %v574_v59 = vadd.f32 %v2768_v50, %v531_v53 }
 0x108   : > { %v1281_v29 = vmul.f32 0.01, %v1249_v21  ;;  %v575_v35 = vadd.f32 %v2888_v7, %v531_v53  ;;  %706 = vmax.xlane.f32.xlu0 %v705_v37  ;;  %v3300_v44 = vadd.f32 %v632_v19, %v2910_v36  ;;  %v3303_v26 = vadd.f32 %v633_v43, %v2912_v45  ;;  %v405_v37 = vld [vmem:[%s3947_s0 + $0x8] sm:$0xff] }
 0x109   : > { %1384 = vmax.xlane.f32.xlu1 %v1383_v30  ;;  %v1282_v34 = vmul.f32 0.01, %v1250_v33  ;;  %v3306_v11 = vadd.f32 %v1309_v6, %v2926_v1  ;;  %v606_v24 = vmul.f32 0.01, %v574_v59  ;;  %v3309_v13 = vadd.f32 %v1310_v48, %v2928_v15  ;;  %v422_v30 = vld [vmem:[%s3947_s0 + $0x90] sm:$0xff] }
 0x10a   : > { %v1313_v55 = vmax.f32 %v1249_v21, %v1281_v29  ;;  %v607_v9 = vmul.f32 0.01, %v575_v35  ;;  %v708_v7 = vmax.f32 %v3300_v44, %v3303_v26  ;;  %v3314_v17 = vadd.f32 %v634_v46, %v2926_v1 }
 0x10b   : > { %v1314_v50 = vmax.f32 %v1250_v33, %v1282_v34  ;;  %v3317_v36 = vadd.f32 %v635_v61, %v2928_v15  ;;  %v1386_v45 = vmax.f32 %v3306_v11, %v3309_v13  ;;  %v3322_v19 = vadd.f32 %v1311_v58, %v2931_v60  ;;  %v423_v33 = vld [vmem:[%s3947_s0 + $0x98] sm:$0xff]  ;;  %v424_v34 = vld [vmem:[%s3947_s0 + $0xa0] sm:$0xff] }
 0x10c   : > { %709 = vmax.xlane.f32.xlu0 %v708_v7  ;;  %v3325_v43 = vadd.f32 %v1312_v14, %v2933_v39  ;;  %v638_v6 = vmax.f32 %v574_v59, %v606_v24  ;;  %v639_v48 = vmax.f32 %v575_v35, %v607_v9  ;;  %v3328_v42 = vadd.f32 %v1313_v55, %v2948_v5  ;;  %v406_v59 = vld [vmem:[%s3947_s0 + $0x10] sm:$0xff]  ;;  %v407_v35 = vld [vmem:[%s3947_s0 + $0x18] sm:$0xff]  ;;  %v425_v55 = vld [vmem:[%s3947_s0 + $0xa8] sm:$0xff] }
 0x10d   : > { %1387 = vmax.xlane.f32.xlu1 %v1386_v45  ;;  %v3331_v1 = vadd.f32 %v1314_v50, %v3011_v10  ;;  %v711_v15 = vmax.f32 %v3314_v17, %v3317_v36  ;;  %v3338_v61 = vadd.f32 %v636_v38, %v2931_v60  ;;  %v3341_v3 = vadd.f32 %v637_v2, %v2933_v39  ;;  %v420_v39 = vld [vmem:[%s3947_s0 + $0x80] sm:$0xff]  ;;  %v421_v38 = vld [vmem:[%s3947_s0 + $0x88] sm:$0xff]  ;;  %v426_v45 = vld [vmem:[%s3947_s0 + $0xb0] sm:$0xff] }
 0x10e   : > { %v1389_v46 = vmax.f32 %v3322_v19, %v3325_v43  ;;  %v3348_v14 = vadd.f32 %v638_v6, %v2948_v5  ;;  %v3351_v21 = vadd.f32 %v639_v48, %v3011_v10  ;;  %v404_v5 = vld [vmem:[%s3947_s0] sm:$0xff]  ;;  %v2147_v10 = vpack.c.bf16 %v421_v38, %v420_v39  ;;  %v409_v7 = vld [vmem:[%s3947_s0 + $0x28] sm:$0xff]  ;;  %v427_v6 = vld [vmem:[%s3947_s0 + $0xb8] sm:$0xff] }
 0x10f   : > { %v1392_v53 = vmax.f32 %v3328_v42, %v3331_v1  ;;  %v714_v58 = vmax.f32 %v3338_v61, %v3341_v3  ;;  %v2149_v2 = vpack.c.bf16 %v405_v37, %v404_v5  ;;  %v2151_v29 = vpack.c.bf16 %v423_v33, %v422_v30  ;;  %v408_v50 = vld [vmem:[%s3947_s0 + $0x20] sm:$0xff] }
 0x110   : > { %712 = vmax.xlane.f32.xlu0 %v711_v15  ;;  %v717_v60 = vmax.f32 %v3348_v14, %v3351_v21  ;;  %2148 = vmatprep.subr.bf16.mxu0 %v2147_v10  ;;  %v2153_v24 = vpack.c.bf16 %v407_v35, %v406_v59  ;;  %v2155_v9 = vpack.c.bf16 %v425_v55, %v424_v34 }
 0x111   : > { %1390 = vmax.xlane.f32.xlu1 %v1389_v46  ;;  %2180 = vmatprep.subr.bf16.mxu1 %v2147_v10  ;;  %v2157_v48 = vpack.c.bf16 %v409_v7, %v408_v50  ;;  %v2159_v15 = vpack.c.bf16 %v427_v6, %v426_v45  ;;  %v410_v46 = vld [vmem:[%s3947_s0 + $0x30] sm:$0xff]  ;;  %v4124_v7 = vld [vmem:[#allocation41_spill] sm:$0xff]  ;;  %v4126_v6 = vld [vmem:[#allocation43_spill] sm:$0xff] }
 0x112   : > { %2150 = vmatpush3.bf16.msra.mxu0 %v2149_v2  ;;  %2182 = vmatpush3.bf16.msra.mxu1 %v2149_v2  ;;  %v4125_v45 = vld [vmem:[#allocation42_spill] sm:$0xff] }
 0x113   : > { %2152 = vmatprep.subr.bf16.mxu0 %v2151_v29  ;;  %2184 = vmatprep.subr.bf16.mxu1 %v2151_v29 }
 0x114   : > { %715 = vmax.xlane.f32.xlu0 %v714_v58 }
 0x115   : > { %1393 = vmax.xlane.f32.xlu1 %v1392_v53  ;;  %v411_v53 = vld [vmem:[%s3947_s0 + $0x38] sm:$0xff] }
 0x116   : > { %2154 = vmatpush3.bf16.msra.mxu0 %v2153_v24  ;;  %2186 = vmatpush3.bf16.msra.mxu1 %v2153_v24  ;;  %v2161_v58 = vpack.c.bf16 %v411_v53, %v410_v46 }
 0x117   : > { %2156 = vmatprep.subr.bf16.mxu0 %v2155_v9  ;;  %2188 = vmatprep.subr.bf16.mxu1 %v2155_v9  ;;  %v4123_v9 = vld [vmem:[#allocation40_spill] sm:$0xff] }
 0x118   : > { %718 = vmax.xlane.f32.xlu0 %v717_v60 }
 0x11a   : > { %2158 = vmatpush3.bf16.msra.mxu0 %v2157_v48  ;;  %2190 = vmatpush3.bf16.msra.mxu1 %v2157_v48 }
 0x11b   : > { %2160 = vmatprep.subr.bf16.mxu0 %v2159_v15  ;;  %2192 = vmatprep.subr.bf16.mxu1 %v2159_v15 }
 0x11e   : > { %2162 = vmatpush3.bf16.msra.mxu0 %v2161_v58  ;;  %2194 = vmatpush3.bf16.msra.mxu1 %v2161_v58 }
 0x159   : > { %v674_v60 = vpop.xlane.xlu1 %673 }
 0x15a   : > { %v720_v39 = vsub.f32 %v2943_v52, %v674_v60  ;;  %v721_v38 = vsub.f32 %v2946_v27, %v674_v60 }
 0x15c   : > { %v752_v5 = vmul.f32 1.442695, %v720_v39  ;;  %v754_v10 = vmul.f32 1.442695, %v721_v38  ;;  %v4127_v38 = vld [vmem:[#allocation44_spill] sm:$0xff] }
 0x15e   : > { %2268 = vpow2.f32 %v752_v5  ;;  %v1352_v37 = vpop.xlane.xlu1 %1351 }
 0x15f   : > { %2270 = vpow2.f32 %v754_v10  ;;  %v1397_v30 = vsub.f32 %v2966_v28, %v1352_v37  ;;  %v1398_v33 = vsub.f32 %v2969_v49, %v1352_v37  ;;  %v4128_v10 = vld [vmem:[#allocation8_spill] sm:$0xff] }
 0x160   : > { %v1349_v2 = vpop.xlane.xlu0 %1348 }
 0x161   : > { %v1395_v29 = vsub.f32 %v2963_v51, %v1349_v2  ;;  %v1396_v59 = vsub.f32 %v2972_v32, %v1349_v2  ;;  %v1431_v35 = vmul.f32 1.442695, %v1397_v30  ;;  %v1433_v34 = vmul.f32 1.442695, %v1398_v33  ;;  %v4129_v30 = vld [vmem:[#allocation10_spill] sm:$0xff] }
 0x163   : > { %v1427_v55 = vmul.f32 1.442695, %v1395_v29  ;;  %v1429_v52 = vmul.f32 1.442695, %v1396_v59  ;;  %2272 = vpow2.f32 %v1431_v35 }
 0x164   : > { %2274 = vpow2.f32 %v1433_v34  ;;  %v677_v27 = vpop.xlane.xlu0 %676  ;;  %v1355_v24 = vpop.xlane.xlu1 %1354  ;;  %v4130_v34 = vld [vmem:[#allocation45_spill] sm:$0xff] }
 0x165   : > { %2276 = vpow2.f32 %v1427_v55  ;;  %v722_v50 = vsub.f32 %v4123_v9, %v677_v27  ;;  %v723_v28 = vsub.f32 %v4124_v7, %v677_v27  ;;  %v1399_v49 = vsub.f32 %v4125_v45, %v1355_v24  ;;  %v4131_v45 = vld [vmem:[#allocation46_spill] sm:$0xff] }
 0x166   : > { %2278 = vpow2.f32 %v1429_v52  ;;  %v1400_v51 = vsub.f32 %v4126_v6, %v1355_v24 }
 0x167   : > { %v756_v48 = vmul.f32 1.442695, %v722_v50  ;;  %v758_v32 = vmul.f32 1.442695, %v723_v28  ;;  %v1435_v15 = vmul.f32 1.442695, %v1399_v49 }
 0x168   : > { %v2269_v46 = vpop.eup %2268  ;;  %v1437_v53 = vmul.f32 1.442695, %v1400_v51 }
 0x169   : > { %v680_v58 = vpop.xlane.xlu0 %679  ;;  %v2271_v60 = vpop.eup %2270  ;;  %2280 = vpow2.f32 %v756_v48  ;;  %v3416_v37 = vmul.f32 %v2269_v46, %v4128_v10  ;;  %v4133_v48 = vld [vmem:[#allocation11_spill] sm:$0xff] }
 0x16a   : > { %v724_v39 = vsub.f32 %v3001_v4, %v680_v58  ;;  %v725_v5 = vsub.f32 %v4127_v38, %v680_v58  ;;  %2282 = vpow2.f32 %v758_v32  ;;  %v3419_v33 = vmul.f32 %v2271_v60, %v4129_v30 }
 0x16b   : > { %2284 = vpow2.f32 %v1435_v15  ;;  %v1358_v59 = vpop.xlane.xlu1 %1357 }
 0x16c   : > { %v760_v2 = vmul.f32 1.442695, %v724_v39  ;;  %v762_v29 = vmul.f32 1.442695, %v725_v5  ;;  %2286 = vpow2.f32 %v1437_v53  ;;  %v1401_v35 = vsub.f32 %v3027_v22, %v1358_v59  ;;  %v4132_v22 = vld [vmem:[#allocation9_spill] sm:$0xff]  ;;  %v4134_v53 = vld [vmem:[#allocation47_spill] sm:$0xff] }
 0x16d   : > { %v1402_v55 = vsub.f32 %v4130_v34, %v1358_v59  ;;  %v848_v4 = vadd.f32 %v3419_v33, %v3416_v37  ;;  %v2273_v52 = vpop.eup %2272 }
 0x16e   : > { %2288 = vpow2.f32 %v760_v2  ;;  %v2275_v27 = vpop.eup %2274  ;;  %v1439_v24 = vmul.f32 1.442695, %v1401_v35  ;;  %v3428_v51 = vmul.f32 %v2273_v52, %v4132_v22 }
 0x16f   : > { %2290 = vpow2.f32 %v762_v29  ;;  %v1441_v9 = vmul.f32 1.442695, %v1402_v55  ;;  %v683_v50 = vpop.xlane.xlu0 %682  ;;  %849 = vadd.xlane.f32.xlu0 %v848_v4  ;;  %v2277_v7 = vpop.eup %2276  ;;  %v3431_v32 = vmul.f32 %v2275_v27, %v4133_v48  ;;  %v4135_v55 = vld [vmem:[#allocation48_spill] sm:$0xff] }
 0x170   : > { %v726_v28 = vsub.f32 %v3033_v63, %v683_v50  ;;  %v727_v49 = vsub.f32 %v4131_v45, %v683_v50  ;;  %v1361_v6 = vpop.xlane.xlu1 %1360  ;;  %v2279_v15 = vpop.eup %2278  ;;  %2292 = vpow2.f32 %v1439_v24  ;;  %v3436_v60 = vmul.f32 %v2277_v7, %v4128_v10  ;;  %v4136_v24 = vld [vmem:[#allocation49_spill] sm:$0xff]  ;;  %v4137_v50 = vld [vmem:[#allocation50_spill] sm:$0xff] }
 0x171   : > { %v1403_v46 = vsub.f32 %v3056_v23, %v1361_v6  ;;  %v1404_v58 = vsub.f32 %v4134_v53, %v1361_v6  ;;  %2294 = vpow2.f32 %v1441_v9  ;;  %v3439_v38 = vmul.f32 %v2279_v15, %v4129_v30  ;;  %v4138_v6 = vld [vmem:[#allocation12_spill] sm:$0xff] }
 0x172   : > { %v764_v63 = vmul.f32 1.442695, %v726_v28  ;;  %v766_v39 = vmul.f32 1.442695, %v727_v49  ;;  %v1526_v23 = vadd.f32 %v3431_v32, %v3428_v51 }
 0x173   : > { %v1443_v5 = vmul.f32 1.442695, %v1403_v46  ;;  %v1445_v2 = vmul.f32 1.442695, %v1404_v58  ;;  %v2281_v29 = vpop.eup %2280  ;;  %v1523_v35 = vadd.f32 %v3439_v38, %v3436_v60 }
 0x174   : > { %2296 = vpow2.f32 %v764_v63  ;;  %v686_v59 = vpop.xlane.xlu0 %685  ;;  %v2283_v34 = vpop.eup %2282  ;;  %v3448_v30 = vmul.f32 %v2281_v29, %v4132_v22  ;;  %v4139_v63 = vld [vmem:[#allocation13_spill] sm:$0xff] }
 0x175   : > { %2298 = vpow2.f32 %v766_v39  ;;  %v728_v10 = vsub.f32 %v3078_v12, %v686_v59  ;;  %v729_v4 = vsub.f32 %v4135_v55, %v686_v59  ;;  %v1364_v52 = vpop.xlane.xlu1 %1363  ;;  %v2285_v27 = vpop.eup %2284  ;;  %1524 = vadd.xlane.f32.xlu1 %v1523_v35  ;;  %v3453_v28 = vmul.f32 %v2283_v34, %v4133_v48  ;;  %v4140_v55 = vld [vmem:[#allocation51_spill] sm:$0xff] }
 0x176   : > { %2300 = vpow2.f32 %v1443_v5  ;;  %v1405_v9 = vsub.f32 %v4136_v24, %v1364_v52  ;;  %v1406_v7 = vsub.f32 %v4137_v50, %v1364_v52  ;;  %v2287_v45 = vpop.eup %2286  ;;  %v3456_v15 = vmul.f32 %v2285_v27, %v4138_v6 }
 0x177   : > { %2302 = vpow2.f32 %v1445_v2  ;;  %v768_v49 = vmul.f32 1.442695, %v728_v10  ;;  %v770_v12 = vmul.f32 1.442695, %v729_v4  ;;  %v851_v58 = vadd.f32 %v3453_v28, %v3448_v30 }
 0x178   : > { %v2289_v46 = vpop.eup %2288  ;;  %v1447_v22 = vmul.f32 1.442695, %v1405_v9  ;;  %v1449_v53 = vmul.f32 1.442695, %v1406_v7  ;;  %v3461_v39 = vmul.f32 %v2287_v45, %v4139_v63 }
 0x179   : > { %v2291_v5 = vpop.eup %2290  ;;  %2304 = vpow2.f32 %v768_v49  ;;  %v689_v48 = vpop.xlane.xlu0 %688  ;;  %v3464_v2 = vmul.f32 %v2289_v46, %v4138_v6  ;;  %852 = vadd.xlane.f32.xlu0 %v851_v58  ;;  %1527 = vadd.xlane.f32.xlu1 %v1526_v23  ;;  %v4141_v23 = vld [vmem:[#allocation14_spill] sm:$0xff]  ;;  %v4142_v49 = vld [vmem:[#allocation15_spill] sm:$0xff] }
 0x17a   : > { %v1367_v29 = vpop.xlane.xlu1 %1366  ;;  %2306 = vpow2.f32 %v770_v12  ;;  %v730_v59 = vsub.f32 %v3109_v31, %v689_v48  ;;  %v731_v35 = vsub.f32 %v3115_v8, %v689_v48  ;;  %v2293_v10 = vpop.eup %2292  ;;  %v3471_v52 = vmul.f32 %v2291_v5, %v4139_v63  ;;  %v4144_v5 = vld [vmem:[#allocation53_spill] sm:$0xff] }
 0x17b   : > { %v1407_v34 = vsub.f32 %v3118_v0, %v1367_v29  ;;  %2308 = vpow2.f32 %v1447_v22  ;;  %v1408_v4 = vsub.f32 %v4140_v55, %v1367_v29  ;;  %v1529_v27 = vadd.f32 %v3461_v39, %v3456_v15  ;;  %v2295_v24 = vpop.eup %2294  ;;  %v4143_v22 = vld [vmem:[#allocation52_spill] sm:$0xff]  ;;  %v4145_v29 = vld [vmem:[#allocation54_spill] sm:$0xff] }
 0x17c   : > { %2310 = vpow2.f32 %v1449_v53  ;;  %v772_v9 = vmul.f32 1.442695, %v730_v59  ;;  %v774_v31 = vmul.f32 1.442695, %v731_v35  ;;  %v854_v0 = vadd.f32 %v3471_v52, %v3464_v2 }
 0x17d   : > { %v1451_v50 = vmul.f32 1.442695, %v1407_v34  ;;  %v1453_v8 = vmul.f32 1.442695, %v1408_v4  ;;  %v692_v7 = vpop.xlane.xlu0 %691  ;;  %v3478_v45 = vmul.f32 %v2293_v10, %v4141_v23  ;;  %v3481_v12 = vmul.f32 %v2295_v24, %v4142_v49  ;;  %1530 = vadd.xlane.f32.xlu1 %v1529_v27 }
 0x17e   : > { %v2297_v6 = vpop.eup %2296  ;;  %2312 = vpow2.f32 %v772_v9  ;;  %v732_v46 = vsub.f32 %v3140_v56, %v692_v7  ;;  %v733_v53 = vsub.f32 %v4143_v22, %v692_v7  ;;  %v1370_v58 = vpop.xlane.xlu1 %1369  ;;  %855 = vadd.xlane.f32.xlu0 %v854_v0 }
 0x17f   : > { %v2299_v63 = vpop.eup %2298  ;;  %2314 = vpow2.f32 %v774_v31  ;;  %v1409_v48 = vsub.f32 %v4144_v5, %v1370_v58  ;;  %v1410_v59 = vsub.f32 %v4145_v29, %v1370_v58  ;;  %v3488_v35 = vmul.f32 %v2297_v6, %v4141_v23  ;;  %v4147_v23 = vld [vmem:[#allocation16_spill] sm:$0xff]  ;;  %v4149_v6 = vld [vmem:[#allocation17_spill] sm:$0xff] }
 0x180   : > { %v2301_v34 = vpop.eup %2300  ;;  %2316 = vpow2.f32 %v1451_v50  ;;  %v776_v10 = vmul.f32 1.442695, %v732_v46  ;;  %v778_v55 = vmul.f32 1.442695, %v733_v53  ;;  %v3491_v56 = vmul.f32 %v2299_v63, %v4142_v49  ;;  %v4150_v53 = vld [vmem:[#allocation55_spill] sm:$0xff]  ;;  %v428_v63 = vld [vmem:[%s3947_s0 + $0xc0] sm:$0xff] }
 0x181   : > { %4146 = vst [vmem:[#allocation40_spill] sm:$0xff] %v3488_v35  ;;  %v2303_v4 = vpop.eup %2302  ;;  %2318 = vpow2.f32 %v1453_v8  ;;  %v1455_v27 = vmul.f32 1.442695, %v1409_v48  ;;  %v1457_v24 = vmul.f32 1.442695, %v1410_v59  ;;  %v1532_v9 = vadd.f32 %v3481_v12, %v3478_v45  ;;  %v429_v5 = vld [vmem:[%s3947_s0 + $0xc8] sm:$0xff] }
 0x182   : > { %2320 = vpow2.f32 %v776_v10  ;;  %v695_v31 = vpop.xlane.xlu0 %694  ;;  %v1373_v7 = vpop.xlane.xlu1 %1372  ;;  %v857_v0 = vadd.f32 %v3491_v56, %v3488_v35  ;;  %v3498_v50 = vmul.f32 %v2301_v34, %v4147_v23  ;;  %v3501_v46 = vmul.f32 %v2303_v4, %v4149_v6  ;;  %v4151_v29 = vld [vmem:[#allocation56_spill] sm:$0xff] }
 0x183   : > { %v2305_v49 = vpop.eup %2304  ;;  %2322 = vpow2.f32 %v778_v55  ;;  %v734_v8 = vsub.f32 %v3171_v25, %v695_v31  ;;  %v735_v22 = vsub.f32 %v3177_v40, %v695_v31  ;;  %v1411_v58 = vsub.f32 %v4150_v53, %v1373_v7  ;;  %1533 = vadd.xlane.f32.xlu1 %v1532_v9 }
 0x184   : > { %4148 = vst [vmem:[#allocation41_spill] sm:$0xff] %v3498_v50  ;;  %v2307_v48 = vpop.eup %2306  ;;  %2324 = vpow2.f32 %v1455_v27  ;;  %v1412_v59 = vsub.f32 %v4151_v29, %v1373_v7  ;;  %858 = vadd.xlane.f32.xlu0 %v857_v0  ;;  %v3514_v25 = vmul.f32 %v2305_v49, %v4147_v23  ;;  %v1535_v40 = vadd.f32 %v3501_v46, %v3498_v50  ;;  %v4153_v27 = vld [vmem:[#allocation18_spill] sm:$0xff]  ;;  %v4154_v49 = vld [vmem:[#allocation57_spill] sm:$0xff] }
 0x185   : > { %v2309_v34 = vpop.eup %2308  ;;  %2326 = vpow2.f32 %v1457_v24  ;;  %v780_v10 = vmul.f32 1.442695, %v734_v8  ;;  %v782_v55 = vmul.f32 1.442695, %v735_v22  ;;  %v1459_v4 = vmul.f32 1.442695, %v1411_v58 }
 0x186   : > { %4152 = vst [vmem:[#allocation42_spill] sm:$0xff] %v3514_v25  ;;  %v2311_v9 = vpop.eup %2310  ;;  %v1461_v31 = vmul.f32 1.442695, %v1412_v59  ;;  %v3519_v35 = vmul.f32 %v2307_v48, %v4149_v6  ;;  %v3522_v7 = vmul.f32 %v2309_v34, %v4153_v27  ;;  %v2163_v0 = vpack.c.bf16 %v429_v5, %v428_v63  ;;  %v4155_v24 = vld [vmem:[#allocation19_spill] sm:$0xff]  ;;  %v4156_v58 = vld [vmem:[#allocation58_spill] sm:$0xff]  ;;  %v413_v63 = vld [vmem:[%s3947_s0 + $0x48] sm:$0xff] }
 0x187   : > { %v698_v53 = vpop.xlane.xlu0 %697  ;;  %2328 = vpow2.f32 %v780_v10  ;;  %1536 = vadd.xlane.f32.xlu1 %v1535_v40  ;;  %v3527_v8 = vmul.f32 %v2311_v9, %v4155_v24  ;;  %v4157_v6 = vld [vmem:[#allocation59_spill] sm:$0xff] }
 0x188   : > { %v736_v23 = vsub.f32 %v3202_v20, %v698_v53  ;;  %v737_v29 = vsub.f32 %v4154_v49, %v698_v53  ;;  %v1376_v50 = vpop.xlane.xlu1 %1375  ;;  %v2313_v22 = vpop.eup %2312  ;;  %2330 = vpow2.f32 %v782_v55  ;;  %v860_v34 = vadd.f32 %v3519_v35, %v3514_v25  ;;  %2164 = vmatprep.subr.bf16.mxu0 %v2163_v0  ;;  %v412_v20 = vld [vmem:[%s3947_s0 + $0x40] sm:$0xff]  ;;  %2196 = vmatprep.subr.bf16.mxu1 %v2163_v0 }
 0x189   : > { %v1413_v59 = vsub.f32 %v4156_v58, %v1376_v50  ;;  %v1414_v48 = vsub.f32 %v4157_v6, %v1376_v50  ;;  %v2315_v5 = vpop.eup %2314  ;;  %2332 = vpow2.f32 %v1459_v4  ;;  %v3540_v55 = vmul.f32 %v2313_v22, %v4153_v27  ;;  %v4160_v0 = vld [vmem:[#allocation20_spill] sm:$0xff] }
 0x18a   : > { %v784_v40 = vmul.f32 1.442695, %v736_v23  ;;  %v786_v10 = vmul.f32 1.442695, %v737_v29  ;;  %v2317_v50 = vpop.eup %2316  ;;  %2334 = vpow2.f32 %v1461_v31  ;;  %861 = vadd.xlane.f32.xlu0 %v860_v34  ;;  %v3543_v49 = vmul.f32 %v2315_v5, %v4155_v24  ;;  %v4163_v34 = vld [vmem:[#allocation61_spill] sm:$0xff] }
 0x18b   : > { %4158 = vst [vmem:[#allocation43_spill] sm:$0xff] %v3540_v55  ;;  %v1463_v9 = vmul.f32 1.442695, %v1413_v59  ;;  %v1465_v53 = vmul.f32 1.442695, %v1414_v48  ;;  %v2319_v58 = vpop.eup %2318  ;;  %v1538_v4 = vadd.f32 %v3527_v8, %v3522_v7  ;;  %v3548_v23 = vmul.f32 %v2317_v50, %v4160_v0  ;;  %v4162_v59 = vld [vmem:[#allocation60_spill] sm:$0xff] }
 0x18c   : > { %4159 = vst [vmem:[#allocation44_spill] sm:$0xff] %v3543_v49  ;;  %2336 = vpow2.f32 %v784_v40  ;;  %v701_v6 = vpop.xlane.xlu0 %700  ;;  %v1379_v25 = vpop.xlane.xlu1 %1378  ;;  %v2165_v27 = vpack.c.bf16 %v413_v63, %v412_v20  ;;  %v863_v40 = vadd.f32 %v3543_v49, %v3540_v55  ;;  %v4170_v55 = vld [vmem:[#allocation64_spill] sm:$0xff] }
 0x18d   : > { %4161 = vst [vmem:[#allocation8_spill] sm:$0xff] %v3548_v23  ;;  %v2321_v29 = vpop.eup %2320  ;;  %2338 = vpow2.f32 %v786_v10  ;;  %v738_v31 = vsub.f32 %v3233_v47, %v701_v6  ;;  %v739_v22 = vsub.f32 %v3239_v18, %v701_v6  ;;  %v1415_v24 = vsub.f32 %v4162_v59, %v1379_v25  ;;  %1539 = vadd.xlane.f32.xlu1 %v1538_v4  ;;  %v4165_v4 = vld [vmem:[#allocation22_spill] sm:$0xff] }
 0x18e   : > { %v2323_v48 = vpop.eup %2322  ;;  %2340 = vpow2.f32 %v1463_v9  ;;  %v1416_v5 = vsub.f32 %v4163_v34, %v1379_v25  ;;  %v3557_v50 = vmul.f32 %v2321_v29, %v4160_v0  ;;  %2166 = vmatpush3.bf16.msra.mxu0 %v2165_v27  ;;  %2198 = vmatpush3.bf16.msra.mxu1 %v2165_v27  ;;  %v4164_v9 = vld [vmem:[#allocation21_spill] sm:$0xff]  ;;  %v4167_v29 = vld [vmem:[#allocation62_spill] sm:$0xff]  ;;  %v4168_v27 = vld [vmem:[#allocation23_spill] sm:$0xff] }
 0x18f   : > { %v2325_v20 = vpop.eup %2324  ;;  %2342 = vpow2.f32 %v1465_v53  ;;  %v788_v63 = vmul.f32 1.442695, %v738_v31  ;;  %v790_v47 = vmul.f32 1.442695, %v739_v22  ;;  %v1467_v10 = vmul.f32 1.442695, %v1415_v24  ;;  %864 = vadd.xlane.f32.xlu0 %v863_v40 }
 0x190   : > { %v2327_v18 = vpop.eup %2326  ;;  %v1469_v6 = vmul.f32 1.442695, %v1416_v5  ;;  %v704_v59 = vpop.xlane.xlu0 %703  ;;  %v3560_v25 = vmul.f32 %v2323_v48, %v4164_v9  ;;  %v3563_v34 = vmul.f32 %v2319_v58, %v4164_v9  ;;  %v3566_v0 = vmul.f32 %v2325_v20, %v4165_v4  ;;  %v4169_v40 = vld [vmem:[#allocation63_spill] sm:$0xff] }
 0x191   : > { %2344 = vpow2.f32 %v788_v63  ;;  %v740_v53 = vsub.f32 %v3260_v16, %v704_v59  ;;  %v741_v31 = vsub.f32 %v4167_v29, %v704_v59  ;;  %v3571_v24 = vmul.f32 %v2327_v18, %v4168_v27  ;;  %v2329_v5 = vpop.eup %2328 }
 0x192   : > { %4166 = vst [vmem:[#allocation10_spill] sm:$0xff] %v3566_v0  ;;  %v1382_v22 = vpop.xlane.xlu1 %1381  ;;  %2346 = vpow2.f32 %v790_v47  ;;  %v866_v58 = vadd.f32 %v3560_v25, %v3557_v50  ;;  %v2331_v20 = vpop.eup %2330  ;;  %v1541_v16 = vadd.f32 %v3563_v34, %v3548_v23  ;;  %v3580_v47 = vmul.f32 %v2329_v5, %v4165_v4 }
 0x193   : > { %v1417_v48 = vsub.f32 %v4169_v40, %v1382_v22  ;;  %v1418_v49 = vsub.f32 %v4170_v55, %v1382_v22  ;;  %2348 = vpow2.f32 %v1467_v10  ;;  %v792_v63 = vmul.f32 1.442695, %v740_v53  ;;  %v2333_v59 = vpop.eup %2332 }
 0x194   : > { %v794_v9 = vmul.f32 1.442695, %v741_v31  ;;  %2350 = vpow2.f32 %v1469_v6  ;;  %867 = vadd.xlane.f32.xlu0 %v866_v58  ;;  %v2335_v40 = vpop.eup %2334  ;;  %1542 = vadd.xlane.f32.xlu1 %v1541_v16  ;;  %v3583_v10 = vmul.f32 %v2331_v20, %v4168_v27  ;;  %v1544_v53 = vadd.f32 %v3571_v24, %v3566_v0  ;;  %v4171_v31 = vld [vmem:[#allocation24_spill] sm:$0xff] }
 0x195   : > { %v1471_v18 = vmul.f32 1.442695, %v1417_v48  ;;  %v1473_v29 = vmul.f32 1.442695, %v1418_v49  ;;  %2352 = vpow2.f32 %v792_v63  ;;  %v707_v55 = vpop.xlane.xlu0 %706  ;;  %v3588_v23 = vmul.f32 %v2333_v59, %v4171_v31 }
 0x196   : > { %v1385_v22 = vpop.xlane.xlu1 %1384  ;;  %v2337_v6 = vpop.eup %2336  ;;  %2354 = vpow2.f32 %v794_v9  ;;  %v742_v49 = vsub.f32 %v3280_v62, %v707_v55  ;;  %v743_v4 = vsub.f32 %v3283_v41, %v707_v55  ;;  %v869_v27 = vadd.f32 %v3583_v10, %v3580_v47  ;;  %v4173_v55 = vld [vmem:[#allocation26_spill] sm:$0xff] }
 0x197   : > { %v1419_v5 = vsub.f32 %v3286_v57, %v1385_v22  ;;  %v2339_v48 = vpop.eup %2338  ;;  %2356 = vpow2.f32 %v1471_v18  ;;  %v1420_v58 = vsub.f32 %v3289_v54, %v1385_v22  ;;  %v3597_v20 = vmul.f32 %v2337_v6, %v4171_v31  ;;  %v4172_v57 = vld [vmem:[#allocation25_spill] sm:$0xff] }
 0x198   : > { %v2341_v63 = vpop.eup %2340  ;;  %2358 = vpow2.f32 %v1473_v29  ;;  %v796_v16 = vmul.f32 1.442695, %v742_v49  ;;  %v798_v9 = vmul.f32 1.442695, %v743_v4  ;;  %870 = vadd.xlane.f32.xlu0 %v869_v27  ;;  %1545 = vadd.xlane.f32.xlu1 %v1544_v53  ;;  %v3600_v18 = vmul.f32 %v2339_v48, %v4172_v57  ;;  %v4174_v49 = vld [vmem:[#allocation27_spill] sm:$0xff] }
 0x199   : > { %v1475_v59 = vmul.f32 1.442695, %v1419_v5  ;;  %v2343_v62 = vpop.eup %2342  ;;  %v1477_v0 = vmul.f32 1.442695, %v1420_v58  ;;  %v710_v41 = vpop.xlane.xlu0 %709  ;;  %v3603_v54 = vmul.f32 %v2335_v40, %v4172_v57  ;;  %v3606_v22 = vmul.f32 %v2341_v63, %v4173_v55 }
 0x19a   : > { %2360 = vpow2.f32 %v796_v16  ;;  %v744_v29 = vsub.f32 %v3300_v44, %v710_v41  ;;  %v745_v31 = vsub.f32 %v3303_v26, %v710_v41  ;;  %v1388_v6 = vpop.xlane.xlu1 %1387  ;;  %v3611_v4 = vmul.f32 %v2343_v62, %v4174_v49 }
 0x19b   : > { %v2345_v5 = vpop.eup %2344  ;;  %2362 = vpow2.f32 %v798_v9  ;;  %v1421_v53 = vsub.f32 %v3306_v11, %v1388_v6  ;;  %v1422_v48 = vsub.f32 %v3309_v13, %v1388_v6  ;;  %v872_v40 = vadd.f32 %v3600_v18, %v3597_v20 }
 0x19c   : > { %v2347_v58 = vpop.eup %2346  ;;  %2364 = vpow2.f32 %v1475_v59  ;;  %v800_v27 = vmul.f32 1.442695, %v744_v29  ;;  %v802_v63 = vmul.f32 1.442695, %v745_v31  ;;  %v1547_v44 = vadd.f32 %v3603_v54, %v3588_v23 }
 0x19d   : > { %v2349_v26 = vpop.eup %2348  ;;  %2366 = vpow2.f32 %v1477_v0  ;;  %v1479_v16 = vmul.f32 1.442695, %v1421_v53  ;;  %v1481_v62 = vmul.f32 1.442695, %v1422_v48  ;;  %v713_v41 = vpop.xlane.xlu0 %712  ;;  %873 = vadd.xlane.f32.xlu0 %v872_v40  ;;  %v3620_v11 = vmul.f32 %v2345_v5, %v4173_v55 }
 0x19e   : > { %v2351_v13 = vpop.eup %2350  ;;  %2368 = vpow2.f32 %v800_v27  ;;  %v746_v9 = vsub.f32 %v3314_v17, %v713_v41  ;;  %v747_v59 = vsub.f32 %v3317_v36, %v713_v41  ;;  %1548 = vadd.xlane.f32.xlu1 %v1547_v44  ;;  %v1391_v57 = vpop.xlane.xlu1 %1390  ;;  %v3625_v29 = vmul.f32 %v2347_v58, %v4174_v49  ;;  %v4175_v27 = vld [vmem:[#allocation28_spill] sm:$0xff]  ;;  %v4176_v41 = vld [vmem:[#allocation29_spill] sm:$0xff] }
 0x19f   : > { %v2353_v31 = vpop.eup %2352  ;;  %2370 = vpow2.f32 %v802_v63  ;;  %v1423_v0 = vsub.f32 %v3322_v19, %v1391_v57  ;;  %v1424_v6 = vsub.f32 %v3325_v43, %v1391_v57  ;;  %v1550_v55 = vadd.f32 %v3611_v4, %v3606_v22 }
 0x1a0   : > { %v2355_v5 = vpop.eup %2354  ;;  %2372 = vpow2.f32 %v1479_v16  ;;  %v804_v53 = vmul.f32 1.442695, %v746_v9  ;;  %v806_v17 = vmul.f32 1.442695, %v747_v59  ;;  %v875_v36 = vadd.f32 %v3625_v29, %v3620_v11 }
 0x1a1   : > { %v2357_v48 = vpop.eup %2356  ;;  %2374 = vpow2.f32 %v1481_v62  ;;  %v1483_v49 = vmul.f32 1.442695, %v1423_v0  ;;  %v1485_v40 = vmul.f32 1.442695, %v1424_v6  ;;  %v716_v58 = vpop.xlane.xlu0 %715  ;;  %v3634_v63 = vmul.f32 %v2353_v31, %v4175_v27 }
 0x1a2   : > { %v2359_v19 = vpop.eup %2358  ;;  %2376 = vpow2.f32 %v804_v53  ;;  %v748_v43 = vsub.f32 %v3338_v61, %v716_v58  ;;  %v749_v44 = vsub.f32 %v3341_v3, %v716_v58  ;;  %876 = vadd.xlane.f32.xlu0 %v875_v36  ;;  %1551 = vadd.xlane.f32.xlu1 %v1550_v55  ;;  %v1394_v16 = vpop.xlane.xlu1 %1393  ;;  %v3639_v9 = vmul.f32 %v2355_v5, %v4176_v41  ;;  %v4177_v36 = vld [vmem:[#allocation30_spill] sm:$0xff] }
 0x1a3   : > { %2378 = vpow2.f32 %v806_v17  ;;  %v1425_v62 = vsub.f32 %v3328_v42, %v1394_v16  ;;  %v1426_v59 = vsub.f32 %v3331_v1, %v1394_v16  ;;  %v3644_v57 = vmul.f32 %v2349_v26, %v4175_v27  ;;  %v4178_v27 = vld [vmem:[#allocation31_spill] sm:$0xff] }
 0x1a4   : > { %v2361_v31 = vpop.eup %2360  ;;  %2380 = vpow2.f32 %v1483_v49  ;;  %v808_v0 = vmul.f32 1.442695, %v748_v43  ;;  %v810_v61 = vmul.f32 1.442695, %v749_v44  ;;  %v878_v3 = vadd.f32 %v3639_v9, %v3634_v63 }
 0x1a5   : > { %v2363_v6 = vpop.eup %2362  ;;  %2382 = vpow2.f32 %v1485_v40  ;;  %v1487_v55 = vmul.f32 1.442695, %v1425_v62  ;;  %v1489_v5 = vmul.f32 1.442695, %v1426_v59  ;;  %v719_v53 = vpop.xlane.xlu0 %718  ;;  %v3649_v17 = vmul.f32 %v2351_v13, %v4176_v41  ;;  %v415_v59 = vld [vmem:[%s3947_s0 + $0x58] sm:$0xff] }
 0x1a6   : > { %v2365_v42 = vpop.eup %2364  ;;  %2384 = vpow2.f32 %v808_v0  ;;  %v750_v1 = vsub.f32 %v3348_v14, %v719_v53  ;;  %v751_v26 = vsub.f32 %v3351_v21, %v719_v53  ;;  %879 = vadd.xlane.f32.xlu0 %v878_v3  ;;  %v3654_v49 = vmul.f32 %v2361_v31, %v4177_v36  ;;  %v430_v14 = vld [vmem:[%s3947_s0 + $0xd0] sm:$0xff]  ;;  %v431_v21 = vld [vmem:[%s3947_s0 + $0xd8] sm:$0xff]  ;;  %v4182_v53 = vld [vmem:[#allocation33_spill] sm:$0xff] }
 0x1a7   : > { %v2367_v58 = vpop.eup %2366  ;;  %2386 = vpow2.f32 %v810_v61  ;;  %v1553_v40 = vadd.f32 %v3649_v17, %v3644_v57  ;;  %v3659_v43 = vmul.f32 %v2363_v6, %v4178_v27  ;;  %v3662_v13 = vmul.f32 %v2357_v48, %v4177_v36  ;;  %v414_v48 = vld [vmem:[%s3947_s0 + $0x50] sm:$0xff]  ;;  %v4180_v61 = vld [vmem:[#allocation32_spill] sm:$0xff]  ;;  %v433_v6 = vld [vmem:[%s3947_s0 + $0xe8] sm:$0xff] }
 0x1a8   : > { %v2369_v44 = vpop.eup %2368  ;;  %2388 = vpow2.f32 %v1487_v55  ;;  %v812_v16 = vmul.f32 1.442695, %v750_v1  ;;  %v814_v41 = vmul.f32 1.442695, %v751_v26  ;;  %v3671_v62 = vmul.f32 %v2359_v19, %v4178_v27  ;;  %v432_v19 = vld [vmem:[%s3947_s0 + $0xe0] sm:$0xff] }
 0x1a9   : > { %4179 = vst [vmem:[#allocation45_spill] sm:$0xff] %v3662_v13  ;;  %v2371_v31 = vpop.eup %2370  ;;  %2390 = vpow2.f32 %v1489_v5  ;;  %1554 = vadd.xlane.f32.xlu1 %v1553_v40  ;;  %v881_v0 = vadd.f32 %v3659_v43, %v3654_v49  ;;  %v3682_v3 = vmul.f32 %v2369_v44, %v4180_v61  ;;  %v3696_v26 = vmul.f32 %v2365_v42, %v4180_v61 }
 0x1aa   : > { %v2373_v55 = vpop.eup %2372  ;;  %2392 = vpow2.f32 %v812_v16  ;;  %v1556_v5 = vadd.f32 %v3671_v62, %v3662_v13  ;;  %v3693_v1 = vmul.f32 %v2371_v31, %v4182_v53  ;;  %v3699_v40 = vmul.f32 %v2367_v58, %v4182_v53  ;;  %v416_v16 = vld [vmem:[%s3947_s0 + $0x60] sm:$0xff]  ;;  %v417_v31 = vld [vmem:[%s3947_s0 + $0x68] sm:$0xff]  ;;  %v434_v58 = vld [vmem:[%s3947_s0 + $0xf0] sm:$0xff] }
 0x1ab   : > { %4181 = vst [vmem:[#allocation46_spill] sm:$0xff] %v3682_v3  ;;  %4184 = vst [vmem:[#allocation11_spill] sm:$0xff] %v3696_v26  ;;  %v2375_v36 = vpop.eup %2374  ;;  %2394 = vpow2.f32 %v814_v41  ;;  %882 = vadd.xlane.f32.xlu0 %v881_v0  ;;  %v2167_v27 = vpack.c.bf16 %v431_v21, %v430_v14  ;;  %v2169_v44 = vpack.c.bf16 %v415_v59, %v414_v48  ;;  %v435_v14 = vld [vmem:[%s3947_s0 + $0xf8] sm:$0xff]  ;;  %v4186_v41 = vld [vmem:[#allocation34_spill] sm:$0xff] }
 0x1ac   : > { %4183 = vst [vmem:[#allocation9_spill] sm:$0xff] %v3693_v1  ;;  %4185 = vst [vmem:[#allocation47_spill] sm:$0xff] %v3699_v40  ;;  %v2377_v13 = vpop.eup %2376  ;;  %v884_v42 = vadd.f32 %v3693_v1, %v3682_v3  ;;  %v2171_v61 = vpack.c.bf16 %v433_v6, %v432_v19  ;;  %v4188_v0 = vld [vmem:[#allocation35_spill] sm:$0xff]  ;;  %v3722_v19 = vmul.f32 %v2373_v55, %v4186_v41 }
 0x1ad   : > { %v2379_v21 = vpop.eup %2378  ;;  %1557 = vadd.xlane.f32.xlu1 %v1556_v5  ;;  %v3716_v48 = vmul.f32 %v2377_v13, %v4186_v41  ;;  %2168 = vmatprep.subr.bf16.mxu0 %v2167_v27  ;;  %v2173_v6 = vpack.c.bf16 %v417_v31, %v416_v16  ;;  %v1559_v1 = vadd.f32 %v3699_v40, %v3696_v26  ;;  %v419_v55 = vld [vmem:[%s3947_s0 + $0x78] sm:$0xff] }
 0x1ae   : > { %v2381_v59 = vpop.eup %2380  ;;  %v3719_v53 = vmul.f32 %v2379_v21, %v4188_v0  ;;  %2170 = vmatpush3.bf16.msra.mxu0 %v2169_v44  ;;  %2200 = vmatprep.subr.bf16.mxu1 %v2167_v27  ;;  %v3727_v5 = vmul.f32 %v2375_v36, %v4188_v0  ;;  %v2175_v13 = vpack.c.bf16 %v435_v14, %v434_v58  ;;  %v418_v21 = vld [vmem:[%s3947_s0 + $0x70] sm:$0xff]  ;;  %v4190_v14 = vld [vmem:[#allocation37_spill] sm:$0xff] }
 0x1af   : > { %4187 = vst [vmem:[#allocation48_spill] sm:$0xff] %v3716_v48  ;;  %v2383_v3 = vpop.eup %2382  ;;  %885 = vadd.xlane.f32.xlu0 %v884_v42  ;;  %2172 = vmatprep.subr.bf16.mxu0 %v2171_v61  ;;  %v4189_v42 = vld [vmem:[#allocation36_spill] sm:$0xff]  ;;  %v2177_v0 = vpack.c.bf16 %v419_v55, %v418_v21  ;;  %v4191_v21 = vld [vmem:[#allocation38_spill] sm:$0xff] }
 0x1b0   : > { %v2385_v16 = vpop.eup %2384  ;;  %v887_v27 = vadd.f32 %v3719_v53, %v3716_v48  ;;  %2202 = vmatpush3.bf16.msra.mxu1 %v2169_v44  ;;  %v1562_v40 = vadd.f32 %v3727_v5, %v3722_v19  ;;  %v3746_v48 = vmul.f32 %v2381_v59, %v4189_v42 }
 0x1b1   : > { %v2387_v31 = vpop.eup %2386  ;;  %1560 = vadd.xlane.f32.xlu1 %v1559_v1  ;;  %v3738_v36 = vmul.f32 %v2385_v16, %v4189_v42  ;;  %2204 = vmatprep.subr.bf16.mxu1 %v2171_v61  ;;  %v3749_v1 = vmul.f32 %v2383_v3, %v4190_v14 }
 0x1b2   : > { %v2389_v58 = vpop.eup %2388  ;;  %v3741_v41 = vmul.f32 %v2387_v31, %v4190_v14  ;;  %2174 = vmatpush3.bf16.msra.mxu0 %v2173_v6 }
 0x1b3   : > { %v2391_v26 = vpop.eup %2390  ;;  %888 = vadd.xlane.f32.xlu0 %v887_v27  ;;  %2176 = vmatprep.subr.bf16.mxu0 %v2175_v13  ;;  %v4192_v27 = vld [vmem:[#allocation39_spill] sm:$0xff]  ;;  %v1565_v3 = vadd.f32 %v3749_v1, %v3746_v48  ;;  %v3762_v59 = vmul.f32 %v2389_v58, %v4191_v21 }
 0x1b4   : > { %v2393_v44 = vpop.eup %2392  ;;  %v890_v61 = vadd.f32 %v3741_v41, %v3738_v36  ;;  %2206 = vmatpush3.bf16.msra.mxu1 %v2173_v6  ;;  %v3765_v42 = vmul.f32 %v2391_v26, %v4192_v27 }
 0x1b5   : > { %v2395_v16 = vpop.eup %2394  ;;  %1563 = vadd.xlane.f32.xlu1 %v1562_v40  ;;  %v3754_v55 = vmul.f32 %v2393_v44, %v4191_v21  ;;  %2208 = vmatprep.subr.bf16.mxu1 %v2175_v13  ;;  %4193 = vst [vmem:[#allocation49_spill] sm:$0xff] %v3762_v59 }
 0x1b6   : > { %v3757_v31 = vmul.f32 %v2395_v16, %v4192_v27  ;;  %2178 = vmatpush3.bf16.msra.mxu0 %v2177_v0  ;;  %v1568_v6 = vadd.f32 %v3765_v42, %v3762_v59 }
 0x1b7   : > { %891 = vadd.xlane.f32.xlu0 %v890_v61 }
 0x1b8   : > { %v893_v40 = vadd.f32 %v3757_v31, %v3754_v55  ;;  %2210 = vmatpush3.bf16.msra.mxu1 %v2177_v0 }
 0x1b9   : > { %1566 = vadd.xlane.f32.xlu1 %v1565_v3 }
 0x1bb   : > { %894 = vadd.xlane.f32.xlu0 %v893_v40 }
 0x1bd   : > { %1569 = vadd.xlane.f32.xlu1 %v1568_v6 }
 0x1fc   : > { %v850_v13 = vpop.xlane.xlu0 %849 }
 0x1fd   : > { %v896_v14 = vmax.f32 %v850_v13, 1e-30 }
 0x1ff   : > { %2396 = vrcp.f32 %v896_v14 }
 0x202   : > { %v1525_v44 = vpop.xlane.xlu1 %1524 }
 0x203   : > { %v1571_v61 = vmax.f32 %v1525_v44, 1e-30 }
 0x205   : > { %2398 = vrcp.f32 %v1571_v61 }
 0x206   : > { %v853_v58 = vpop.xlane.xlu0 %852  ;;  %v1528_v16 = vpop.xlane.xlu1 %1527 }
 0x207   : > { %v897_v26 = vmax.f32 %v853_v58, 1e-30  ;;  %v1572_v21 = vmax.f32 %v1528_v16, 1e-30 }
 0x209   : > { %v2397_v27 = vpop.eup %2396  ;;  %2400 = vrcp.f32 %v897_v26 }
 0x20a   : > { %v929_v0 = vmul.f32 %v2397_v27, %v3419_v33  ;;  %v928_v3 = vmul.f32 %v2397_v27, %v3416_v37  ;;  %2402 = vrcp.f32 %v1572_v21  ;;  %v1531_v40 = vpop.xlane.xlu1 %1530 }
 0x20b   : > { %v856_v59 = vpop.xlane.xlu0 %855  ;;  %v1573_v6 = vmax.f32 %v1531_v40, 1e-30 }
 0x20c   : > { %1024 = vmatprep.mubr.f32.mxu0 %v929_v0  ;;  %v898_v13 = vmax.f32 %v856_v59, 1e-30 }
 0x20d   : > { %1025 = vmatmul.mubr.f32.vlgmr.msra.gmra.mrb[0].mxu0 %v928_v3  ;;  %2404 = vrcp.f32 %v1573_v6 }
 0x20e   : > { %2406 = vrcp.f32 %v898_v13 }
 0x20f   : > { %v2399_v14 = vpop.eup %2398 }
 0x210   : > { %v1534_v44 = vpop.xlane.xlu1 %1533  ;;  %v1604_v16 = vmul.f32 %v2399_v14, %v3439_v38  ;;  %v1603_v26 = vmul.f32 %v2399_v14, %v3436_v60 }
 0x211   : > { %v859_v61 = vpop.xlane.xlu0 %858  ;;  %v1574_v58 = vmax.f32 %v1534_v44, 1e-30 }
 0x212   : > { %v899_v33 = vmax.f32 %v859_v61, 1e-30  ;;  %1699 = vmatprep.mubr.f32.mxu1 %v1604_v16 }
 0x213   : > { %2408 = vrcp.f32 %v1574_v58  ;;  %v2401_v37 = vpop.eup %2400  ;;  %1700 = vmatmul.mubr.f32.vlgmr.msra.gmra.mrb[0].mxu1 %v1603_v26 }
 0x214   : > { %2410 = vrcp.f32 %v899_v33  ;;  %v1537_v21 = vpop.xlane.xlu1 %1536  ;;  %v2403_v27 = vpop.eup %2402  ;;  %v931_v0 = vmul.f32 %v2401_v37, %v3453_v28  ;;  %v930_v3 = vmul.f32 %v2401_v37, %v3448_v30 }
 0x215   : > { %v1575_v59 = vmax.f32 %v1537_v21, 1e-30  ;;  %v1606_v40 = vmul.f32 %v2403_v27, %v3431_v32  ;;  %v1605_v6 = vmul.f32 %v2403_v27, %v3428_v51 }
 0x216   : > { %1029 = vmatprep.mubr.f32.mxu0 %v931_v0 }
 0x217   : > { %v862_v38 = vpop.xlane.xlu0 %861  ;;  %2412 = vrcp.f32 %v1575_v59  ;;  %v2405_v60 = vpop.eup %2404  ;;  %1704 = vmatprep.mubr.f32.mxu1 %v1606_v40  ;;  %1030 = vmatmul.mubr.f32.gmra.mrb[2].mxu0 %v930_v3 }
 0x218   : > { %v900_v13 = vmax.f32 %v862_v38, 1e-30  ;;  %v2407_v14 = vpop.eup %2406  ;;  %1705 = vmatmul.mubr.f32.gmra.mrb[2].mxu1 %v1605_v6  ;;  %v1608_v44 = vmul.f32 %v2405_v60, %v3461_v39  ;;  %v1607_v61 = vmul.f32 %v2405_v60, %v3456_v15  ;;  %v4195_v6 = vld [vmem:[#allocation41_spill] sm:$0xff] }
 0x219   : > { %v933_v30 = vmul.f32 %v2407_v14, %v3471_v52  ;;  %v932_v32 = vmul.f32 %v2407_v14, %v3464_v2  ;;  %v4194_v52 = vld [vmem:[#allocation40_spill] sm:$0xff] }
 0x21a   : > { %2414 = vrcp.f32 %v900_v13  ;;  %v1540_v28 = vpop.xlane.xlu1 %1539  ;;  %1709 = vmatprep.mubr.f32.mxu1 %v1608_v44  ;;  %v4196_v13 = vld [vmem:[#allocation42_spill] sm:$0xff] }
 0x21b   : > { %v1576_v51 = vmax.f32 %v1540_v28, 1e-30  ;;  %1034 = vmatprep.mubr.f32.mxu0 %v933_v30 }
 0x21c   : > { %v865_v58 = vpop.xlane.xlu0 %864  ;;  %1035 = vmatmul.mubr.f32.gmra.mrb[4].mxu0 %v932_v32  ;;  %1710 = vmatmul.mubr.f32.gmra.mrb[4].mxu1 %v1607_v61 }
 0x21d   : > { %v2409_v16 = vpop.eup %2408  ;;  %v901_v26 = vmax.f32 %v865_v58, 1e-30  ;;  %2416 = vrcp.f32 %v1576_v51 }
 0x21e   : > { %v2411_v33 = vpop.eup %2410  ;;  %v1610_v39 = vmul.f32 %v2409_v16, %v3481_v12  ;;  %v1609_v15 = vmul.f32 %v2409_v16, %v3478_v45 }
 0x21f   : > { %2418 = vrcp.f32 %v901_v26  ;;  %v935_v37 = vmul.f32 %v2411_v33, %v3491_v56  ;;  %v934_v21 = vmul.f32 %v2411_v33, %v4194_v52  ;;  %v4197_v26 = vld [vmem:[#allocation44_spill] sm:$0xff]  ;;  %v4198_v33 = vld [vmem:[#allocation43_spill] sm:$0xff] }
 0x220   : > { %1714 = vmatprep.mubr.f32.mxu1 %v1610_v39 }
 0x221   : > { %v868_v2 = vpop.xlane.xlu0 %867  ;;  %v2413_v27 = vpop.eup %2412  ;;  %1039 = vmatprep.mubr.f32.mxu0 %v935_v37  ;;  %1715 = vmatmul.mubr.f32.gmra.mrb[6].mxu1 %v1609_v15 }
 0x222   : > { %v902_v59 = vmax.f32 %v868_v2, 1e-30  ;;  %v1543_v0 = vpop.xlane.xlu1 %1542  ;;  %1040 = vmatmul.mubr.f32.gmra.mrb[6].mxu0 %v934_v21  ;;  %v1612_v40 = vmul.f32 %v2413_v27, %v3501_v46  ;;  %v1611_v12 = vmul.f32 %v2413_v27, %v4195_v6 }
 0x223   : > { %v1577_v3 = vmax.f32 %v1543_v0, 1e-30 }
 0x224   : > { %2420 = vrcp.f32 %v902_v59  ;;  %v2415_v45 = vpop.eup %2414  ;;  %1719 = vmatprep.mubr.f32.mxu1 %v1612_v40 }
 0x225   : > { %2422 = vrcp.f32 %v1577_v3  ;;  %v871_v56 = vpop.xlane.xlu0 %870  ;;  %v937_v60 = vmul.f32 %v2415_v45, %v3519_v35  ;;  %v936_v14 = vmul.f32 %v2415_v45, %v4196_v13  ;;  %1720 = vmatmul.mubr.f32.gmra.mrb[8].mxu1 %v1611_v12  ;;  %v4199_v3 = vld [vmem:[#allocation8_spill] sm:$0xff] }
 0x226   : > { %v1546_v38 = vpop.xlane.xlu1 %1545  ;;  %v903_v44 = vmax.f32 %v871_v56, 1e-30 }
 0x227   : > { %v1578_v61 = vmax.f32 %v1546_v38, 1e-30  ;;  %v2417_v28 = vpop.eup %2416  ;;  %1044 = vmatprep.mubr.f32.mxu0 %v937_v60  ;;  %v4200_v60 = vld [vmem:[#allocation10_spill] sm:$0xff] }
 0x228   : > { %2424 = vrcp.f32 %v903_v44  ;;  %1045 = vmatmul.mubr.f32.gmra.mrb[8].mxu0 %v936_v14  ;;  %v1614_v46 = vmul.f32 %v2417_v28, %v3527_v8  ;;  %v1613_v30 = vmul.f32 %v2417_v28, %v3522_v7 }
 0x229   : > { %v2419_v32 = vpop.eup %2418  ;;  %2426 = vrcp.f32 %v1578_v61 }
 0x22a   : > { %v874_v51 = vpop.xlane.xlu0 %873  ;;  %v939_v35 = vmul.f32 %v2419_v32, %v4197_v26  ;;  %1724 = vmatprep.mubr.f32.mxu1 %v1614_v46  ;;  %v938_v39 = vmul.f32 %v2419_v32, %v4198_v33 }
 0x22b   : > { %v904_v58 = vmax.f32 %v874_v51, 1e-30  ;;  %v1549_v16 = vpop.xlane.xlu1 %1548  ;;  %1725 = vmatmul.mubr.f32.gmra.mrb[10].mxu1 %v1613_v30 }
 0x22c   : > { %v1579_v15 = vmax.f32 %v1549_v16, 1e-30  ;;  %1049 = vmatprep.mubr.f32.mxu0 %v939_v35 }
 0x22d   : > { %2428 = vrcp.f32 %v904_v58  ;;  %1050 = vmatmul.mubr.f32.gmra.mrb[10].mxu0 %v938_v39 }
 0x22e   : > { %v2421_v37 = vpop.eup %2420  ;;  %2430 = vrcp.f32 %v1579_v15 }
 0x22f   : > { %v2423_v8 = vpop.eup %2422  ;;  %v877_v52 = vpop.xlane.xlu0 %876  ;;  %v941_v21 = vmul.f32 %v2421_v37, %v3560_v25  ;;  %v940_v2 = vmul.f32 %v2421_v37, %v3557_v50 }
 0x230   : > { %v1552_v7 = vpop.xlane.xlu1 %1551  ;;  %v905_v27 = vmax.f32 %v877_v52, 1e-30  ;;  %v1616_v0 = vmul.f32 %v2423_v8, %v3563_v34  ;;  %v1615_v40 = vmul.f32 %v2423_v8, %v4199_v3 }
 0x231   : > { %v1580_v59 = vmax.f32 %v1552_v7, 1e-30  ;;  %1054 = vmatprep.mubr.f32.mxu0 %v941_v21 }
 0x232   : > { %2432 = vrcp.f32 %v905_v27  ;;  %1729 = vmatprep.mubr.f32.mxu1 %v1616_v0  ;;  %1055 = vmatmul.mubr.f32.gmra.mrb[12].mxu0 %v940_v2  ;;  %v2425_v6 = vpop.eup %2424 }
 0x233   : > { %2434 = vrcp.f32 %v1580_v59  ;;  %v880_v12 = vpop.xlane.xlu0 %879  ;;  %1730 = vmatmul.mubr.f32.gmra.mrb[12].mxu1 %v1615_v40  ;;  %v2427_v45 = vpop.eup %2426  ;;  %v943_v25 = vmul.f32 %v2425_v6, %v3583_v10  ;;  %v942_v50 = vmul.f32 %v2425_v6, %v3580_v47 }
 0x234   : > { %v906_v56 = vmax.f32 %v880_v12, 1e-30  ;;  %v1618_v38 = vmul.f32 %v2427_v45, %v3571_v24  ;;  %v1617_v34 = vmul.f32 %v2427_v45, %v4200_v60  ;;  %v4201_v12 = vld [vmem:[#allocation45_spill] sm:$0xff] }
 0x235   : > { %1059 = vmatprep.mubr.f32.mxu0 %v943_v25 }
 0x236   : > { %2436 = vrcp.f32 %v906_v56  ;;  %v1555_v13 = vpop.xlane.xlu1 %1554  ;;  %1734 = vmatprep.mubr.f32.mxu1 %v1618_v38  ;;  %1060 = vmatmul.mubr.f32.gmra.mrb[14].mxu0 %v942_v50  ;;  %v4202_v50 = vld [vmem:[#allocation9_spill] sm:$0xff]  ;;  %v4203_v38 = vld [vmem:[#allocation46_spill] sm:$0xff] }
 0x237   : > { %v2429_v14 = vpop.eup %2428  ;;  %v1581_v44 = vmax.f32 %v1555_v13, 1e-30  ;;  %1735 = vmatmul.mubr.f32.gmra.mrb[14].mxu1 %v1617_v34  ;;  %v4204_v13 = vld [vmem:[#allocation47_spill] sm:$0xff] }
 0x238   : > { %v2431_v61 = vpop.eup %2430  ;;  %v883_v28 = vpop.xlane.xlu0 %882  ;;  %v945_v46 = vmul.f32 %v2429_v14, %v3600_v18  ;;  %v944_v10 = vmul.f32 %v2429_v14, %v3597_v20 }
 0x239   : > { %2438 = vrcp.f32 %v1581_v44  ;;  %v907_v47 = vmax.f32 %v883_v28, 1e-30  ;;  %v1620_v24 = vmul.f32 %v2431_v61, %v3603_v54  ;;  %v1619_v30 = vmul.f32 %v2431_v61, %v3588_v23 }
 0x23a   : > { %v1558_v32 = vpop.xlane.xlu1 %1557  ;;  %1064 = vmatprep.mubr.f32.mxu0 %v945_v46  ;;  %v4206_v46 = vld [vmem:[#allocation48_spill] sm:$0xff] }
 0x23b   : > { %2440 = vrcp.f32 %v907_v47  ;;  %v1582_v51 = vmax.f32 %v1558_v32, 1e-30  ;;  %1739 = vmatprep.mubr.f32.mxu1 %v1620_v24  ;;  %1065 = vmatmul.mubr.f32.gmra.mrb[16].mxu0 %v944_v10 }
 0x23c   : > { %v2433_v58 = vpop.eup %2432  ;;  %v886_v16 = vpop.xlane.xlu0 %885  ;;  %1740 = vmatmul.mubr.f32.gmra.mrb[16].mxu1 %v1619_v30 }
 0x23d   : > { %v2435_v26 = vpop.eup %2434  ;;  %2442 = vrcp.f32 %v1582_v51  ;;  %v908_v18 = vmax.f32 %v886_v16, 1e-30  ;;  %v947_v20 = vmul.f32 %v2433_v58, %v3625_v29  ;;  %v946_v35 = vmul.f32 %v2433_v58, %v3620_v11 }
 0x23e   : > { %v1561_v33 = vpop.xlane.xlu1 %1560  ;;  %v1622_v54 = vmul.f32 %v2435_v26, %v3611_v4  ;;  %v1621_v23 = vmul.f32 %v2435_v26, %v3606_v22 }
 0x23f   : > { %2444 = vrcp.f32 %v908_v18  ;;  %v1583_v39 = vmax.f32 %v1561_v33, 1e-30  ;;  %1069 = vmatprep.mubr.f32.mxu0 %v947_v20 }
 0x240   : > { %v2437_v15 = vpop.eup %2436  ;;  %v889_v37 = vpop.xlane.xlu0 %888  ;;  %1744 = vmatprep.mubr.f32.mxu1 %v1622_v54  ;;  %1070 = vmatmul.mubr.f32.gmra.mrb[18].mxu0 %v946_v35 }
 0x241   : > { %2446 = vrcp.f32 %v1583_v39  ;;  %v909_v8 = vmax.f32 %v889_v37, 1e-30  ;;  %1745 = vmatmul.mubr.f32.gmra.mrb[18].mxu1 %v1621_v23  ;;  %v949_v52 = vmul.f32 %v2437_v15, %v3639_v9  ;;  %v948_v29 = vmul.f32 %v2437_v15, %v3634_v63  ;;  %v3843_v23 = vld [vmem:[%s3949_s2 + $0x1] ss:$0 sm:$0xff] }
 0x242   : > { %v1564_v11 = vpop.xlane.xlu1 %1563 }
 0x243   : > { %v2439_v7 = vpop.eup %2438  ;;  %2448 = vrcp.f32 %v909_v8  ;;  %v1584_v4 = vmax.f32 %v1564_v11, 1e-30  ;;  %1074 = vmatprep.mubr.f32.mxu0 %v949_v52 }
 0x244   : > { %v892_v22 = vpop.xlane.xlu0 %891  ;;  %v1624_v21 = vmul.f32 %v2439_v7, %v3649_v17  ;;  %1075 = vmatmul.mubr.f32.gmra.mrb[20].mxu0 %v948_v29  ;;  %v1623_v2 = vmul.f32 %v2439_v7, %v3644_v57 }
 0x245   : > { %v2441_v27 = vpop.eup %2440  ;;  %2450 = vrcp.f32 %v1584_v4  ;;  %v910_v59 = vmax.f32 %v892_v22, 1e-30 }
 0x246   : > { %1749 = vmatprep.mubr.f32.mxu1 %v1624_v21  ;;  %v1567_v0 = vpop.xlane.xlu1 %1566  ;;  %v951_v9 = vmul.f32 %v2441_v27, %v3659_v43  ;;  %v950_v63 = vmul.f32 %v2441_v27, %v3654_v49 }
 0x247   : > { %v2443_v3 = vpop.eup %2442  ;;  %2452 = vrcp.f32 %v910_v59  ;;  %v1585_v40 = vmax.f32 %v1567_v0, 1e-30  ;;  %1750 = vmatmul.mubr.f32.gmra.mrb[20].mxu1 %v1623_v2 }
 0x248   : > { %1079 = vmatprep.mubr.f32.mxu0 %v951_v9  ;;  %v895_v6 = vpop.xlane.xlu0 %894  ;;  %v1626_v17 = vmul.f32 %v2443_v3, %v3671_v62  ;;  %v1625_v45 = vmul.f32 %v2443_v3, %v4201_v12  ;;  %v4205_v62 = vld [vmem:[#allocation11_spill] sm:$0xff] }
 0x249   : > { %v2445_v57 = vpop.eup %2444  ;;  %2454 = vrcp.f32 %v1585_v40  ;;  %v911_v56 = vmax.f32 %v895_v6, 1e-30  ;;  %1080 = vmatmul.mubr.f32.gmra.mrb[22].mxu0 %v950_v63 }
 0x24a   : > { %1754 = vmatprep.mubr.f32.mxu1 %v1626_v17  ;;  %v1570_v25 = vpop.xlane.xlu1 %1569  ;;  %v953_v43 = vmul.f32 %v2445_v57, %v4202_v50  ;;  %v952_v49 = vmul.f32 %v2445_v57, %v4203_v38 }
 0x24b   : > { %v2447_v60 = vpop.eup %2446  ;;  %2456 = vrcp.f32 %v911_v56  ;;  %v1586_v34 = vmax.f32 %v1570_v25, 1e-30  ;;  %1755 = vmatmul.mubr.f32.gmra.mrb[22].mxu1 %v1625_v45 }
 0x24c   : > { %1084 = vmatprep.mubr.f32.mxu0 %v953_v43  ;;  %v1628_v14 = vmul.f32 %v2447_v60, %v4204_v13  ;;  %v1627_v44 = vmul.f32 %v2447_v60, %v4205_v62 }
 0x24d   : > { %v2449_v61 = vpop.eup %2448  ;;  %2458 = vrcp.f32 %v1586_v34  ;;  %1085 = vmatmul.mubr.f32.gmra.mrb[24].mxu0 %v952_v49 }
 0x24e   : > { %1759 = vmatprep.mubr.f32.mxu1 %v1628_v14  ;;  %v955_v28 = vmul.f32 %v2449_v61, %v3719_v53  ;;  %v954_v10 = vmul.f32 %v2449_v61, %v4206_v46 }
 0x24f   : > { %v2451_v47 = vpop.eup %2450  ;;  %1760 = vmatmul.mubr.f32.gmra.mrb[24].mxu1 %v1627_v44 }
 0x250   : > { %1089 = vmatprep.mubr.f32.mxu0 %v955_v28  ;;  %v1630_v24 = vmul.f32 %v2451_v47, %v3727_v5  ;;  %v1629_v30 = vmul.f32 %v2451_v47, %v3722_v19 }
 0x251   : > { %v2453_v32 = vpop.eup %2452  ;;  %1090 = vmatmul.mubr.f32.gmra.mrb[26].mxu0 %v954_v10 }
 0x252   : > { %1764 = vmatprep.mubr.f32.mxu1 %v1630_v24  ;;  %v957_v51 = vmul.f32 %v2453_v32, %v3741_v41  ;;  %v956_v58 = vmul.f32 %v2453_v32, %v3738_v36  ;;  %v4207_v41 = vld [vmem:[#allocation49_spill] sm:$0xff] }
 0x253   : > { %v2455_v16 = vpop.eup %2454  ;;  %1765 = vmatmul.mubr.f32.gmra.mrb[26].mxu1 %v1629_v30 }
 0x254   : > { %1094 = vmatprep.mubr.f32.mxu0 %v957_v51  ;;  %v1632_v53 = vmul.f32 %v2455_v16, %v3749_v1  ;;  %v1631_v26 = vmul.f32 %v2455_v16, %v3746_v48 }
 0x255   : > { %v2457_v18 = vpop.eup %2456  ;;  %1095 = vmatmul.mubr.f32.gmra.mrb[28].mxu0 %v956_v58 }
 0x256   : > { %1769 = vmatprep.mubr.f32.mxu1 %v1632_v53  ;;  %v959_v5 = vmul.f32 %v2457_v18, %v3757_v31  ;;  %v958_v19 = vmul.f32 %v2457_v18, %v3754_v55  ;;  %v3838_v31 = vld [vmem:[%s3949_s2] ss:$0 sm:$0xff] }
 0x257   : > { %v2459_v20 = vpop.eup %2458  ;;  %1770 = vmatmul.mubr.f32.gmra.mrb[28].mxu1 %v1631_v26 }
 0x258   : > { %1099 = vmatprep.mubr.f32.mxu0 %v959_v5  ;;  %v1634_v36 = vmul.f32 %v2459_v20, %v3765_v42  ;;  %v1633_v35 = vmul.f32 %v2459_v20, %v4207_v41 }
 0x259   : > { %1100 = vmatmul.mubr.f32.gmra.mrb[30].mxu0 %v958_v19 }
 0x25a   : > { %1774 = vmatprep.mubr.f32.mxu1 %v1634_v36 }
 0x25b   : > { %1775 = vmatmul.mubr.f32.gmra.mrb[30].mxu1 %v1633_v35 }
 0x2e0   : > { %v2019_v1 = vpop.f32.mrb[0].mxu0 }
 0x2e1   : > { %v2020_v48 = vpop.f32.mrb[1].mxu0 }
 0x2e2   : > { %v2021_v33 = vadd.f32 %v2020_v48, %v2019_v1 }
 0x2e4   : > { %v1110_v39 = vmul.f32 %v2021_v33, %v3838_v31 }
 0x2e6   : > { %v2099_v54 = vpop.f32.mrb[0].mxu1 }
 0x2e7   : > { %v2100_v55 = vpop.f32.mrb[1].mxu1 }
 0x2e8   : > { %v2101_v42 = vadd.f32 %v2100_v55, %v2099_v54 }
 0x2ea   : > { %v1785_v15 = vmul.f32 %v2101_v42, %v3843_v23  ;;  %v2022_v37 = vpop.f32.mrb[2].mxu0 }
 0x2eb   : > { %v2102_v8 = vpop.f32.mrb[2].mxu1  ;;  %v2023_v52 = vpop.f32.mrb[3].mxu0 }
 0x2ec   : > { %v1801_v29 = vadd.f32 %v1785_v15, %v1110_v39  ;;  %v2024_v11 = vadd.f32 %v2023_v52, %v2022_v37  ;;  %v2103_v7 = vpop.f32.mrb[3].mxu1 }
 0x2ed   : > { %v2104_v4 = vadd.f32 %v2103_v7, %v2102_v8 }
 0x2ee   : > { %1817 = vst [vmem:[%s3848_s16] sm:$0xff] %v1801_v29  ;;  %v1111_v22 = vmul.f32 %v2024_v11, %v3838_v31 }
 0x2ef   : > { %v1786_v21 = vmul.f32 %v2104_v4, %v3843_v23  ;;  %v2025_v2 = vpop.f32.mrb[4].mxu0  ;;  %v2105_v27 = vpop.f32.mrb[4].mxu1 }
 0x2f0   : > { %v2026_v59 = vpop.f32.mrb[5].mxu0  ;;  %v2106_v0 = vpop.f32.mrb[5].mxu1 }
 0x2f1   : > { %v1802_v9 = vadd.f32 %v1786_v21, %v1111_v22  ;;  %v2027_v63 = vadd.f32 %v2026_v59, %v2025_v2  ;;  %v2107_v3 = vadd.f32 %v2106_v0, %v2105_v27 }
 0x2f3   : > { %1818 = vst [vmem:[%s3848_s16 + $0x8] sm:$0xff] %v1802_v9  ;;  %v1112_v40 = vmul.f32 %v2027_v63, %v3838_v31  ;;  %v1787_v6 = vmul.f32 %v2107_v3, %v3843_v23 }
 0x2f4   : > { %v2108_v17 = vpop.f32.mrb[6].mxu1 }
 0x2f5   : > { %v2028_v12 = vpop.f32.mrb[6].mxu0  ;;  %v2109_v45 = vpop.f32.mrb[7].mxu1  ;;  %v1803_v57 = vadd.f32 %v1787_v6, %v1112_v40 }
 0x2f6   : > { %v2029_v56 = vpop.f32.mrb[7].mxu0  ;;  %v2110_v25 = vadd.f32 %v2109_v45, %v2108_v17 }
 0x2f7   : > { %v2030_v50 = vadd.f32 %v2029_v56, %v2028_v12  ;;  %1819 = vst [vmem:[%s3848_s16 + $0x10] sm:$0xff] %v1803_v57 }
 0x2f8   : > { %v1788_v43 = vmul.f32 %v2110_v25, %v3843_v23  ;;  %v2111_v38 = vpop.f32.mrb[8].mxu1 }
 0x2f9   : > { %v1113_v49 = vmul.f32 %v2030_v50, %v3838_v31  ;;  %v2112_v60 = vpop.f32.mrb[9].mxu1 }
 0x2fa   : > { %v2113_v34 = vadd.f32 %v2112_v60, %v2111_v38 }
 0x2fb   : > { %v1804_v13 = vadd.f32 %v1788_v43, %v1113_v49  ;;  %v2031_v14 = vpop.f32.mrb[8].mxu0 }
 0x2fc   : > { %v2032_v62 = vpop.f32.mrb[9].mxu0  ;;  %v1789_v61 = vmul.f32 %v2113_v34, %v3843_v23 }
 0x2fd   : > { %1820 = vst [vmem:[%s3848_s16 + $0x18] sm:$0xff] %v1804_v13  ;;  %v2033_v44 = vadd.f32 %v2032_v62, %v2031_v14 }
 0x2fe   : > { %v2114_v28 = vpop.f32.mrb[10].mxu1 }
 0x2ff   : > { %v1114_v46 = vmul.f32 %v2033_v44, %v3838_v31  ;;  %v2115_v10 = vpop.f32.mrb[11].mxu1 }
 0x300   : > { %v2034_v47 = vpop.f32.mrb[10].mxu0  ;;  %v2116_v24 = vadd.f32 %v2115_v10, %v2114_v28 }
 0x301   : > { %v1805_v30 = vadd.f32 %v1789_v61, %v1114_v46  ;;  %v2035_v32 = vpop.f32.mrb[11].mxu0 }
 0x302   : > { %v2036_v51 = vadd.f32 %v2035_v32, %v2034_v47  ;;  %v1790_v58 = vmul.f32 %v2116_v24, %v3843_v23 }
 0x303   : > { %1821 = vst [vmem:[%s3848_s16 + $0x20] sm:$0xff] %v1805_v30 }
 0x304   : > { %v1115_v16 = vmul.f32 %v2036_v51, %v3838_v31 }
 0x305   : > { %v2037_v53 = vpop.f32.mrb[12].mxu0 }
 0x306   : > { %v2117_v26 = vpop.f32.mrb[12].mxu1  ;;  %v2038_v18 = vpop.f32.mrb[13].mxu0  ;;  %v1806_v5 = vadd.f32 %v1790_v58, %v1115_v16 }
 0x307   : > { %v2039_v19 = vadd.f32 %v2038_v18, %v2037_v53  ;;  %v2118_v20 = vpop.f32.mrb[13].mxu1 }
 0x308   : > { %v2119_v36 = vadd.f32 %v2118_v20, %v2117_v26  ;;  %1822 = vst [vmem:[%s3848_s16 + $0x28] sm:$0xff] %v1806_v5 }
 0x309   : > { %v1116_v41 = vmul.f32 %v2039_v19, %v3838_v31  ;;  %v2040_v1 = vpop.f32.mrb[14].mxu0 }
 0x30a   : > { %v1791_v35 = vmul.f32 %v2119_v36, %v3843_v23  ;;  %v2120_v48 = vpop.f32.mrb[14].mxu1  ;;  %v2041_v33 = vpop.f32.mrb[15].mxu0 }
 0x30b   : > { %v2042_v55 = vadd.f32 %v2041_v33, %v2040_v1  ;;  %v2121_v42 = vpop.f32.mrb[15].mxu1 }
 0x30c   : > { %v1807_v54 = vadd.f32 %v1791_v35, %v1116_v41  ;;  %v2122_v39 = vadd.f32 %v2121_v42, %v2120_v48 }
 0x30d   : > { %v1117_v15 = vmul.f32 %v2042_v55, %v3838_v31 }
 0x30e   : > { %1823 = vst [vmem:[%s3848_s16 + $0x30] sm:$0xff] %v1807_v54  ;;  %v2043_v37 = vpop.f32.mrb[16].mxu0  ;;  %v1792_v8 = vmul.f32 %v2122_v39, %v3843_v23 }
 0x30f   : > { %v2123_v52 = vpop.f32.mrb[16].mxu1  ;;  %v2044_v29 = vpop.f32.mrb[17].mxu0 }
 0x310   : > { %v2045_v11 = vadd.f32 %v2044_v29, %v2043_v37  ;;  %v2124_v7 = vpop.f32.mrb[17].mxu1  ;;  %v1808_v4 = vadd.f32 %v1792_v8, %v1117_v15 }
 0x311   : > { %v2125_v22 = vadd.f32 %v2124_v7, %v2123_v52 }
 0x312   : > { %v1118_v21 = vmul.f32 %v2045_v11, %v3838_v31  ;;  %1824 = vst [vmem:[%s3848_s16 + $0x38] sm:$0xff] %v1808_v4 }
 0x313   : > { %v1793_v2 = vmul.f32 %v2125_v22, %v3843_v23  ;;  %v2046_v27 = vpop.f32.mrb[18].mxu0 }
 0x314   : > { %v2126_v59 = vpop.f32.mrb[18].mxu1  ;;  %v2047_v0 = vpop.f32.mrb[19].mxu0 }
 0x315   : > { %v1809_v9 = vadd.f32 %v1793_v2, %v1118_v21  ;;  %v2048_v63 = vadd.f32 %v2047_v0, %v2046_v27  ;;  %v2127_v3 = vpop.f32.mrb[19].mxu1 }
 0x316   : > { %v2128_v40 = vadd.f32 %v2127_v3, %v2126_v59 }
 0x317   : > { %1825 = vst [vmem:[%s3848_s16 + $0x40] sm:$0xff] %v1809_v9  ;;  %v1119_v6 = vmul.f32 %v2048_v63, %v3838_v31  ;;  %v2049_v17 = vpop.f32.mrb[20].mxu0 }
 0x318   : > { %v1794_v12 = vmul.f32 %v2128_v40, %v3843_v23  ;;  %v2050_v45 = vpop.f32.mrb[21].mxu0 }
 0x319   : > { %v2051_v57 = vadd.f32 %v2050_v45, %v2049_v17 }
 0x31a   : > { %v1810_v56 = vadd.f32 %v1794_v12, %v1119_v6  ;;  %v2129_v25 = vpop.f32.mrb[20].mxu1 }
 0x31b   : > { %v2130_v50 = vpop.f32.mrb[21].mxu1  ;;  %v1120_v43 = vmul.f32 %v2051_v57, %v3838_v31 }
 0x31c   : > { %1826 = vst [vmem:[%s3848_s16 + $0x48] sm:$0xff] %v1810_v56  ;;  %v2131_v38 = vadd.f32 %v2130_v50, %v2129_v25  ;;  %v2052_v49 = vpop.f32.mrb[22].mxu0 }
 0x31d   : > { %v2053_v60 = vpop.f32.mrb[23].mxu0 }
 0x31e   : > { %v1795_v34 = vmul.f32 %v2131_v38, %v3843_v23  ;;  %v2132_v13 = vpop.f32.mrb[22].mxu1  ;;  %v2054_v14 = vadd.f32 %v2053_v60, %v2052_v49 }
 0x31f   : > { %v2133_v62 = vpop.f32.mrb[23].mxu1 }
 0x320   : > { %v1811_v44 = vadd.f32 %v1795_v34, %v1120_v43  ;;  %v1121_v61 = vmul.f32 %v2054_v14, %v3838_v31  ;;  %v2134_v28 = vadd.f32 %v2133_v62, %v2132_v13  ;;  %v2055_v46 = vpop.f32.mrb[24].mxu0 }
 0x321   : > { %v2056_v10 = vpop.f32.mrb[25].mxu0 }
 0x322   : > { %1827 = vst [vmem:[%s3848_s16 + $0x50] sm:$0xff] %v1811_v44  ;;  %v1796_v47 = vmul.f32 %v2134_v28, %v3843_v23  ;;  %v2135_v24 = vpop.f32.mrb[24].mxu1  ;;  %v2057_v30 = vadd.f32 %v2056_v10, %v2055_v46 }
 0x323   : > { %v2136_v32 = vpop.f32.mrb[25].mxu1 }
 0x324   : > { %v1812_v51 = vadd.f32 %v1796_v47, %v1121_v61  ;;  %v1122_v58 = vmul.f32 %v2057_v30, %v3838_v31  ;;  %v2137_v16 = vadd.f32 %v2136_v32, %v2135_v24  ;;  %v2058_v53 = vpop.f32.mrb[26].mxu0 }
 0x325   : > { %v2059_v26 = vpop.f32.mrb[27].mxu0 }
 0x326   : > { %1828 = vst [vmem:[%s3848_s16 + $0x58] sm:$0xff] %v1812_v51  ;;  %v1797_v18 = vmul.f32 %v2137_v16, %v3843_v23  ;;  %v2138_v5 = vpop.f32.mrb[26].mxu1  ;;  %v2060_v19 = vadd.f32 %v2059_v26, %v2058_v53 }
 0x327   : > { %v2139_v20 = vpop.f32.mrb[27].mxu1 }
 0x328   : > { %v1813_v36 = vadd.f32 %v1797_v18, %v1122_v58  ;;  %v1123_v41 = vmul.f32 %v2060_v19, %v3838_v31  ;;  %v2140_v35 = vadd.f32 %v2139_v20, %v2138_v5  ;;  %v2061_v1 = vpop.f32.mrb[28].mxu0 }
 0x329   : > { %v2062_v48 = vpop.f32.mrb[29].mxu0 }
 0x32a   : > { %1829 = vst [vmem:[%s3848_s16 + $0x60] sm:$0xff] %v1813_v36  ;;  %v1798_v33 = vmul.f32 %v2140_v35, %v3843_v23  ;;  %v2141_v54 = vpop.f32.mrb[28].mxu1  ;;  %v2063_v55 = vadd.f32 %v2062_v48, %v2061_v1 }
 0x32b   : > { %v2142_v42 = vpop.f32.mrb[29].mxu1 }
 0x32c   : > { %v1814_v39 = vadd.f32 %v1798_v33, %v1123_v41  ;;  %v1124_v15 = vmul.f32 %v2063_v55, %v3838_v31  ;;  %v2143_v37 = vadd.f32 %v2142_v42, %v2141_v54  ;;  %v2064_v8 = vpop.f32.mrb[30].mxu0 }
 0x32d   : > { %v2065_v52 = vpop.f32.mrb[31].mxu0 }
 0x32e   : > { %1830 = vst [vmem:[%s3848_s16 + $0x68] sm:$0xff] %v1814_v39  ;;  %v1799_v29 = vmul.f32 %v2143_v37, %v3843_v23  ;;  %v2144_v11 = vpop.f32.mrb[30].mxu1  ;;  %v2066_v7 = vadd.f32 %v2065_v52, %v2064_v8 }
 0x32f   : > { %v2145_v4 = vpop.f32.mrb[31].mxu1 }
 0x330   : > { %v1815_v22 = vadd.f32 %v1799_v29, %v1124_v15  ;;  %v1125_v21 = vmul.f32 %v2066_v7, %v3838_v31  ;;  %v2146_v2 = vadd.f32 %v2145_v4, %v2144_v11 }
 0x332   : > { %1831 = vst [vmem:[%s3848_s16 + $0x70] sm:$0xff] %v1815_v22  ;;  %v1800_v27 = vmul.f32 %v2146_v2, %v3843_v23 }
 0x334   : > { %v1816_v59 = vadd.f32 %v1800_v27, %v1125_v21 }
 0x336   : > { %1832 = vst [vmem:[%s3848_s16 + $0x78] sm:$0xff] %v1816_v59 }
 0x337   : > { %2503 = shalt.err (!%p2500_p4)
}
 0x338   : > { %s2504_s26 = scalar_lea.hbm %s3900_s10, 2048  ;;  %s2508_s14 = scalar_lea.hbm %s3952_s5, 4096 }
 0x339   : > { %p2505_p5 = scmp.ne.s32.totalorder %s3900_s10, %s2504_s26  ;;  %p2509_p1 = scmp.lt.u32.totalorder %s3900_s10, %s3952_s5 }
 0x33a   : > { %p2510_p3 = scmp.lt.u32.totalorder %s2508_s14, %s2504_s26  ;;  %p2512_p6 = scmp.lt.u32.totalorder %s2504_s26, %s3900_s10 }
 0x33b   : > { %p2506_p7 = pnand %p2505_p5, %p4208_p12 }
 0x33c   : > { %p2511_p11 = por %p2510_p3, %p2509_p1 }
 0x33d   : > { %p2507_p9 = pneg %p2506_p7 }
 0x33e   : > { %p2513_p13 = por %p2512_p6, %p2511_p11 }
 0x340   : > { %p2514_p8 = pnand %p2513_p13, %p2507_p9 }
 0x342   : > { %2517 = shalt.err (!%p2514_p8)
}
 0x343   : > { %s2564_s8 = smov 128   ;;  %s2565_s7 = smov 8  }
 0x344   : > { %2213 = dma.vmem_to_hbm [thread:$0]  (%p4208_p12), %s3902_s29, 2048, %s3900_s10, %s1834_s11, %s2564_s8, %s2564_s8, %s2565_s7  }
 0x345 PF: > { %s1862_s9 = sand.u32 1, %s2544_s18   ;;  %p4209_p10 = scmp.ne.s32.totalorder %s4061_s6, 0 }
 0x346   : > { %p4210_p0 = scmp.ge.s32.totalorder %s2556_s21, 2  ;;  %s1863_s13 = scalar_lea.sflag [#allocation4], %s1862_s9 }
 0x348   : > { %p2220_p2 = pnand %p4210_p0, %p4209_p10 }
 0x34a   : > { %2539 = dma.done.wait (!%p2220_p2), %s1863_s13, 2048  }
 0x34b   : > { %2541 = vsyncadd (!%p2220_p2), %s1863_s13, 4294965248  ;;  %p18_p4 = scmp.ge.s32.totalorder %s2621_s24, 4   ;;  %s4211_s18 = smov %s2548_s19 }
 0x34c   : > { %s4212_s19 = smov %s2552_s20  ;;  %s4213_s20 = smov %s2633_s27 }
 0x34d   : > { %s4214_s21 = smov %s2621_s24  ;;  %20 = sbr.rel (!%p18_p4) target bundleno = 5 (0x5), region = 89 }
 0x354   :  { %1868 = vsyncpa [#allocation3], 1 }
 0x355   :  { %1870 = vsyncpa [#allocation3 + $0x1], 1 }
 0x356   :  { %1871 = vsyncpa [#allocation4], 1 }
 0x357   :  { %1873 = vsyncpa [#allocation4 + $0x1], 1 }

</bundles_post_ra>
